<compile_context>
chip_gen: v5e
topology: v5e:2x2
jax: 0.10.0
libtpu: 0.0.40
codegen_flags: <defaults>
</compile_context>

<pallas_src>
import functools

import jax
import jax.numpy as jnp
from jax.experimental import pallas as pl
from jax.experimental.pallas import tpu as pltpu


# -----------------------------------------------------------------------------
# In-kernel helpers
# -----------------------------------------------------------------------------
def _erf(x):
    # Abramowitz & Stegun 7.1.26, |err| <= 1.5e-7 (plus approx-reciprocal).
    p = 0.3275911
    a1, a2, a3, a4, a5 = (0.254829592, -0.284496736, 1.421413741,
                          -1.453152027, 1.061405429)
    ax = jnp.abs(x)
    t = pl.reciprocal(1.0 + p * ax, approx=True)          # EUP slot
    poly = t * (a1 + t * (a2 + t * (a3 + t * (a4 + t * a5))))
    e = 1.0 - poly * jnp.exp(-(ax * ax))
    return jnp.where(x >= 0, e, -e)


def _gelu_exact(x):
    return 0.5 * x * (1.0 + _erf(x * 0.7071067811865476))


def _layernorm(x, g, b, eps):
    # Single-pass variance: the two cross-lane reductions are independent.
    mu = jnp.mean(x, axis=-1, keepdims=True)
    m2 = jnp.mean(x * x, axis=-1, keepdims=True)
    var = m2 - mu * mu
    return (x - mu) * jax.lax.rsqrt(var + eps) * g + b


# -----------------------------------------------------------------------------
# Fused encoder kernel: grid = (batch, depth); one Block per depth step.
# -----------------------------------------------------------------------------
def _encoder_kernel(slot_ref, write_ref,                       # scalar prefetch
                    x_ref, pos_ref,
                    ln1g_ref, ln1b_ref, wqkv_ref, wproj_ref, bproj_ref,
                    ln2g_ref, ln2b_ref, w1_ref, b1_ref, w2_ref, b2_ref,
                    o_ref,
                    x_scr,
                    *, num_heads, head_dim, eps):
    del slot_ref  # only used by the output index_map
    d = pl.program_id(1)
    c = num_heads * head_dim
    n = x_ref.shape[0]
    scale = head_dim ** -0.5

    # Re-init the carried activation at the first block of each batch element.
    @pl.when(d == 0)
    def _():
        x_scr[...] = x_ref[...]

    # Each Block receives (x + pos), matching TransformerEncoder.forward.
    x_in = x_scr[...] + pos_ref[...]                           # (N, C) f32

    # ---------------- Attention branch (pre-LN) ----------------
    h = _layernorm(x_in, ln1g_ref[...], ln1b_ref[...], eps)
    qkv = jnp.dot(h.astype(jnp.bfloat16), wqkv_ref[...],
                  preferred_element_type=jnp.float32)          # (N, 3C) f32

    # Lane slices at C-aligned offsets, then head-batched layout (H, N, hd).
    q = (qkv[:, 0:c] * scale).reshape(n, num_heads, head_dim)
    k = qkv[:, c:2 * c].reshape(n, num_heads, head_dim)
    v = qkv[:, 2 * c:3 * c].reshape(n, num_heads, head_dim)
    q = jnp.transpose(q, (1, 0, 2)).astype(jnp.bfloat16)       # (H, N, hd)
    k = jnp.transpose(k, (1, 0, 2)).astype(jnp.bfloat16)
    v = jnp.transpose(v, (1, 0, 2)).astype(jnp.bfloat16)

    s = jnp.einsum('hnd,hmd->hnm', q, k,
                   preferred_element_type=jnp.float32)         # (H, N, N) f32
    s = s - jnp.max(s, axis=-1, keepdims=True)
    e = jnp.exp(s)
    inv_den = pl.reciprocal(jnp.sum(e, axis=-1, keepdims=True), approx=True)
    probs = e * inv_den
    ctx = jnp.einsum('hnm,hmd->hnd', probs.astype(jnp.bfloat16), v,
                     preferred_element_type=jnp.float32)       # (H, N, hd)
    attn_out = jnp.transpose(ctx, (1, 0, 2)).reshape(n, c)     # (N, C)
    attn_out = (jnp.dot(attn_out.astype(jnp.bfloat16), wproj_ref[...],
                        preferred_element_type=jnp.float32) + bproj_ref[...])

    x1 = x_in + attn_out                                       # residual 1

    # ---------------- MLP branch (pre-LN) ----------------
    h2 = _layernorm(x1, ln2g_ref[...], ln2b_ref[...], eps)
    m = jnp.dot(h2.astype(jnp.bfloat16), w1_ref[...],
                preferred_element_type=jnp.float32) + b1_ref[...]
    m = _gelu_exact(m)
    m = jnp.dot(m.astype(jnp.bfloat16), w2_ref[...],
                preferred_element_type=jnp.float32) + b2_ref[...]

    x_out = x1 + m                                             # residual 2
    x_scr[...] = x_out                                         # carry to d+1

    # Emit to HBM only at fetch_idx layers (output block revisited otherwise).
    @pl.when(write_ref[d] == 1)
    def _():
        o_ref[...] = x_out.astype(o_ref.dtype)


# -----------------------------------------------------------------------------
# Wrapper: one pallas_call for the whole encoder.
# -----------------------------------------------------------------------------
def transformer_encoder_forward(params, x, pos, *, num_heads,
                                fetch_idx=(3, 7, 11)):
    """params: dict of depth-stacked arrays. x, pos: (B, N, C).
    Returns the list of features at fetch_idx (like TransformerEncoder)."""
    depth, c, _ = params['w_qkv'].shape
    bsz, n, _ = x.shape
    hidden = params['w_fc1'].shape[-1]
    head_dim = c // num_heads

    fetch = sorted(i for i in fetch_idx if 0 <= i < depth)
    num_fetch = max(len(fetch), 1)

    # slot[d]  = feature slot that depth d's output block maps to.
    # write[d] = 1 iff depth d is a fetched layer (only then store o_ref).
    slot_l, write_l, s_i = [], [], 0
    for d in range(depth):
        slot_l.append(min(s_i, num_fetch - 1))
        if d in fetch:
            write_l.append(1)
            s_i += 1
        else:
            write_l.append(0)
    slot = jnp.asarray(slot_l, jnp.int32)
    write = jnp.asarray(write_l, jnp.int32)

    kernel = functools.partial(_encoder_kernel, num_heads=num_heads,
                               head_dim=head_dim, eps=1e-5)

    def act_spec():  # per-batch activations, resident across the depth axis
        return pl.BlockSpec((None, n, c), lambda b, d, slot_r, wr_r: (b, 0, 0))

    def wspec(shape):  # per-layer (depth-stacked) parameters
        return pl.BlockSpec((None,) + shape,
                            lambda b, d, slot_r, wr_r: (d, 0, 0))

    feats = pl.pallas_call(
        kernel,
        out_shape=jax.ShapeDtypeStruct((num_fetch, bsz, n, c), jnp.float32),
        grid_spec=pltpu.PrefetchScalarGridSpec(
            num_scalar_prefetch=2,
            grid=(bsz, depth),
            in_specs=[
                act_spec(),                                   # x
                act_spec(),                                   # pos
                wspec((1, c)), wspec((1, c)),                 # ln1 gamma/beta
                wspec((c, 3 * c)),                            # w_qkv (bf16)
                wspec((c, c)), wspec((1, c)),                 # w_proj, b_proj
                wspec((1, c)), wspec((1, c)),                 # ln2 gamma/beta
                wspec((c, hidden)), wspec((1, hidden)),       # fc1
                wspec((hidden, c)), wspec((1, c)),            # fc2
            ],
            out_specs=pl.BlockSpec(
                (None, None, n, c),
                lambda b, d, slot_r, wr_r: (slot_r[d], b, 0, 0)),
            scratch_shapes=[pltpu.VMEM((n, c), jnp.float32)],  # carried x
        ),
        compiler_params=pltpu.CompilerParams(
            dimension_semantics=("parallel", "arbitrary")),
    )(slot, write, x, pos,
      params['ln1_g'], params['ln1_b'],
      params['w_qkv'], params['w_proj'], params['b_proj'],
      params['ln2_g'], params['ln2_b'],
      params['w_fc1'], params['b_fc1'],
      params['w_fc2'], params['b_fc2'])

    return [feats[i] for i in range(len(fetch))]


# -----------------------------------------------------------------------------
# Pure-JAX reference (mirrors the PyTorch module; exact-erf GELU, f32 math,
# using the same bf16-stored weights).
# -----------------------------------------------------------------------------
def _ref_ln(x, g, b, eps=1e-5):
    mu = x.mean(-1, keepdims=True)
    var = ((x - mu) ** 2).mean(-1, keepdims=True)
    return (x - mu) / jnp.sqrt(var + eps) * g + b


def _ref_block(p, x, pos, num_heads):
    bsz, n, c = x.shape
    hd = c // num_heads
    scale = hd ** -0.5
    f32 = jnp.float32
    x_in = x + pos
    h = _ref_ln(x_in, p['ln1_g'], p['ln1_b'])
    qkv = h @ p['w_qkv'].astype(f32)
    qkv = qkv.reshape(bsz, n, 3, num_heads, hd).transpose(2, 0, 3, 1, 4)
    q, k, v = qkv[0], qkv[1], qkv[2]                       # (B, H, N, hd)
    attn = (q @ jnp.swapaxes(k, -2, -1)) * scale
    attn = jax.nn.softmax(attn, axis=-1)
    ao = (attn @ v).transpose(0, 2, 1, 3).reshape(bsz, n, c)
    ao = ao @ p['w_proj'].astype(f32) + p['b_proj']
    x1 = x_in + ao
    h2 = _ref_ln(x1, p['ln2_g'], p['ln2_b'])
    m = jax.nn.gelu(h2 @ p['w_fc1'].astype(f32) + p['b_fc1'], approximate=False)
    m = m @ p['w_fc2'].astype(f32) + p['b_fc2']
    return x1 + m


def _ref_forward(params, x, pos, num_heads, fetch_idx=(3, 7, 11)):
    depth = params['w_qkv'].shape[0]
    feats = []
    for d in range(depth):
        p = {k: v[d] for k, v in params.items()}
        x = _ref_block(p, x, pos, num_heads)
        if d in fetch_idx:
            feats.append(x)
    return feats


# -----------------------------------------------------------------------------
def _make_params(key, depth, dim, hidden):
    ks = jax.random.split(key, 11)
    s = 0.02
    f32, bf16 = jnp.float32, jnp.bfloat16

    def nrm(k, shape):
        return s * jax.random.normal(k, shape, f32)

    return {
        'ln1_g': 1.0 + 0.05 * jax.random.normal(ks[0], (depth, 1, dim), f32),
        'ln1_b': 0.05 * jax.random.normal(ks[1], (depth, 1, dim), f32),
        'w_qkv': nrm(ks[2], (depth, dim, 3 * dim)).astype(bf16),
        'w_proj': nrm(ks[3], (depth, dim, dim)).astype(bf16),
        'b_proj': nrm(ks[4], (depth, 1, dim)),
        'ln2_g': 1.0 + 0.05 * jax.random.normal(ks[5], (depth, 1, dim), f32),
        'ln2_b': 0.05 * jax.random.normal(ks[6], (depth, 1, dim), f32),
        'w_fc1': nrm(ks[7], (depth, dim, hidden)).astype(bf16),
        'b_fc1': nrm(ks[8], (depth, 1, hidden)),
        'w_fc2': nrm(ks[9], (depth, hidden, dim)).astype(bf16),
        'b_fc2': nrm(ks[10], (depth, 1, dim)),
    }


if __name__ == "__main__":
    key = jax.random.PRNGKey(0)
    B, N, C = 2, 32, 128          # small shapes; C on the TPU lane axis
    NUM_HEADS, DEPTH = 4, 4       # depth=4 is the module default
    MLP_H = int(4.0 * C)          # mlp_ratio=4.0

    kx, kp, kw = jax.random.split(key, 3)
    x = jax.random.normal(kx, (B, N, C), jnp.float32)
    pos = jax.random.normal(kp, (B, N, C), jnp.float32)
    params = _make_params(kw, DEPTH, C, MLP_H)

    fwd = jax.jit(functools.partial(
        transformer_encoder_forward, num_heads=NUM_HEADS))
    feats = jax.block_until_ready(fwd(params, x, pos))

    # depth=4 with fetch_idx=[3,7,11] -> exactly one fetched feature (block 3).
    assert len(feats) == 1 and feats[0].shape == (B, N, C), \
        [f.shape for f in feats]

    ref = _ref_forward(params, x, pos, NUM_HEADS)
    for got, want in zip(feats, ref):
        err = float(jnp.max(jnp.abs(got - want)))
        assert jnp.allclose(got, want, atol=5e-3, rtol=5e-3), err

    print("KERNEL_OK")
</pallas_src>

<mosaic_0001>
module attributes {stable_mosaic.version = 11 : i64} {
  func.func @_encoder_kernel(%arg0: i32, %arg1: i32, %arg2: memref<4xi32, #tpu.memory_space<smem>>, %arg3: memref<4xi32, #tpu.memory_space<smem>>, %arg4: memref<1x32x128xf32, #tpu.memory_space<vmem>>, %arg5: memref<1x32x128xf32, #tpu.memory_space<vmem>>, %arg6: memref<1x1x128xf32, #tpu.memory_space<vmem>>, %arg7: memref<1x1x128xf32, #tpu.memory_space<vmem>>, %arg8: memref<1x128x384xbf16, #tpu.memory_space<vmem>>, %arg9: memref<1x128x128xbf16, #tpu.memory_space<vmem>>, %arg10: memref<1x1x128xf32, #tpu.memory_space<vmem>>, %arg11: memref<1x1x128xf32, #tpu.memory_space<vmem>>, %arg12: memref<1x1x128xf32, #tpu.memory_space<vmem>>, %arg13: memref<1x128x512xbf16, #tpu.memory_space<vmem>>, %arg14: memref<1x1x512xf32, #tpu.memory_space<vmem>>, %arg15: memref<1x512x128xbf16, #tpu.memory_space<vmem>>, %arg16: memref<1x1x128xf32, #tpu.memory_space<vmem>>, %arg17: memref<1x1x32x128xf32, #tpu.memory_space<vmem>>, %arg18: memref<32x128xf32, #tpu.memory_space<vmem>>) attributes {dimension_semantics = [#tpu.dimension_semantics<parallel>, #tpu.dimension_semantics<arbitrary>], iteration_bounds = array<i64: 2, 4>, scalar_prefetch = 2 : i64, scratch_operands = 1 : i64, tpu.core_type = #tpu.core_type<tc>, window_params = [{transform_indices = @transform_0, window_bounds = array<i64: 1, 32, 128>}, {transform_indices = @transform_1, window_bounds = array<i64: 1, 32, 128>}, {transform_indices = @transform_2, window_bounds = array<i64: 1, 1, 128>}, {transform_indices = @transform_3, window_bounds = array<i64: 1, 1, 128>}, {transform_indices = @transform_4, window_bounds = array<i64: 1, 128, 384>}, {transform_indices = @transform_5, window_bounds = array<i64: 1, 128, 128>}, {transform_indices = @transform_6, window_bounds = array<i64: 1, 1, 128>}, {transform_indices = @transform_7, window_bounds = array<i64: 1, 1, 128>}, {transform_indices = @transform_8, window_bounds = array<i64: 1, 1, 128>}, {transform_indices = @transform_9, window_bounds = array<i64: 1, 128, 512>}, {transform_indices = @transform_10, window_bounds = array<i64: 1, 1, 512>}, {transform_indices = @transform_11, window_bounds = array<i64: 1, 512, 128>}, {transform_indices = @transform_12, window_bounds = array<i64: 1, 1, 128>}, {transform_indices = @transform_13, window_bounds = array<i64: 1, 1, 32, 128>}]} {
    %c0_i32 = arith.constant 0 : i32
    %0 = arith.cmpi eq, %arg1, %c0_i32 : i32
    %1 = arith.extui %0 : i1 to i32
    %c0_i32_0 = arith.constant 0 : i32
    %2 = arith.cmpi ne, %1, %c0_i32_0 : i32
    scf.if %2 {
      %c0_73 = arith.constant 0 : index
      %c0_74 = arith.constant 0 : index
      %c0_75 = arith.constant 0 : index
      %163 = vector.load %arg4[%c0_73, %c0_74, %c0_75] : memref<1x32x128xf32, #tpu.memory_space<vmem>>, vector<1x32x128xf32>
      %164 = vector.shape_cast %163 : vector<1x32x128xf32> to vector<32x128xf32>
      %c0_76 = arith.constant 0 : index
      %c0_77 = arith.constant 0 : index
      %165 = vector.load %arg18[%c0_76, %c0_77] : memref<32x128xf32, #tpu.memory_space<vmem>>, vector<32x128xf32>
      tpu.vector_store %arg18[%c0_76, %c0_77], %164 {strides = array<i32>} : memref<32x128xf32, #tpu.memory_space<vmem>>, vector<32x128xf32>,
    } else {
    }
    %c0 = arith.constant 0 : index
    %c0_1 = arith.constant 0 : index
    %3 = vector.load %arg18[%c0, %c0_1] : memref<32x128xf32, #tpu.memory_space<vmem>>, vector<32x128xf32>
    %c0_2 = arith.constant 0 : index
    %c0_3 = arith.constant 0 : index
    %c0_4 = arith.constant 0 : index
    %4 = vector.load %arg5[%c0_2, %c0_3, %c0_4] : memref<1x32x128xf32, #tpu.memory_space<vmem>>, vector<1x32x128xf32>
    %5 = vector.shape_cast %4 : vector<1x32x128xf32> to vector<32x128xf32>
    %6 = arith.addf %3, %5 : vector<32x128xf32>
    %c0_5 = arith.constant 0 : index
    %c0_6 = arith.constant 0 : index
    %c0_7 = arith.constant 0 : index
    %7 = vector.load %arg6[%c0_5, %c0_6, %c0_7] : memref<1x1x128xf32, #tpu.memory_space<vmem>>, vector<1x1x128xf32>
    %8 = vector.shape_cast %7 : vector<1x1x128xf32> to vector<1x128xf32>
    %c0_8 = arith.constant 0 : index
    %c0_9 = arith.constant 0 : index
    %c0_10 = arith.constant 0 : index
    %9 = vector.load %arg7[%c0_8, %c0_9, %c0_10] : memref<1x1x128xf32, #tpu.memory_space<vmem>>, vector<1x1x128xf32>
    %10 = vector.shape_cast %9 : vector<1x1x128xf32> to vector<1x128xf32>
    %cst = arith.constant dense<0.000000e+00> : vector<32xf32>
    %11 = vector.multi_reduction <add>, %6, %cst [1] : vector<32x128xf32> to vector<32xf32>
    %12 = vector.shape_cast %11 : vector<32xf32> to vector<32x1xf32>
    %cst_11 = arith.constant 1.280000e+02 : f32
    %13 = vector.broadcast %cst_11 : f32 to vector<32x1xf32>
    %14 = arith.divf %12, %13 : vector<32x1xf32>
    %15 = arith.mulf %6, %6 : vector<32x128xf32>
    %cst_12 = arith.constant dense<0.000000e+00> : vector<32xf32>
    %16 = vector.multi_reduction <add>, %15, %cst_12 [1] : vector<32x128xf32> to vector<32xf32>
    %17 = vector.shape_cast %16 : vector<32xf32> to vector<32x1xf32>
    %cst_13 = arith.constant 1.280000e+02 : f32
    %18 = vector.broadcast %cst_13 : f32 to vector<32x1xf32>
    %19 = arith.divf %17, %18 : vector<32x1xf32>
    %20 = arith.mulf %14, %14 : vector<32x1xf32>
    %21 = arith.subf %19, %20 : vector<32x1xf32>
    %22 = vector.broadcast %14 : vector<32x1xf32> to vector<32x128xf32>
    %23 = arith.subf %6, %22 : vector<32x128xf32>
    %cst_14 = arith.constant 9.99999974E-6 : f32
    %24 = vector.broadcast %cst_14 : f32 to vector<32x1xf32>
    %25 = arith.addf %21, %24 : vector<32x1xf32>
    %26 = math.rsqrt %25 : vector<32x1xf32>
    %27 = vector.broadcast %26 : vector<32x1xf32> to vector<32x128xf32>
    %28 = arith.mulf %23, %27 : vector<32x128xf32>
    %29 = vector.broadcast %8 : vector<1x128xf32> to vector<32x128xf32>
    %30 = arith.mulf %28, %29 : vector<32x128xf32>
    %31 = vector.broadcast %10 : vector<1x128xf32> to vector<32x128xf32>
    %32 = arith.addf %30, %31 : vector<32x128xf32>
    %33 = arith.truncf %32 : vector<32x128xf32> to vector<32x128xbf16>
    %c0_15 = arith.constant 0 : index
    %c0_16 = arith.constant 0 : index
    %c0_17 = arith.constant 0 : index
    %34 = vector.load %arg8[%c0_15, %c0_16, %c0_17] : memref<1x128x384xbf16, #tpu.memory_space<vmem>>, vector<1x128x384xbf16>
    %35 = vector.shape_cast %34 : vector<1x128x384xbf16> to vector<128x384xbf16>
    %cst_18 = arith.constant dense<0.000000e+00> : vector<32x384xf32>
    %36 = tpu.matmul %33, %35, %cst_18 {dimension_numbers = #tpu.dot_dimension_numbers<[1], [0], [0], [1], [0, 0, 1, 1], [], []>} : vector<32x128xbf16>, vector<128x384xbf16>, vector<32x384xf32> -> vector<32x384xf32>
    %37 = vector.extract_strided_slice %36 {offsets = [0, 0], sizes = [32, 128], strides = [1, 1]} : vector<32x384xf32> to vector<32x128xf32>
    %cst_19 = arith.constant 0.176776692 : f32
    %38 = vector.broadcast %cst_19 : f32 to vector<32x128xf32>
    %39 = arith.mulf %37, %38 : vector<32x128xf32>
    %40 = vector.shape_cast %39 : vector<32x128xf32> to vector<32x4x32xf32>
    %41 = vector.extract_strided_slice %36 {offsets = [0, 128], sizes = [32, 128], strides = [1, 1]} : vector<32x384xf32> to vector<32x128xf32>
    %42 = vector.shape_cast %41 : vector<32x128xf32> to vector<32x4x32xf32>
    %43 = vector.extract_strided_slice %36 {offsets = [0, 256], sizes = [32, 128], strides = [1, 1]} : vector<32x384xf32> to vector<32x128xf32>
    %44 = vector.shape_cast %43 : vector<32x128xf32> to vector<32x4x32xf32>
    %45 = tpu.transpose %40, [1, 0, 2] : vector<32x4x32xf32> -> vector<4x32x32xf32>
    %46 = arith.truncf %45 : vector<4x32x32xf32> to vector<4x32x32xbf16>
    %47 = tpu.transpose %42, [1, 0, 2] : vector<32x4x32xf32> -> vector<4x32x32xf32>
    %48 = arith.truncf %47 : vector<4x32x32xf32> to vector<4x32x32xbf16>
    %49 = tpu.transpose %44, [1, 0, 2] : vector<32x4x32xf32> -> vector<4x32x32xf32>
    %50 = arith.truncf %49 : vector<4x32x32xf32> to vector<4x32x32xbf16>
    "tpu.trace_start"() <{level = 10 : i32, message = "hnd,hmd->hnm"}> : () -> ()
    %cst_20 = arith.constant dense<0.000000e+00> : vector<4x32x32xf32>
    %51 = tpu.matmul %46, %48, %cst_20 {dimension_numbers = #tpu.dot_dimension_numbers<[2], [2], [1], [1], [0, 0, 0, 1, 1, 1], [0], [0]>} : vector<4x32x32xbf16>, vector<4x32x32xbf16>, vector<4x32x32xf32> -> vector<4x32x32xf32>
    "tpu.trace_stop"() : () -> ()
    %cst_21 = arith.constant dense<0xFF800000> : vector<4x32xf32>
    %52 = vector.multi_reduction <maximumf>, %51, %cst_21 [2] : vector<4x32x32xf32> to vector<4x32xf32>
    %53 = vector.shape_cast %52 : vector<4x32xf32> to vector<4x32x1xf32>
    %54 = vector.broadcast %53 : vector<4x32x1xf32> to vector<4x32x32xf32>
    %55 = arith.subf %51, %54 : vector<4x32x32xf32>
    %56 = math.exp %55 : vector<4x32x32xf32>
    %cst_22 = arith.constant dense<0.000000e+00> : vector<4x32xf32>
    %57 = vector.multi_reduction <add>, %56, %cst_22 [2] : vector<4x32x32xf32> to vector<4x32xf32>
    %58 = vector.shape_cast %57 : vector<4x32xf32> to vector<4x32x1xf32>
    %59 = tpu.reciprocal %58 {approx = true} : vector<4x32x1xf32> -> vector<4x32x1xf32>
    %60 = vector.broadcast %59 : vector<4x32x1xf32> to vector<4x32x32xf32>
    %61 = arith.mulf %56, %60 : vector<4x32x32xf32>
    %62 = arith.truncf %61 : vector<4x32x32xf32> to vector<4x32x32xbf16>
    "tpu.trace_start"() <{level = 10 : i32, message = "hnm,hmd->hnd"}> : () -> ()
    %cst_23 = arith.constant dense<0.000000e+00> : vector<4x32x32xf32>
    %63 = tpu.matmul %62, %50, %cst_23 {dimension_numbers = #tpu.dot_dimension_numbers<[2], [1], [1], [2], [0, 0, 0, 1, 1, 2], [0], [0]>} : vector<4x32x32xbf16>, vector<4x32x32xbf16>, vector<4x32x32xf32> -> vector<4x32x32xf32>
    "tpu.trace_stop"() : () -> ()
    %64 = tpu.transpose %63, [1, 0, 2] : vector<4x32x32xf32> -> vector<32x4x32xf32>
    %65 = vector.shape_cast %64 : vector<32x4x32xf32> to vector<32x128xf32>
    %66 = arith.truncf %65 : vector<32x128xf32> to vector<32x128xbf16>
    %c0_24 = arith.constant 0 : index
    %c0_25 = arith.constant 0 : index
    %c0_26 = arith.constant 0 : index
    %67 = vector.load %arg9[%c0_24, %c0_25, %c0_26] : memref<1x128x128xbf16, #tpu.memory_space<vmem>>, vector<1x128x128xbf16>
    %68 = vector.shape_cast %67 : vector<1x128x128xbf16> to vector<128x128xbf16>
    %cst_27 = arith.constant dense<0.000000e+00> : vector<32x128xf32>
    %69 = tpu.matmul %66, %68, %cst_27 {dimension_numbers = #tpu.dot_dimension_numbers<[1], [0], [0], [1], [0, 0, 1, 1], [], []>} : vector<32x128xbf16>, vector<128x128xbf16>, vector<32x128xf32> -> vector<32x128xf32>
    %c0_28 = arith.constant 0 : index
    %c0_29 = arith.constant 0 : index
    %c0_30 = arith.constant 0 : index
    %70 = vector.load %arg10[%c0_28, %c0_29, %c0_30] : memref<1x1x128xf32, #tpu.memory_space<vmem>>, vector<1x1x128xf32>
    %71 = vector.shape_cast %70 : vector<1x1x128xf32> to vector<1x128xf32>
    %72 = vector.broadcast %71 : vector<1x128xf32> to vector<32x128xf32>
    %73 = arith.addf %69, %72 : vector<32x128xf32>
    %74 = arith.addf %6, %73 : vector<32x128xf32>
    %c0_31 = arith.constant 0 : index
    %c0_32 = arith.constant 0 : index
    %c0_33 = arith.constant 0 : index
    %75 = vector.load %arg11[%c0_31, %c0_32, %c0_33] : memref<1x1x128xf32, #tpu.memory_space<vmem>>, vector<1x1x128xf32>
    %76 = vector.shape_cast %75 : vector<1x1x128xf32> to vector<1x128xf32>
    %c0_34 = arith.constant 0 : index
    %c0_35 = arith.constant 0 : index
    %c0_36 = arith.constant 0 : index
    %77 = vector.load %arg12[%c0_34, %c0_35, %c0_36] : memref<1x1x128xf32, #tpu.memory_space<vmem>>, vector<1x1x128xf32>
    %78 = vector.shape_cast %77 : vector<1x1x128xf32> to vector<1x128xf32>
    %cst_37 = arith.constant dense<0.000000e+00> : vector<32xf32>
    %79 = vector.multi_reduction <add>, %74, %cst_37 [1] : vector<32x128xf32> to vector<32xf32>
    %80 = vector.shape_cast %79 : vector<32xf32> to vector<32x1xf32>
    %cst_38 = arith.constant 1.280000e+02 : f32
    %81 = vector.broadcast %cst_38 : f32 to vector<32x1xf32>
    %82 = arith.divf %80, %81 : vector<32x1xf32>
    %83 = arith.mulf %74, %74 : vector<32x128xf32>
    %cst_39 = arith.constant dense<0.000000e+00> : vector<32xf32>
    %84 = vector.multi_reduction <add>, %83, %cst_39 [1] : vector<32x128xf32> to vector<32xf32>
    %85 = vector.shape_cast %84 : vector<32xf32> to vector<32x1xf32>
    %cst_40 = arith.constant 1.280000e+02 : f32
    %86 = vector.broadcast %cst_40 : f32 to vector<32x1xf32>
    %87 = arith.divf %85, %86 : vector<32x1xf32>
    %88 = arith.mulf %82, %82 : vector<32x1xf32>
    %89 = arith.subf %87, %88 : vector<32x1xf32>
    %90 = vector.broadcast %82 : vector<32x1xf32> to vector<32x128xf32>
    %91 = arith.subf %74, %90 : vector<32x128xf32>
    %cst_41 = arith.constant 9.99999974E-6 : f32
    %92 = vector.broadcast %cst_41 : f32 to vector<32x1xf32>
    %93 = arith.addf %89, %92 : vector<32x1xf32>
    %94 = math.rsqrt %93 : vector<32x1xf32>
    %95 = vector.broadcast %94 : vector<32x1xf32> to vector<32x128xf32>
    %96 = arith.mulf %91, %95 : vector<32x128xf32>
    %97 = vector.broadcast %76 : vector<1x128xf32> to vector<32x128xf32>
    %98 = arith.mulf %96, %97 : vector<32x128xf32>
    %99 = vector.broadcast %78 : vector<1x128xf32> to vector<32x128xf32>
    %100 = arith.addf %98, %99 : vector<32x128xf32>
    %101 = arith.truncf %100 : vector<32x128xf32> to vector<32x128xbf16>
    %c0_42 = arith.constant 0 : index
    %c0_43 = arith.constant 0 : index
    %c0_44 = arith.constant 0 : index
    %102 = vector.load %arg13[%c0_42, %c0_43, %c0_44] : memref<1x128x512xbf16, #tpu.memory_space<vmem>>, vector<1x128x512xbf16>
    %103 = vector.shape_cast %102 : vector<1x128x512xbf16> to vector<128x512xbf16>
    %cst_45 = arith.constant dense<0.000000e+00> : vector<32x512xf32>
    %104 = tpu.matmul %101, %103, %cst_45 {dimension_numbers = #tpu.dot_dimension_numbers<[1], [0], [0], [1], [0, 0, 1, 1], [], []>} : vector<32x128xbf16>, vector<128x512xbf16>, vector<32x512xf32> -> vector<32x512xf32>
    %c0_46 = arith.constant 0 : index
    %c0_47 = arith.constant 0 : index
    %c0_48 = arith.constant 0 : index
    %105 = vector.load %arg14[%c0_46, %c0_47, %c0_48] : memref<1x1x512xf32, #tpu.memory_space<vmem>>, vector<1x1x512xf32>
    %106 = vector.shape_cast %105 : vector<1x1x512xf32> to vector<1x512xf32>
    %107 = vector.broadcast %106 : vector<1x512xf32> to vector<32x512xf32>
    %108 = arith.addf %104, %107 : vector<32x512xf32>
    %cst_49 = arith.constant 5.000000e-01 : f32
    %109 = vector.broadcast %cst_49 : f32 to vector<32x512xf32>
    %110 = arith.mulf %109, %108 : vector<32x512xf32>
    %cst_50 = arith.constant 0.707106769 : f32
    %111 = vector.broadcast %cst_50 : f32 to vector<32x512xf32>
    %112 = arith.mulf %108, %111 : vector<32x512xf32>
    %113 = math.absf %112 : vector<32x512xf32>
    %cst_51 = arith.constant 0.327591091 : f32
    %114 = vector.broadcast %cst_51 : f32 to vector<32x512xf32>
    %115 = arith.mulf %114, %113 : vector<32x512xf32>
    %cst_52 = arith.constant 1.000000e+00 : f32
    %116 = vector.broadcast %cst_52 : f32 to vector<32x512xf32>
    %117 = arith.addf %116, %115 : vector<32x512xf32>
    %118 = tpu.reciprocal %117 {approx = true} : vector<32x512xf32> -> vector<32x512xf32>
    %cst_53 = arith.constant 1.06140542 : f32
    %119 = vector.broadcast %cst_53 : f32 to vector<32x512xf32>
    %120 = arith.mulf %118, %119 : vector<32x512xf32>
    %cst_54 = arith.constant -1.45315206 : f32
    %121 = vector.broadcast %cst_54 : f32 to vector<32x512xf32>
    %122 = arith.addf %121, %120 : vector<32x512xf32>
    %123 = arith.mulf %118, %122 : vector<32x512xf32>
    %cst_55 = arith.constant 1.42141378 : f32
    %124 = vector.broadcast %cst_55 : f32 to vector<32x512xf32>
    %125 = arith.addf %124, %123 : vector<32x512xf32>
    %126 = arith.mulf %118, %125 : vector<32x512xf32>
    %cst_56 = arith.constant -0.284496725 : f32
    %127 = vector.broadcast %cst_56 : f32 to vector<32x512xf32>
    %128 = arith.addf %127, %126 : vector<32x512xf32>
    %129 = arith.mulf %118, %128 : vector<32x512xf32>
    %cst_57 = arith.constant 0.254829586 : f32
    %130 = vector.broadcast %cst_57 : f32 to vector<32x512xf32>
    %131 = arith.addf %130, %129 : vector<32x512xf32>
    %132 = arith.mulf %118, %131 : vector<32x512xf32>
    %133 = arith.mulf %113, %113 : vector<32x512xf32>
    %cst_58 = arith.constant 0.000000e+00 : f32
    %134 = vector.broadcast %cst_58 : f32 to vector<32x512xf32>
    %135 = arith.subf %134, %133 : vector<32x512xf32>
    %136 = math.exp %135 : vector<32x512xf32>
    %137 = arith.mulf %132, %136 : vector<32x512xf32>
    %cst_59 = arith.constant 1.000000e+00 : f32
    %138 = vector.broadcast %cst_59 : f32 to vector<32x512xf32>
    %139 = arith.subf %138, %137 : vector<32x512xf32>
    %cst_60 = arith.constant 0.000000e+00 : f32
    %140 = vector.broadcast %cst_60 : f32 to vector<32x512xf32>
    %141 = arith.cmpf oge, %112, %140 : vector<32x512xf32>
    %cst_61 = arith.constant 0.000000e+00 : f32
    %142 = vector.broadcast %cst_61 : f32 to vector<32x512xf32>
    %143 = arith.subf %142, %139 : vector<32x512xf32>
    %144 = arith.select %141, %139, %143 : vector<32x512xi1>, vector<32x512xf32>
    %cst_62 = arith.constant 1.000000e+00 : f32
    %145 = vector.broadcast %cst_62 : f32 to vector<32x512xf32>
    %146 = arith.addf %145, %144 : vector<32x512xf32>
    %147 = arith.mulf %110, %146 : vector<32x512xf32>
    %148 = arith.truncf %147 : vector<32x512xf32> to vector<32x512xbf16>
    %c0_63 = arith.constant 0 : index
    %c0_64 = arith.constant 0 : index
    %c0_65 = arith.constant 0 : index
    %149 = vector.load %arg15[%c0_63, %c0_64, %c0_65] : memref<1x512x128xbf16, #tpu.memory_space<vmem>>, vector<1x512x128xbf16>
    %150 = vector.shape_cast %149 : vector<1x512x128xbf16> to vector<512x128xbf16>
    %cst_66 = arith.constant dense<0.000000e+00> : vector<32x128xf32>
    %151 = tpu.matmul %148, %150, %cst_66 {dimension_numbers = #tpu.dot_dimension_numbers<[1], [0], [0], [1], [0, 0, 1, 1], [], []>} : vector<32x512xbf16>, vector<512x128xbf16>, vector<32x128xf32> -> vector<32x128xf32>
    %c0_67 = arith.constant 0 : index
    %c0_68 = arith.constant 0 : index
    %c0_69 = arith.constant 0 : index
    %152 = vector.load %arg16[%c0_67, %c0_68, %c0_69] : memref<1x1x128xf32, #tpu.memory_space<vmem>>, vector<1x1x128xf32>
    %153 = vector.shape_cast %152 : vector<1x1x128xf32> to vector<1x128xf32>
    %154 = vector.broadcast %153 : vector<1x128xf32> to vector<32x128xf32>
    %155 = arith.addf %151, %154 : vector<32x128xf32>
    %156 = arith.addf %74, %155 : vector<32x128xf32>
    %c0_70 = arith.constant 0 : index
    %c0_71 = arith.constant 0 : index
    %157 = vector.load %arg18[%c0_70, %c0_71] : memref<32x128xf32, #tpu.memory_space<vmem>>, vector<32x128xf32>
    tpu.vector_store %arg18[%c0_70, %c0_71], %156 {strides = array<i32>} : memref<32x128xf32, #tpu.memory_space<vmem>>, vector<32x128xf32>,
    %158 = arith.index_cast %arg1 : i32 to index
    %159 = memref.load %arg3[%158] : memref<4xi32, #tpu.memory_space<smem>>
    %c1_i32 = arith.constant 1 : i32
    %160 = arith.cmpi eq, %159, %c1_i32 : i32
    %161 = arith.extui %160 : i1 to i32
    %c0_i32_72 = arith.constant 0 : i32
    %162 = arith.cmpi ne, %161, %c0_i32_72 : i32
    scf.if %162 {
      %c0_73 = arith.constant 0 : index
      %c0_74 = arith.constant 0 : index
      %c0_75 = arith.constant 0 : index
      %c0_76 = arith.constant 0 : index
      %163 = vector.load %arg17[%c0_73, %c0_74, %c0_75, %c0_76] : memref<1x1x32x128xf32, #tpu.memory_space<vmem>>, vector<1x1x32x128xf32>
      %164 = vector.shape_cast %163 : vector<1x1x32x128xf32> to vector<32x128xf32>
      %165 = vector.shape_cast %156 : vector<32x128xf32> to vector<1x1x32x128xf32>
      tpu.vector_store %arg17[%c0_73, %c0_74, %c0_75, %c0_76], %165 {strides = array<i32>} : memref<1x1x32x128xf32, #tpu.memory_space<vmem>>, vector<1x1x32x128xf32>,
    } else {
    }
    return
  }
  func.func @transform_0(%arg0: i32, %arg1: i32, %arg2: memref<4xi32, #tpu.memory_space<smem>>, %arg3: memref<4xi32, #tpu.memory_space<smem>>) -> (i32, i32, i32) {
    %c0_i32 = arith.constant 0 : i32
    %c0_i32_0 = arith.constant 0 : i32
    %c0_i32_1 = arith.constant 0 : i32
    return %arg0, %c0_i32, %c0_i32_0 : i32, i32, i32
  }
  func.func @transform_1(%arg0: i32, %arg1: i32, %arg2: memref<4xi32, #tpu.memory_space<smem>>, %arg3: memref<4xi32, #tpu.memory_space<smem>>) -> (i32, i32, i32) {
    %c0_i32 = arith.constant 0 : i32
    %c0_i32_0 = arith.constant 0 : i32
    %c0_i32_1 = arith.constant 0 : i32
    return %arg0, %c0_i32, %c0_i32_0 : i32, i32, i32
  }
  func.func @transform_2(%arg0: i32, %arg1: i32, %arg2: memref<4xi32, #tpu.memory_space<smem>>, %arg3: memref<4xi32, #tpu.memory_space<smem>>) -> (i32, i32, i32) {
    %c0_i32 = arith.constant 0 : i32
    %c0_i32_0 = arith.constant 0 : i32
    %c0_i32_1 = arith.constant 0 : i32
    return %arg1, %c0_i32, %c0_i32_0 : i32, i32, i32
  }
  func.func @transform_3(%arg0: i32, %arg1: i32, %arg2: memref<4xi32, #tpu.memory_space<smem>>, %arg3: memref<4xi32, #tpu.memory_space<smem>>) -> (i32, i32, i32) {
    %c0_i32 = arith.constant 0 : i32
    %c0_i32_0 = arith.constant 0 : i32
    %c0_i32_1 = arith.constant 0 : i32
    return %arg1, %c0_i32, %c0_i32_0 : i32, i32, i32
  }
  func.func @transform_4(%arg0: i32, %arg1: i32, %arg2: memref<4xi32, #tpu.memory_space<smem>>, %arg3: memref<4xi32, #tpu.memory_space<smem>>) -> (i32, i32, i32) {
    %c0_i32 = arith.constant 0 : i32
    %c0_i32_0 = arith.constant 0 : i32
    %c0_i32_1 = arith.constant 0 : i32
    return %arg1, %c0_i32, %c0_i32_0 : i32, i32, i32
  }
  func.func @transform_5(%arg0: i32, %arg1: i32, %arg2: memref<4xi32, #tpu.memory_space<smem>>, %arg3: memref<4xi32, #tpu.memory_space<smem>>) -> (i32, i32, i32) {
    %c0_i32 = arith.constant 0 : i32
    %c0_i32_0 = arith.constant 0 : i32
    %c0_i32_1 = arith.constant 0 : i32
    return %arg1, %c0_i32, %c0_i32_0 : i32, i32, i32
  }
  func.func @transform_6(%arg0: i32, %arg1: i32, %arg2: memref<4xi32, #tpu.memory_space<smem>>, %arg3: memref<4xi32, #tpu.memory_space<smem>>) -> (i32, i32, i32) {
    %c0_i32 = arith.constant 0 : i32
    %c0_i32_0 = arith.constant 0 : i32
    %c0_i32_1 = arith.constant 0 : i32
    return %arg1, %c0_i32, %c0_i32_0 : i32, i32, i32
  }
  func.func @transform_7(%arg0: i32, %arg1: i32, %arg2: memref<4xi32, #tpu.memory_space<smem>>, %arg3: memref<4xi32, #tpu.memory_space<smem>>) -> (i32, i32, i32) {
    %c0_i32 = arith.constant 0 : i32
    %c0_i32_0 = arith.constant 0 : i32
    %c0_i32_1 = arith.constant 0 : i32
    return %arg1, %c0_i32, %c0_i32_0 : i32, i32, i32
  }
  func.func @transform_8(%arg0: i32, %arg1: i32, %arg2: memref<4xi32, #tpu.memory_space<smem>>, %arg3: memref<4xi32, #tpu.memory_space<smem>>) -> (i32, i32, i32) {
    %c0_i32 = arith.constant 0 : i32
    %c0_i32_0 = arith.constant 0 : i32
    %c0_i32_1 = arith.constant 0 : i32
    return %arg1, %c0_i32, %c0_i32_0 : i32, i32, i32
  }
  func.func @transform_9(%arg0: i32, %arg1: i32, %arg2: memref<4xi32, #tpu.memory_space<smem>>, %arg3: memref<4xi32, #tpu.memory_space<smem>>) -> (i32, i32, i32) {
    %c0_i32 = arith.constant 0 : i32
    %c0_i32_0 = arith.constant 0 : i32
    %c0_i32_1 = arith.constant 0 : i32
    return %arg1, %c0_i32, %c0_i32_0 : i32, i32, i32
  }
  func.func @transform_10(%arg0: i32, %arg1: i32, %arg2: memref<4xi32, #tpu.memory_space<smem>>, %arg3: memref<4xi32, #tpu.memory_space<smem>>) -> (i32, i32, i32) {
    %c0_i32 = arith.constant 0 : i32
    %c0_i32_0 = arith.constant 0 : i32
    %c0_i32_1 = arith.constant 0 : i32
    return %arg1, %c0_i32, %c0_i32_0 : i32, i32, i32
  }
  func.func @transform_11(%arg0: i32, %arg1: i32, %arg2: memref<4xi32, #tpu.memory_space<smem>>, %arg3: memref<4xi32, #tpu.memory_space<smem>>) -> (i32, i32, i32) {
    %c0_i32 = arith.constant 0 : i32
    %c0_i32_0 = arith.constant 0 : i32
    %c0_i32_1 = arith.constant 0 : i32
    return %arg1, %c0_i32, %c0_i32_0 : i32, i32, i32
  }
  func.func @transform_12(%arg0: i32, %arg1: i32, %arg2: memref<4xi32, #tpu.memory_space<smem>>, %arg3: memref<4xi32, #tpu.memory_space<smem>>) -> (i32, i32, i32) {
    %c0_i32 = arith.constant 0 : i32
    %c0_i32_0 = arith.constant 0 : i32
    %c0_i32_1 = arith.constant 0 : i32
    return %arg1, %c0_i32, %c0_i32_0 : i32, i32, i32
  }
  func.func @transform_13(%arg0: i32, %arg1: i32, %arg2: memref<4xi32, #tpu.memory_space<smem>>, %arg3: memref<4xi32, #tpu.memory_space<smem>>) -> (i32, i32, i32, i32) {
    %0 = arith.index_cast %arg1 : i32 to index
    %1 = memref.load %arg2[%0] : memref<4xi32, #tpu.memory_space<smem>>
    %c0_i32 = arith.constant 0 : i32
    %c0_i32_0 = arith.constant 0 : i32
    %c0_i32_1 = arith.constant 0 : i32
    return %1, %arg0, %c0_i32, %c0_i32_0 : i32, i32, i32, i32
  }
}

</mosaic_0001>

<bundles_post_ra>
// kernel: transformer_encoder_forward.1
= control target key start
LH: loop header
LB: loop body
LE: loop exit
PB: predicated region body
PF: predicated region fallthrough
CT: control target
= control target key end

     0   :  { %s6953_s24 = smov [#allocation4]   ;;  %s6954_s25 = smov [#allocation5]   ;;  %s9430_s0 = inlined_call_operand.vmem [shape: s32[4], index: 0, kind: input, shape index: {}]   ;;  %s9431_s2 = inlined_call_operand.hbm [shape: f32[2,32,128], index: 2, kind: input, shape index: {}]   ;;  %s9432_s3 = inlined_call_operand.hbm [shape: f32[2,32,128], index: 3, kind: input, shape index: {}]   ;;  %s9433_s4 = inlined_call_operand.vmem [shape: f32[4,1,128], index: 4, kind: input, shape index: {}]   ;;  %s9434_s5 = inlined_call_operand.hbm [shape: f32[4,1,128], index: 5, kind: input, shape index: {}]   ;;  %s9435_s6 = inlined_call_operand.hbm [shape: bf16[4,128,384], index: 6, kind: input, shape index: {}]   ;;  %s9436_s7 = inlined_call_operand.hbm [shape: bf16[4,128,128], index: 7, kind: input, shape index: {}]   ;;  %s9437_s8 = inlined_call_operand.hbm [shape: f32[4,1,128], index: 8, kind: input, shape index: {}]   ;;  %s9438_s9 = inlined_call_operand.hbm [shape: f32[4,1,128], index: 9, kind: input, shape index: {}]   ;;  %s9439_s10 = inlined_call_operand.hbm [shape: f32[4,1,128], index: 10, kind: input, shape index: {}]   ;;  %s9440_s11 = inlined_call_operand.hbm [shape: bf16[4,128,512], index: 11, kind: input, shape index: {}]   ;;  %s9441_s12 = inlined_call_operand.hbm [shape: f32[4,1,512], index: 12, kind: input, shape index: {}]   ;;  %s9442_s13 = inlined_call_operand.hbm [shape: bf16[4,512,128], index: 13, kind: input, shape index: {}]   ;;  %s9443_s14 = inlined_call_operand.hbm [shape: f32[4,1,128], index: 14, kind: input, shape index: {}]   ;;  %s9444_s15 = inlined_call_operand.hbm [shape: f32[1,2,32,128], index: 15, kind: output, shape index: {}]   ;;  %s9445_s1 = inlined_call_operand.vmem [shape: s32[4], index: 1, kind: input, shape index: {}]  }
   0x1   :  { %9483 = sst [smem:[#allocation63_spill]] %s9431_s2  ;;  %s21_s20 = sshll.u32 %s9430_s0, 4  ;;  %s22_s20 = int_to_ptr.vmem [resolvable:$true] %s21_s20 }
   0x2   :  { %9484 = sst [smem:[#allocation64_spill]] %s9432_s3  ;;  %s26_s23 = sshll.u32 %s9445_s1, 4  ;;  %s27_s23 = int_to_ptr.vmem [resolvable:$true] %s26_s23 }
   0x3   :  { %9485 = sst [smem:[#allocation65_spill]] %s9433_s4 }
   0x4   :  { %9486 = sst [smem:[#allocation66_spill]] %s9434_s5 }
   0x5   :  { %9487 = sst [smem:[#allocation67_spill]] %s9435_s6 }
   0x6   :  { %9488 = sst [smem:[#allocation68_spill]] %s9438_s9 }
   0x7   :  { %9489 = sst [smem:[#allocation69_spill]] %s9440_s11 }
   0x8   :  { %9490 = sst [smem:[#allocation70_spill]] %s9442_s13 }
   0x9   :  { %9491 = sst [smem:[#allocation71_spill]] %s9443_s14 }
   0xa   :  { %9492 = sst [smem:[#allocation72_spill]] %s9444_s15 }
   0xb   :  { %24 = dma.vmem_to_smem %s22_s20, 16, %s6953_s24, [#allocation3] }
   0xc   :  { %29 = dma.vmem_to_smem %s27_s23, 16, %s6954_s25, [#allocation3] }
   0xd   :  { %6859 = dma.done.wait [#allocation3], 32 }
   0xe   :  { %6860 = vsyncadd [#allocation3], 4294967264 }
   0xf   :  { %32 = sfence }
  0x10   :  { %33 = vsyncpa [#allocation7], 0 }
  0x11   :  { %35 = vsyncpa [#allocation7 + $0x1], 0 }
  0x12   :  { %36 = vsyncpa [#allocation10], 0 }
  0x13   :  { %38 = vsyncpa [#allocation10 + $0x1], 0 }
  0x14   :  { %39 = vsyncpa [#allocation13], 0 }
  0x15   :  { %41 = vsyncpa [#allocation13 + $0x1], 0 }
  0x16   :  { %42 = vsyncpa [#allocation16], 0 }
  0x17   :  { %44 = vsyncpa [#allocation16 + $0x1], 0 }
  0x18   :  { %45 = vsyncpa [#allocation19], 0 }
  0x19   :  { %47 = vsyncpa [#allocation19 + $0x1], 0 }
  0x1a   :  { %48 = vsyncpa [#allocation22], 0 }
  0x1b   :  { %50 = vsyncpa [#allocation22 + $0x1], 0 }
  0x1c   :  { %51 = vsyncpa [#allocation25], 0 }
  0x1d   :  { %53 = vsyncpa [#allocation25 + $0x1], 0 }
  0x1e   :  { %54 = vsyncpa [#allocation8], 0 }
  0x1f   :  { %56 = vsyncpa [#allocation8 + $0x1], 0  ;;  %s7057_s0 = smov 0   ;;  %s7059_s1 = smov 0  }
  0x20   :  { %s7061_s26 = smov 0   ;;  %s7063_s27 = smov 0  }
  0x21   :  { %s7065_s28 = smov 0   ;;  %s7067_s29 = smov 0  }
  0x22   :  { %s7069_s30 = smov 0   ;;  %s7071_s16 = smov 0  }
  0x23   :  { %s7073_s17 = smov 0   ;;  %s7075_s18 = smov 0  }
  0x24   :  { %s7077_s19 = smov 0   ;;  %s7079_s20 = smov 0  }
  0x25   :  { %s7081_s21 = smov 0   ;;  %s7083_s22 = smov 0  }
  0x26 LB: > { %9493 = sst [smem:[#allocation38_spill]] %s6899_s0  ;;  %s7126_s23 = sadd.s32 4294967295, %s6951_s22   ;;  %s6951_s22 = sphi %s7083_s22, %s62_s22   ;;  %s6947_s21 = sphi %s7081_s21, %s9600_s21   ;;  %s6943_s20 = sphi %s7079_s20, %s9599_s20   ;;  %s6939_s19 = sphi %s7077_s19, %s9598_s19   ;;  %s6935_s18 = sphi %s7075_s18, %s9597_s18   ;;  %s6931_s17 = sphi %s7073_s17, %s9596_s17   ;;  %s6927_s16 = sphi %s7071_s16, %s9595_s16   ;;  %s6923_s30 = sphi %s7069_s30, %s9589_s30   ;;  %s6919_s29 = sphi %s7067_s29, %s9588_s29   ;;  %s6915_s28 = sphi %s7065_s28, %s9587_s28   ;;  %s6911_s27 = sphi %s7063_s27, %s9586_s27   ;;  %s6907_s26 = sphi %s7061_s26, %s9594_s26   ;;  %s6903_s1 = sphi %s7059_s1, %s9584_s1   ;;  %s6899_s0 = sphi %s7057_s0, %s9583_s0  }
  0x27   : > { %9494 = sst [smem:[#allocation39_spill]] %s6903_s1  ;;  %s71_s24 = sadd.s32 1, %s6943_s20 }
  0x28   : > { %9495 = sst [smem:[#allocation40_spill]] %s6907_s26  ;;  %s74_s25 = sadd.s32 1, %s6947_s21 }
  0x29   : > { %9496 = sst [smem:[#allocation41_spill]] %s6915_s28  ;;  %p72_p0 = scmp.ge.s32.totalorder %s71_s24, 4 }
  0x2a   : > { %9497 = sst [smem:[#allocation42_spill]] %s6919_s29  ;;  %s81_s15 = sadd.s32 1, %s6931_s17 }
  0x2b   : > { %9498 = sst [smem:[#allocation43_spill]] %s6927_s16  ;;  %p88_p1 = scmp.ne.s32.totalorder %s6931_s17, %s6927_s16 }
  0x2c   : > { %9499 = sst [smem:[#allocation44_spill]] %s6935_s18  ;;  %p89_p2 = scmp.eq.s32.totalorder %s6951_s22, 0 }
  0x2d   : > { %9500 = sst [smem:[#allocation45_spill]] %s6939_s19  ;;  %s9602_s24 = smov (%p72_p0, %s71_s24), 0 }
  0x2e   : > { %9501 = sst [smem:[#allocation46_spill]] %s6951_s22  ;;  %s9604_s25 = smov (!%p72_p0, %s74_s25), %s6947_s21 }
  0x2f   : > { %9502 = sst [smem:[#allocation47_spill]] %s7126_s23  ;;  %p7139_p3 = por %p89_p2, %p88_p1 }
  0x30   : > { %9503 = sst [smem:[#allocation48_spill]] %s9602_s24  ;;  %p94_p4 = scmp.ne.s32.totalorder %s6927_s16, %s6923_s30 }
  0x31   : > { %p76_p5 = scmp.ge.s32.totalorder %s9604_s25, 2  ;;  %p95_p6 = scmp.eq.s32.totalorder %s7126_s23, 0 }
  0x32   : > { %s156_s4 = ssub.s32 %s6943_s20, %s9602_s24  ;;  %s159_s18 = sadd.s32 1, %s6919_s29 }
  0x33   : > { %s9606_s25 = smov (%p76_p5, %s9604_s25), 0  ;;  %p7152_p7 = por %p95_p6, %p94_p4 }
  0x34   : > { %9505 = sst [smem:[#allocation49_spill]] %s9606_s25  ;;  %p157_p8 = scmp.eq.s32.totalorder %s156_s4, 0 }
  0x35   : > { %s9506_s14 = scalar_select %p7152_p7, 1, 0 }
  0x36   : > { %s78_s30 = ssub.s32 %s6947_s21, %s9606_s25  ;;  %p166_p9 = scmp.ne.s32.totalorder %s6919_s29, %s6915_s28 }
  0x37   : > { %9507 = sst [smem:[#allocation50_spill]] %s9506_s14  ;;  %p79_p10 = scmp.eq.s32.totalorder %s78_s30, 0 }
  0x38   : > { %p172_p11 = scmp.ne.s32.totalorder %s6915_s28, %s6911_s27  ;;  %p7170_p12 = por %p166_p9, %p89_p2 }
  0x39   : > { %s7163_s16 = scalar_select %p157_p8, %s6919_s29, %s159_s18  }
  0x3a   : > { %s7166_s13 = scalar_select %p79_p10, %s6931_s17, %s81_s15  }
  0x3b   : > { %9508 = sst [smem:[#allocation51_spill]] %s7163_s16  ;;  %p7176_p13 = por %p172_p11, %p95_p6 }
  0x3c   : > { %9509 = sst [smem:[#allocation52_spill]] %s7166_s13  ;;  %s5439_s4 = sadd.s32 4294967294, %s6951_s22  }
  0x3d   : > { %s9511_s9 = scalar_select %p7176_p13, 1, 0 }
  0x3e   : > { %s416_s25 = sld [smem:[#allocation4 + %s6943_s20]]  ;;  %p433_p0 = scmp.ne.s32.totalorder %s6907_s26, %s6903_s1 }
  0x3f   : > { %9512 = sst [smem:[#allocation53_spill]] %s9511_s9  ;;  %p434_p1 = scmp.eq.s32.totalorder %s7126_s23, 7 }
  0x40   : > { %s417_s14 = sld [smem:[#allocation4 + %s9602_s24]]  ;;  %p439_p4 = scmp.ne.s32.totalorder %s6903_s1, %s6899_s0 }
  0x41   : > { %p440_p5 = scmp.eq.s32.totalorder %s5439_s4, 7  ;;  %p7188_p8 = por %p434_p1, %p433_p0 }
  0x42   : > { %s423_s16 = sadd.s32 1, %s6907_s26  ;;  %p5441_p9 = scmp.ge.s32.totalorder %s6951_s22, 8 }
  0x43   : > { %s9513_s15 = scalar_select %p7188_p8, 1, 0 }
  0x44   : > { %p7192_p2 = por %p440_p5, %p439_p4  ;;  %s9457_s4 = sand.u32 (!%p5441_p9), 1, %s6931_s17  }
  0x45   : > { %9514 = sst [smem:[#allocation54_spill]] %s9513_s15  ;;  %s9461_s24 = sshll.u32 (!%p5441_p9), %s6947_s21, 5 }
  0x46   : > { %s9515_s27 = scalar_select %p7192_p2, 1, 0 }
  0x47   : > { %s418_s18 = ssub.s32 %s416_s25, %s417_s14  ;;  %s7205_s14 = sshll.u32 (!%p5441_p9), %s9457_s4, 5 }
  0x48   : > { %9516 = sst [smem:[#allocation55_spill]] %s9515_s27  ;;  %s420_s13 = sor.u32 %s418_s18, %s78_s30 }
  0x49   : > { %p421_p6 = scmp.eq.s32.totalorder %s420_s13, 0  ;;  %456 = sbr.rel (%p5441_p9) target bundleno = 132 (0x84), region = 16 }
  0x4a   : > { %s7208_s13 = sand.u32 (!%p5441_p9), 1, %s6951_s22   ;;  %s9518_s3 = sld [smem:[#allocation64_spill]] (!%p5441_p9) }
  0x4b   : > { %s7198_s9 = scalar_select %p421_p6, %s6907_s26, %s423_s16  }
  0x4c   : > { %s486_s18 = scalar_lea.vmem (!%p5441_p9), [#allocation9], %s7205_s14  ;;  %s7217_s27 = sand.u32 (!%p5441_p9), 1, %s6919_s29  }
  0x4d   : > { %9517 = sst [smem:[#allocation56_spill]] %s7198_s9  ;;  %s494_s9 = sshll.u32 (!%p5441_p9), %s486_s18, 4  ;;  %s495_s9 = int_to_ptr.vmem [resolvable:$true] %s494_s9 }
  0x4e   : > { %s9470_s4 = scalar_lea.sflag [#allocation10], %s7208_s13  ;;  %s6955_s0 = smov 128  }
  0x4f   : > { %s6956_s15 = smov 8   ;;  %s5977_s16 = smul.u32 192, %s7217_s27 }
  0x50   : > { %s491_s30 = scalar_lea.hbm %s9518_s3, %s9461_s24  ;;  %s5978_s25 = smul.u32 192, %s6943_s20 }
  0x51   : > { %s492_s26 = sshll.u32 %s491_s30, 4  ;;  %s9519_s6 = sld [smem:[#allocation67_spill]]  ;;  %s493_s26 = int_to_ptr.hbm [resolvable:$true] %s492_s26 }
  0x52   : > { %5981 = dma.hbm_to_vmem [thread:$0]  (%p7139_p3), %s493_s26, 512, %s495_s9, %s9470_s4, %s6955_s0, %s6955_s0, %s6956_s15  }
  0x53   : > { %s531_s3 = scalar_lea.vmem [#allocation12], %s5977_s16  ;;  %s528_s28 = scalar_lea.sflag [#allocation13], %s7208_s13 }
  0x54   : > { %s539_s29 = sshll.u32 %s531_s3, 4  ;;  %s6957_s23 = smov 192   ;;  %s540_s29 = int_to_ptr.vmem [resolvable:$true] %s539_s29 }
  0x55   : > { %s6958_s22 = smov 12   ;;  %s577_s16 = scalar_lea.hbm %s9437_s8, %s6943_s20 }
  0x56   : > { %s579_s3 = sshll.u32 %s577_s16, 4  ;;  %s572_s30 = scalar_lea.sflag [#allocation16], %s7208_s13  ;;  %s580_s3 = int_to_ptr.hbm [resolvable:$true] %s579_s3 }
  0x57   : > { %s536_s24 = scalar_lea.hbm %s9519_s6, %s5978_s25  ;;  %s9471_s9 = scalar_lea.sflag [#allocation19], %s7208_s13 }
  0x58   : > { %s537_s1 = sshll.u32 %s536_s24, 4  ;;  %s574_s24 = scalar_lea.vmem [#allocation15], %s7217_s27  ;;  %s538_s1 = int_to_ptr.hbm [resolvable:$true] %s537_s1 }
  0x59   : > { %5983 = dma.hbm_to_vmem [thread:$0]  (%p7170_p12), %s538_s1, 3072, %s540_s29, %s528_s28, %s6957_s23, %s6957_s23, %s6958_s22  }
  0x5a   : > { %s581_s25 = sshll.u32 %s574_s24, 4  ;;  %s611_s1 = scalar_lea.hbm %s9439_s10, %s6943_s20  ;;  %s582_s25 = int_to_ptr.vmem [resolvable:$true] %s581_s25 }
  0x5b   : > { %5985 = dma.hbm_to_vmem [thread:$0]  (%p7170_p12), %s580_s3, 16, %s582_s25, %s572_s30  }
  0x5c   : > { %s608_s29 = scalar_lea.vmem [#allocation18], %s7217_s27  ;;  %s613_s23 = sshll.u32 %s611_s1, 4  ;;  %s614_s23 = int_to_ptr.hbm [resolvable:$true] %s613_s23 }
  0x5d   : > { %s615_s22 = sshll.u32 %s608_s29, 4  ;;  %s5455_s26 = sshll.u32 %s7217_s27, 2  ;;  %s616_s22 = int_to_ptr.vmem [resolvable:$true] %s615_s22 }
  0x5e   : > { %5987 = dma.hbm_to_vmem [thread:$0]  (%p7170_p12), %s614_s23, 16, %s616_s22, %s9471_s9  }
  0x5f   : > { %s5456_s16 = sshll.u32 %s6943_s20, 2  ;;  %s648_s18 = scalar_lea.vmem [#allocation21], %s5455_s26 }
  0x60   : > { %s652_s24 = scalar_lea.hbm %s9441_s12, %s5456_s16  ;;  %s656_s1 = sshll.u32 %s648_s18, 4  ;;  %s657_s1 = int_to_ptr.vmem [resolvable:$true] %s656_s1 }
  0x61   : > { %s654_s25 = sshll.u32 %s652_s24, 4  ;;  %s9472_s29 = scalar_lea.sflag [#allocation22], %s7208_s13  ;;  %s655_s25 = int_to_ptr.hbm [resolvable:$true] %s654_s25 }
  0x62   : > { %5989 = dma.hbm_to_vmem [thread:$0]  (%p7170_p12), %s655_s25, 64, %s657_s1, %s9472_s29  }
  0x63   : > { %s9520_s22 = sshll.u32 %s6947_s21, 5  ;;  %s9521_s2 = sld [smem:[#allocation63_spill]] }
  0x64   : > { %s464_s16 = scalar_lea.vmem [#allocation6], %s7205_s14  ;;  %s9522_s26 = sand.u32 1, %s6931_s17  }
  0x65   : > { %s472_s4 = sshll.u32 %s464_s16, 4  ;;  %s461_s18 = scalar_lea.sflag [#allocation7], %s9522_s26  ;;  %s473_s4 = int_to_ptr.vmem [resolvable:$true] %s472_s4 }
  0x66   : > { %s9523_s5 = sld [smem:[#allocation66_spill]]  ;;  %s513_s23 = scalar_lea.vmem [#allocation11], %s7217_s27 }
  0x67   : > { %s9524_s19 = scalar_lea.sflag [#allocation10], %s7208_s13  ;;  %s5878_s16 = sshll.u32 %s6943_s20, 6 }
  0x68   : > { %s6959_s25 = smov 64   ;;  %s6960_s1 = smov 4  }
  0x69   : > { %s469_s3 = scalar_lea.hbm %s9521_s2, %s9520_s22  ;;  %s520_s22 = sshll.u32 %s513_s23, 4  ;;  %s521_s22 = int_to_ptr.vmem [resolvable:$true] %s520_s22 }
  0x6a   : > { %s470_s24 = sshll.u32 %s469_s3, 4  ;;  %s5449_s3 = sshll.u32 %s7217_s27, 6  ;;  %s471_s24 = int_to_ptr.hbm [resolvable:$true] %s470_s24 }
  0x6b   : > { %5980 = dma.hbm_to_vmem [thread:$0]  (%p7139_p3), %s471_s24, 512, %s473_s4, %s461_s18, %s6955_s0, %s6955_s0, %s6956_s15  }
  0x6c   : > { %s516_s9 = scalar_lea.hbm %s9523_s5, %s6943_s20  ;;  %s558_s15 = scalar_lea.hbm %s9436_s7, %s5878_s16 }
  0x6d   : > { %s518_s14 = sshll.u32 %s516_s9, 4  ;;  %s553_s4 = scalar_lea.vmem [#allocation14], %s5449_s3  ;;  %s519_s14 = int_to_ptr.hbm [resolvable:$true] %s518_s14 }
  0x6e   : > { %5982 = dma.hbm_to_vmem [thread:$0]  (%p7170_p12), %s519_s14, 16, %s521_s22, %s9524_s19  }
  0x6f   : > { %s561_s24 = sshll.u32 %s553_s4, 4  ;;  %s559_s18 = sshll.u32 %s558_s15, 4  ;;  %s562_s24 = int_to_ptr.vmem [resolvable:$true] %s561_s24  ;;  %s560_s18 = int_to_ptr.hbm [resolvable:$true] %s559_s18 }
  0x70   : > { %5984 = dma.hbm_to_vmem [thread:$0]  (%p7170_p12), %s560_s18, 1024, %s562_s24, %s528_s28, %s6959_s25, %s6959_s25, %s6960_s1  }
  0x71   : > { %s9525_s22 = sld [smem:[#allocation68_spill]]  ;;  %s591_s19 = scalar_lea.vmem [#allocation17], %s7217_s27 }
  0x72   : > { %s598_s3 = sshll.u32 %s591_s19, 4  ;;  %s5452_s26 = sshll.u32 %s7217_s27, 8  ;;  %s599_s3 = int_to_ptr.vmem [resolvable:$true] %s598_s3 }
  0x73   : > { %s5879_s0 = sshll.u32 %s6943_s20, 8  ;;  %s9526_s29 = sld [smem:[#allocation69_spill]] }
  0x74   : > { %s626_s24 = scalar_lea.vmem [#allocation20], %s5452_s26  ;;  %s6961_s23 = smov 256  }
  0x75   : > { %s634_s18 = sshll.u32 %s626_s24, 4  ;;  %s667_s15 = scalar_lea.vmem [#allocation23], %s5452_s26  ;;  %s635_s18 = int_to_ptr.vmem [resolvable:$true] %s634_s18 }
  0x76   : > { %s9530_s5 = sld [smem:[#allocation71_spill]]  ;;  %s686_s26 = scalar_lea.sflag [#allocation25], %s7217_s27 }
  0x77   : > { %s594_s14 = scalar_lea.hbm %s9525_s22, %s6943_s20  ;;  %s6962_s22 = smov 16  }
  0x78   : > { %s596_s16 = sshll.u32 %s594_s14, 4  ;;  %s9527_s14 = scalar_lea.sflag [#allocation19], %s7208_s13  ;;  %s597_s16 = int_to_ptr.hbm [resolvable:$true] %s596_s16 }
  0x79   : > { %5986 = dma.hbm_to_vmem [thread:$0]  (%p7170_p12), %s597_s16, 16, %s599_s3, %s572_s30  }
  0x7a   : > { %s631_s28 = scalar_lea.hbm %s9526_s29, %s5879_s0  ;;  %s9528_s3 = sld [smem:[#allocation70_spill]] }
  0x7b   : > { %s632_s9 = sshll.u32 %s631_s28, 4  ;;  %s675_s29 = sshll.u32 %s667_s15, 4  ;;  %s633_s9 = int_to_ptr.hbm [resolvable:$true] %s632_s9  ;;  %s676_s29 = int_to_ptr.vmem [resolvable:$true] %s675_s29 }
  0x7c   : > { %5988 = dma.hbm_to_vmem [thread:$0]  (%p7170_p12), %s633_s9, 4096, %s635_s18, %s9527_s14, %s6961_s23, %s6961_s23, %s6962_s22  }
  0x7d   : > { %s9529_s28 = scalar_lea.sflag [#allocation22], %s7208_s13  ;;  %s691_s6 = scalar_lea.hbm %s9530_s5, %s6943_s20 }
  0x7e   : > { %s693_s18 = sshll.u32 %s691_s6, 4  ;;  %s688_s9 = scalar_lea.vmem [#allocation24], %s7217_s27  ;;  %s694_s18 = int_to_ptr.hbm [resolvable:$true] %s693_s18 }
  0x7f   : > { %s695_s23 = sshll.u32 %s688_s9, 4  ;;  %s696_s23 = int_to_ptr.vmem [resolvable:$true] %s695_s23 }
  0x80   : > { %s672_s16 = scalar_lea.hbm %s9528_s3, %s5879_s0 }
  0x81   : > { %s673_s4 = sshll.u32 %s672_s16, 4  ;;  %s674_s4 = int_to_ptr.hbm [resolvable:$true] %s673_s4 }
  0x82   : > { %5990 = dma.hbm_to_vmem [thread:$0]  (%p7170_p12), %s674_s4, 4096, %s676_s29, %s9529_s28, %s6959_s25, %s6959_s25, %s6960_s1  }
  0x83   : > { %5991 = dma.hbm_to_vmem [thread:$0]  (%p7170_p12), %s694_s18, 16, %s696_s23, %s686_s26  }
  0x84 PF: > { %s9531_s0 = sld [smem:[#allocation46_spill]] }
  0x8a   : > { %p5460_p3 = scmp.ge.s32.totalorder %s9531_s0, 1  ;;  %p700_p10 = scmp.lt.s32.totalorder %s9531_s0, 9 }
  0x8c   : > { %p701_p11 = pnand %p5460_p3, %p700_p10 }
  0x8e   : > { %704 = sbr.rel (%p701_p11) target bundleno = 2218 (0x8aa), region = 72 }
  0x93   : > { %s9532_s13 = sld [smem:[#allocation43_spill]] }
  0x99   : > { %s706_s1 = sand.u32 1, %s9532_s13  }
  0x9a   : > { %s5461_s2 = sshll.u32 %s706_s1, 5  ;;  %s707_s5 = scalar_lea.sflag [#allocation7], %s706_s1 }
  0x9b   : > { %s7340_s6 = scalar_lea.vmem [#allocation6], %s5461_s2 }
  0x9c   : > { %6862 = dma.done.wait (%p7152_p7), %s707_s5, 512  }
  0x9d   : > { %6864 = vsyncadd (%p7152_p7), %s707_s5, 4294966784  ;;  %s9534_s11 = sld [smem:[#allocation47_spill]]  ;;  %s7350_s14 = scalar_lea.vmem [#allocation9], %s5461_s2 }
  0xa3   : > { %s7347_s27 = sand.u32 1, %s9534_s11  }
  0xa4   : > { %s717_s22 = scalar_lea.sflag [#allocation10], %s7347_s27 }
  0xa5   : > { %6866 = dma.done.wait (%p7152_p7), %s717_s22, 512  }
  0xa6   : > { %6868 = vsyncadd (%p7152_p7), %s717_s22, 4294966784  ;;  %s9535_s30 = sld [smem:[#allocation41_spill]] }
  0xac   : > { %s7357_s3 = sand.u32 1, %s9535_s30  }
  0xad   : > { %s729_s16 = scalar_lea.vmem [#allocation11], %s7357_s3 }
  0xae   : > { %6870 = dma.done.wait (%p7176_p13), %s717_s22, 16  }
  0xaf   : > { %6872 = vsyncadd (%p7176_p13), %s717_s22, 4294967280  ;;  %s5979_s15 = smul.u32 192, %s7357_s3  ;;  %s736_s29 = scalar_lea.sflag [#allocation13], %s7347_s27 }
  0xb1   : > { %s7366_s4 = scalar_lea.vmem [#allocation12], %s5979_s15 }
  0xb2   : > { %6874 = dma.done.wait (%p7176_p13), %s736_s29, 4096  }
  0xb3   : > { %6876 = vsyncadd (%p7176_p13), %s736_s29, 4294963200  ;;  %s5463_s28 = sshll.u32 %s7357_s3, 6  ;;  %s756_s18 = scalar_lea.sflag [#allocation16], %s7347_s27 }
  0xb4   : > { %s7373_s24 = scalar_lea.vmem [#allocation14], %s5463_s28  ;;  %s758_s9 = scalar_lea.vmem [#allocation15], %s7357_s3 }
  0xb5   : > { %6878 = dma.done.wait (%p7176_p13), %s756_s18, 32  }
  0xb6   : > { %6880 = vsyncadd (%p7176_p13), %s756_s18, 4294967264  ;;  %s767_s23 = scalar_lea.vmem [#allocation17], %s7357_s3  ;;  %s774_s26 = scalar_lea.sflag [#allocation19], %s7347_s27 }
  0xb7   : > { %s776_s0 = scalar_lea.vmem [#allocation18], %s7357_s3 }
  0xb8   : > { %6882 = dma.done.wait (%p7176_p13), %s774_s26, 4112  }
  0xb9   : > { %6884 = vsyncadd (%p7176_p13), %s774_s26, 4294963184  ;;  %s5464_s13 = sshll.u32 %s7357_s3, 8  ;;  %s5465_s25 = sshll.u32 %s7357_s3, 2 }
  0xba   : > { %s7390_s1 = scalar_lea.vmem [#allocation20], %s5464_s13  ;;  %s793_s2 = scalar_lea.sflag [#allocation22], %s7347_s27 }
  0xbb   : > { %s7393_s5 = scalar_lea.vmem [#allocation21], %s5465_s25 }
  0xbc   : > { %6886 = dma.done.wait (%p7176_p13), %s793_s2, 4160  }
  0xbd   : > { %6888 = vsyncadd (%p7176_p13), %s793_s2, 4294963136  ;;  %s7399_s11 = scalar_lea.vmem [#allocation23], %s5464_s13  ;;  %s813_s22 = scalar_lea.sflag [#allocation25], %s7357_s3 }
  0xbe   : > { %6890 = dma.done.wait (%p7176_p13), %s813_s22, 16  }
  0xbf   : > { %6892 = vsyncadd (%p7176_p13), %s813_s22, 4294967280  ;;  %s9537_s27 = sld [smem:[#allocation39_spill]] }
  0xc0   : > { %s9538_s15 = sld [smem:[#allocation44_spill]] }
  0xc1   : > { %s9539_s25 = sld [smem:[#allocation65_spill]] }
  0xc5   : > { %s909_s29 = sand.u32 1, %s9537_s27  }
  0xc6   : > { %p912_p7 = scmp.lt.s32.totalorder %s9538_s15, 3  ;;  %s5467_s28 = sshll.u32 %s909_s29, 5 }
  0xc7   : > { %s7418_s30 = scalar_lea.vmem [#allocation26], %s5467_s28  ;;  %p5468_p12 = scmp.ne.s32.totalorder %s9538_s15, 0 }
  0xc8   : > { %s7412_s18 = scalar_select %p912_p7, %s9538_s15, 3 }
  0xc9   : > { %920 = sbr.rel (%p5468_p12) target bundleno = 211 (0xd3), region = 124 }
  0xca   : > { %s914_s2 = scalar_lea.vmem %s9539_s25, %s7412_s18 }
  0xce   : > { %v921_v0 = vld [vmem:[%s7340_s6] sm:$0xff]  ;;  %v922_v1 = vld [vmem:[%s7340_s6 + $0x8] sm:$0xff]  ;;  %v923_v2 = vld [vmem:[%s7340_s6 + $0x10] sm:$0xff] }
  0xcf   : > { %925 = vst [vmem:[#allocation2 + $0x10] sm:$0xff] %v921_v0  ;;  %v924_v3 = vld [vmem:[%s7340_s6 + $0x18] sm:$0xff] }
  0xd0   : > { %926 = vst [vmem:[#allocation2] sm:$0xff] %v922_v1 }
  0xd1   : > { %927 = vst [vmem:[#allocation2 + $0x18] sm:$0xff] %v923_v2 }
  0xd2   : > { %928 = vst [vmem:[#allocation2 + $0x8] sm:$0xff] %v924_v3 }
  0xd3 PF: > { %v933_v5 = vld [vmem:[%s7350_s14] sm:$0xff]  ;;  %v935_v8 = vld [vmem:[%s7350_s14 + $0x10] sm:$0xff]  ;;  %v934_v11 = vld [vmem:[%s7350_s14 + $0x8] sm:$0xff]  ;;  %v6963_v20 = vmov 128.0   ;;  %s6966_s22 = smov 96   ;;  %vm1316_vm13 = vcmask 1047556  }
  0xd4   : > { %v936_v15 = vld [vmem:[%s7350_s14 + $0x18] sm:$0xff]  ;;  %6269 = vrcp.f32 %v6963_v20  ;;  %v5555_v22 = vld [vmem:[%s7366_s4 + $0xa8] sm:$0xf]  ;;  %v5902_v24 = vld [vmem:[%s7366_s4 + $0xac] sm:$0xf]  ;;  %vm2784_vm14 = vcmask 261120  }
  0xd5   : > { %v5903_v23 = vld [vmem:[%s7366_s4 + $0xb0] sm:$0xf0]  ;;  %v5557_v26 = vld [vmem:[%s7366_s4 + $0xb4] sm:$0xf0]  ;;  %v5563_v27 = vld [vmem:[%s7366_s4 + $0xb0] sm:$0xf] }
  0xd6   : > { %v929_v4 = vld [vmem:[#allocation2 + $0x10] sm:$0xff]  ;;  %v5556_v25 = vor.u32 %v5903_v23, %v5555_v22  ;;  %v5904_v28 = vld [vmem:[%s7366_s4 + $0xb8] sm:$0xf0]  ;;  %v5560_v29 = vor.u32 %v5902_v24, %v5557_v26  ;;  %v5545_v36 = vld [vmem:[%s7366_s4 + $0x9c] sm:$0xf0]  ;;  %vm3841_vm15 = vcmask 523264  }
  0xd7   : > { %v7426_v7 = vadd.f32 %v933_v5, %v929_v4  ;;  %v930_v10 = vld [vmem:[#allocation2] sm:$0xff]  ;;  %v5564_v30 = vor.u32 %v5904_v28, %v5563_v27  ;;  %v5543_v32 = vld [vmem:[%s7366_s4 + $0x90] sm:$0xf]  ;;  %v5899_v34 = vld [vmem:[%s7366_s4 + $0x94] sm:$0xf] }
  0xd8   : > { %v931_v6 = vld [vmem:[#allocation2 + $0x18] sm:$0xff]  ;;  %v7436_v13 = vadd.f32 %v934_v11, %v930_v10  ;;  %1214 = vmatpush.bf16.msra.mxu0 %v5556_v25  ;;  %1233 = vmatpush.bf16.msra.mxu1 %v5560_v29  ;;  %v5901_v38 = vld [vmem:[%s7366_s4 + $0xa0] sm:$0xf0]  ;;  %v5548_v39 = vor.u32 %v5899_v34, %v5545_v36  ;;  %v5533_v46 = vld [vmem:[%s7366_s4 + $0x84] sm:$0xf0] }
  0xd9   : > { %9540 = vst [vmem:[#allocation57_spill] sm:$0xff] %v7426_v7  ;;  %v7429_v9 = vadd.f32 %v935_v8, %v931_v6  ;;  %943 = vadd.xlane.f32.xlu0 %v7426_v7  ;;  %v962_v12 = vmul.f32 %v7426_v7, %v7426_v7  ;;  %v932_v14 = vld [vmem:[#allocation2 + $0x8] sm:$0xff]  ;;  %1252 = vmatpush.bf16.msra.mxu2 %v5564_v30  ;;  %v5900_v33 = vld [vmem:[%s7366_s4 + $0x98] sm:$0xf0]  ;;  %v5551_v37 = vld [vmem:[%s7366_s4 + $0x98] sm:$0xf] }
  0xda   : > { %9542 = vst [vmem:[#allocation59_spill] sm:$0xff] %v7436_v13  ;;  %v7439_v16 = vadd.f32 %v936_v15, %v932_v14  ;;  %v963_v17 = vmul.f32 %v7436_v13, %v7436_v13  ;;  %v7449_v21 = vpop.eup %6269  ;;  %v5544_v35 = vor.u32 %v5900_v33, %v5543_v32  ;;  %v5552_v40 = vor.u32 %v5901_v38, %v5551_v37  ;;  %v5531_v42 = vld [vmem:[%s7366_s4 + $0x78] sm:$0xf]  ;;  %v5897_v43 = vld [vmem:[%s7366_s4 + $0x80] sm:$0xf0] }
  0xdb   : > { %9541 = vst [vmem:[#allocation58_spill] sm:$0xff] %v7429_v9  ;;  %947 = vadd.xlane.f32.xlu2 %v7429_v9  ;;  %966 = vadd.xlane.f32.xlu1 %v962_v12  ;;  %v964_v18 = vmul.f32 %v7429_v9, %v7429_v9  ;;  %v952_v31 = vmul.f32 128.0, %v7449_v21  ;;  %v5896_v44 = vld [vmem:[%s7366_s4 + $0x7c] sm:$0xf]  ;;  %v5532_v45 = vor.u32 %v5897_v43, %v5531_v42  ;;  %v5539_v47 = vld [vmem:[%s7366_s4 + $0x80] sm:$0xf]  ;;  %vm956_vm0 = vweird.f32 %v7449_v21 }
  0xdc   : > { %9543 = vst [vmem:[#allocation60_spill] sm:$0xff] %v7439_v16  ;;  %v965_v19 = vmul.f32 %v7439_v16, %v7439_v16  ;;  %1215 = vmatpush.bf16.msra.mxu0 %v5544_v35  ;;  %1234 = vmatpush.bf16.msra.mxu1 %v5548_v39  ;;  %v5898_v48 = vld [vmem:[%s7366_s4 + $0x88] sm:$0xf0]  ;;  %v5536_v49 = vor.u32 %v5896_v44, %v5533_v46  ;;  %v5519_v51 = vld [vmem:[%s7366_s4 + $0x60] sm:$0xf] }
  0xdd   : > { %v953_v41 = vsub.f32 1.0, %v952_v31  ;;  %1253 = vmatpush.bf16.msra.mxu2 %v5552_v40  ;;  %v5540_v50 = vor.u32 %v5898_v48, %v5539_v47  ;;  %v5894_v52 = vld [vmem:[%s7366_s4 + $0x68] sm:$0xf0]  ;;  %v5893_v53 = vld [vmem:[%s7366_s4 + $0x64] sm:$0xf] }
  0xde   : > { %v5520_v55 = vor.u32 %v5894_v52, %v5519_v51  ;;  %v5521_v56 = vld [vmem:[%s7366_s4 + $0x6c] sm:$0xf0]  ;;  %v5527_v57 = vld [vmem:[%s7366_s4 + $0x68] sm:$0xf]  ;;  %v5895_v58 = vld [vmem:[%s7366_s4 + $0x70] sm:$0xf0] }
  0xdf   : > { %v954_v54 = vmul.f32 %v7449_v21, %v953_v41  ;;  %v5524_v59 = vor.u32 %v5893_v53, %v5521_v56  ;;  %v5528_v60 = vor.u32 %v5895_v58, %v5527_v57  ;;  %v5507_v61 = vld [vmem:[%s7366_s4 + $0x48] sm:$0xf]  ;;  %v5891_v62 = vld [vmem:[%s7366_s4 + $0x50] sm:$0xf0]  ;;  %v5890_v63 = vld [vmem:[%s7366_s4 + $0x4c] sm:$0xf] }
  0xe0   : > { %1216 = vmatpush.bf16.msra.mxu0 %v5532_v45  ;;  %1235 = vmatpush.bf16.msra.mxu1 %v5536_v49  ;;  %v5508_v1 = vor.u32 %v5891_v62, %v5507_v61  ;;  %v5509_v2 = vld [vmem:[%s7366_s4 + $0x54] sm:$0xf0]  ;;  %v5515_v3 = vld [vmem:[%s7366_s4 + $0x50] sm:$0xf]  ;;  %v5892_v4 = vld [vmem:[%s7366_s4 + $0x58] sm:$0xf0] }
  0xe1   : > { %945 = vadd.xlane.f32.xlu0 %v7436_v13  ;;  %1254 = vmatpush.bf16.msra.mxu2 %v5540_v50  ;;  %v955_v0 = vadd.f32 %v7449_v21, %v954_v54  ;;  %v5512_v5 = vor.u32 %v5890_v63, %v5509_v2  ;;  %v5516_v6 = vor.u32 %v5892_v4, %v5515_v3  ;;  %v5495_v8 = vld [vmem:[%s7366_s4 + $0x30] sm:$0xf]  ;;  %v5888_v10 = vld [vmem:[%s7366_s4 + $0x38] sm:$0xf0]  ;;  %v5887_v11 = vld [vmem:[%s7366_s4 + $0x34] sm:$0xf] }
  0xe2   : > { %v5496_v14 = vor.u32 %v5888_v10, %v5495_v8  ;;  %v5497_v15 = vld [vmem:[%s7366_s4 + $0x3c] sm:$0xf0]  ;;  %v5885_v25 = vld [vmem:[%s7366_s4 + $0x20] sm:$0xf0]  ;;  %v5884_v26 = vld [vmem:[%s7366_s4 + $0x1c] sm:$0xf] }
  0xe3   : > { %949 = vadd.xlane.f32.xlu2 %v7439_v16  ;;  %968 = vadd.xlane.f32.xlu1 %v963_v17  ;;  %v7489_v12 = vsel %vm956_vm0, %v7449_v21, %v955_v0  ;;  %v5503_v17 = vld [vmem:[%s7366_s4 + $0x38] sm:$0xf]  ;;  %v5485_v29 = vld [vmem:[%s7366_s4 + $0x24] sm:$0xf0]  ;;  %v5491_v30 = vld [vmem:[%s7366_s4 + $0x20] sm:$0xf] }
  0xe4   : > { %1217 = vmatpush.bf16.msra.mxu0 %v5520_v55  ;;  %1236 = vmatpush.bf16.msra.mxu1 %v5524_v59  ;;  %9544 = vst [vmem:[#allocation61_spill] sm:$0xff] %v7489_v12  ;;  %v5483_v21 = vld [vmem:[%s7366_s4 + $0x18] sm:$0xf]  ;;  %v5886_v31 = vld [vmem:[%s7366_s4 + $0x28] sm:$0xf0]  ;;  %v5488_v34 = vor.u32 %v5884_v26, %v5485_v29  ;;  %vm3846_vm0 = vcmask 785408  }
  0xe5   : > { %1255 = vmatpush.bf16.msra.mxu2 %v5528_v60  ;;  %v5484_v28 = vor.u32 %v5885_v25, %v5483_v21  ;;  %v5492_v35 = vor.u32 %v5886_v31, %v5491_v30  ;;  %v5471_v37 = vld [vmem:[%s7366_s4] sm:$0xf]  ;;  %v5882_v38 = vld [vmem:[%s7366_s4 + $0x8] sm:$0xf0]  ;;  %v5881_v39 = vld [vmem:[%s7366_s4 + $0x4] sm:$0xf] }
  0xe6   : > { %v5472_v40 = vor.u32 %v5882_v38, %v5471_v37  ;;  %v5473_v41 = vld [vmem:[%s7366_s4 + $0xc] sm:$0xf0]  ;;  %v5479_v42 = vld [vmem:[%s7366_s4 + $0x8] sm:$0xf]  ;;  %v5883_v43 = vld [vmem:[%s7366_s4 + $0x10] sm:$0xf0] }
  0xe7   : > { %v5476_v45 = vor.u32 %v5881_v39, %v5473_v41  ;;  %v5480_v46 = vor.u32 %v5883_v43, %v5479_v42  ;;  %v6263_v26 = vld [vmem:[%s914_s2] ss:$0 sm:$0xff] }
  0xe8   : > { %1218 = vmatpush.bf16.msra.mxu0 %v5508_v1  ;;  %1237 = vmatpush.bf16.msra.mxu1 %v5512_v5 }
  0xe9   : > { %970 = vadd.xlane.f32.xlu0 %v964_v18  ;;  %1256 = vmatpush.bf16.msra.mxu2 %v5516_v6  ;;  %v5889_v18 = vld [vmem:[%s7366_s4 + $0x40] sm:$0xf0]  ;;  %s6965_s4 = smov 64  }
  0xea   : > { %v5504_v20 = vor.u32 %v5889_v18, %v5503_v17 }
  0xeb   : > { %972 = vadd.xlane.f32.xlu1 %v965_v19  ;;  %v5500_v19 = vor.u32 %v5887_v11, %v5497_v15 }
  0xec   : > { %1219 = vmatpush.bf16.msra.mxu0 %v5496_v14 }
  0xed   : > { %1238 = vmatpush.bf16.msra.mxu1 %v5500_v19  ;;  %1257 = vmatpush.bf16.msra.mxu2 %v5504_v20 }
  0xf0   : > { %1220 = vmatpush.bf16.msra.mxu0 %v5484_v28 }
  0xf1   : > { %1239 = vmatpush.bf16.msra.mxu1 %v5488_v34  ;;  %1258 = vmatpush.bf16.msra.mxu2 %v5492_v35  ;;  %v6264_v35 = vld [vmem:[%s729_s16] ss:$0 sm:$0xff]  ;;  %s6964_s16 = smov 32  }
  0xf4   : > { %1221 = vmatpush.bf16.msra.mxu0 %v5472_v40 }
  0xf5   : > { %1240 = vmatpush.bf16.msra.mxu1 %v5476_v45  ;;  %1259 = vmatpush.bf16.msra.mxu2 %v5480_v46 }
 0x14c   : > { %v944_v22 = vpop.xlane.xlu0 %943 }
 0x14d   : > { %v7495_v23 = vmul.f32 %v7489_v12, %v944_v22 }
 0x14e   : > { %v948_v24 = vpop.xlane.xlu2 %947  ;;  %v967_v27 = vpop.xlane.xlu1 %966 }
 0x14f   : > { %v978_v32 = vmul.f32 %v7495_v23, %v7495_v23  ;;  %v974_v33 = vmul.f32 %v967_v27, %v7489_v12  ;;  %v7514_v51 = vmul.f32 %v7489_v12, %v948_v24  ;;  %v986_v20 = vsub.f32 %v7426_v7, %v7495_v23 }
 0x151   : > { %v982_v36 = vsub.f32 %v974_v33, %v978_v32  ;;  %v980_v57 = vmul.f32 %v7514_v51, %v7514_v51 }
 0x153   : > { %v990_v44 = vadd.f32 1e-05, %v982_v36 }
 0x154   : > { %v946_v47 = vpop.xlane.xlu0 %945 }
 0x155   : > { %6271 = vrsqrt.f32 %v990_v44  ;;  %v959_v48 = vmul.f32 %v7489_v12, %v946_v47  ;;  %vm1000_vm2 = vweird.f32 %v990_v44 }
 0x156   : > { %v969_v49 = vpop.xlane.xlu1 %968  ;;  %v950_v50 = vpop.xlane.xlu2 %949 }
 0x157   : > { %v979_v52 = vmul.f32 %v959_v48, %v959_v48  ;;  %v975_v53 = vmul.f32 %v969_v49, %v7489_v12  ;;  %v7518_v55 = vmul.f32 %v7489_v12, %v950_v50  ;;  %v987_v30 = vsub.f32 %v7436_v13, %v959_v48 }
 0x158   : > { %v988_v48 = vsub.f32 %v7429_v9, %v7514_v51 }
 0x159   : > { %v983_v54 = vsub.f32 %v975_v53, %v979_v52  ;;  %v981_v61 = vmul.f32 %v7518_v55, %v7518_v55  ;;  %v989_v46 = vsub.f32 %v7439_v16, %v7518_v55 }
 0x15b   : > { %v6272_v56 = vpop.eup %6271  ;;  %v991_v58 = vadd.f32 1e-05, %v983_v54 }
 0x15c   : > { %v995_v59 = vmul.f32 %v6272_v56, %v990_v44  ;;  %v971_v60 = vpop.xlane.xlu0 %970  ;;  %vm1001_vm1 = vweird.f32 %v6272_v56 }
 0x15d   : > { %6273 = vrsqrt.f32 %v991_v58  ;;  %v976_v62 = vmul.f32 %v971_v60, %v7489_v12  ;;  %vm1002_vm3 = vmor %vm1000_vm2, %vm1001_vm1  ;;  %vm1010_vm5 = vweird.f32 %v991_v58 }
 0x15e   : > { %v996_v63 = vmul.f32 %v6272_v56, %v995_v59  ;;  %v973_v0 = vpop.xlane.xlu1 %972 }
 0x15f   : > { %v984_v1 = vsub.f32 %v976_v62, %v980_v57  ;;  %v977_v2 = vmul.f32 %v973_v0, %v7489_v12 }
 0x160   : > { %v997_v3 = vmul.f32 0.5, %v996_v63 }
 0x161   : > { %v992_v4 = vadd.f32 1e-05, %v984_v1  ;;  %v985_v5 = vsub.f32 %v977_v2, %v981_v61 }
 0x162   : > { %v998_v6 = vsub.f32 1.5, %v997_v3 }
 0x163   : > { %v6274_v8 = vpop.eup %6273  ;;  %6275 = vrsqrt.f32 %v992_v4  ;;  %v993_v10 = vadd.f32 1e-05, %v985_v5  ;;  %vm1020_vm11 = vweird.f32 %v992_v4 }
 0x164   : > { %v999_v11 = vmul.f32 %v6272_v56, %v998_v6  ;;  %v1005_v14 = vmul.f32 %v6274_v8, %v991_v58  ;;  %vm1011_vm4 = vweird.f32 %v6274_v8 }
 0x165   : > { %6277 = vrsqrt.f32 %v993_v10  ;;  %vm1012_vm6 = vmor %vm1010_vm5, %vm1011_vm4  ;;  %vm1030_vm7 = vweird.f32 %v993_v10 }
 0x166   : > { %v1006_v15 = vmul.f32 %v6274_v8, %v1005_v14  ;;  %v1003_v17 = vsel %vm1002_vm3, %v6272_v56, %v999_v11 }
 0x167   : > { %v1034_v25 = vmul.f32 %v1003_v17, %v986_v20 }
 0x168   : > { %v1007_v18 = vmul.f32 0.5, %v1006_v15 }
 0x169   : > { %v6276_v19 = vpop.eup %6275  ;;  %v1041_v34 = vmul.f32 %v6263_v26, %v1034_v25 }
 0x16a   : > { %v1008_v22 = vsub.f32 1.5, %v1007_v18  ;;  %v1015_v24 = vmul.f32 %v6276_v19, %v992_v4  ;;  %vm1021_vm9 = vweird.f32 %v6276_v19 }
 0x16b   : > { %v6278_v21 = vpop.eup %6277  ;;  %v1048_v40 = vadd.f32 %v6264_v35, %v1041_v34  ;;  %vm1022_vm12 = vmor %vm1020_vm11, %vm1021_vm9  ;;  %v6968_v34 = vmov 1934713408  }
 0x16c   : > { %v1009_v27 = vmul.f32 %v6274_v8, %v1008_v22  ;;  %v1016_v28 = vmul.f32 %v6276_v19, %v1015_v24  ;;  %v1025_v29 = vmul.f32 %v6278_v21, %v993_v10  ;;  %vm1031_vm8 = vweird.f32 %v6278_v21 }
 0x16d   : > { %vm1032_vm10 = vmor %vm1030_vm7, %vm1031_vm8  ;;  %v6967_v22 = vmov 1983009808  }
 0x16e   : > { %v1013_v31 = vsel %vm1012_vm6, %v6274_v8, %v1009_v27  ;;  %v1017_v23 = vmul.f32 0.5, %v1016_v28  ;;  %v1026_v32 = vmul.f32 %v6278_v21, %v1025_v29  ;;  %v1321_v24 = vunpack.c.l.s4 %v6967_v22 }
 0x16f   : > { %v1035_v33 = vmul.f32 %v1013_v31, %v987_v30 }
 0x170   : > { %v1018_v36 = vsub.f32 1.5, %v1017_v23  ;;  %v1027_v37 = vmul.f32 0.5, %v1026_v32  ;;  %v7600_v32 = vunpack.c.0.s8 %v1321_v24 }
 0x171   : > { %v1042_v38 = vmul.f32 %v6263_v26, %v1035_v33 }
 0x172   : > { %v1028_v39 = vsub.f32 1.5, %v1027_v37  ;;  %v1019_v42 = vmul.f32 %v6276_v19, %v1018_v36 }
 0x173   : > { %v1049_v41 = vadd.f32 %v6264_v35, %v1042_v38 }
 0x174   : > { %v1029_v43 = vmul.f32 %v6278_v21, %v1028_v39  ;;  %v1023_v47 = vsel %vm1022_vm12, %v6276_v19, %v1019_v42 }
 0x175   : > { %v1052_v44 = vpack.c.bf16 %v1049_v41, %v1048_v40  ;;  %v1036_v50 = vmul.f32 %v1023_v47, %v988_v48 }
 0x176   : > { %v1033_v45 = vsel %vm1032_vm10, %v6278_v21, %v1029_v43 }
 0x177   : > { %1222 = vmatmul.bf16.vlgmr.msra.gmra.mxu0 %v1052_v44  ;;  %1241 = vmatmul.bf16.vlgmr.msra.gmra.mxu1 %v1052_v44  ;;  %v1037_v49 = vmul.f32 %v1033_v45, %v989_v46  ;;  %v1043_v53 = vmul.f32 %v6263_v26, %v1036_v50 }
 0x178   : > { %1260 = vmatmul.bf16.vlgmr.msra.gmra.mxu2 %v1052_v44 }
 0x179   : > { %v1044_v52 = vmul.f32 %v6263_v26, %v1037_v49  ;;  %v1050_v56 = vadd.f32 %v6264_v35, %v1043_v53 }
 0x17b   : > { %v1051_v54 = vadd.f32 %v6264_v35, %v1044_v52  ;;  %v1345_v35 = vunpack.c.l.s4 %v6968_v34 }
 0x17d   : > { %v1053_v57 = vpack.c.bf16 %v1051_v54, %v1050_v56 }
 0x187   : > { %1227 = vmatmul.bf16.gmra.mxu0 %v1053_v57  ;;  %1246 = vmatmul.bf16.gmra.mxu1 %v1053_v57 }
 0x188   : > { %1265 = vmatmul.bf16.gmra.mxu2 %v1053_v57 }
 0x1f4   : > { %v7540_v58 = vpop.f32.mrf.mxu1  ;;  %v1223_v55 = vpop.f32.mrf.mxu0 }
 0x1f5   : > { %v7557_v2 = vmul.f32 0.17677669, %v1223_v55  ;;  %v1582_v27 = vrot.slane %v7540_v58, 4 }
 0x1f7   : > { %v1318_v31 = vrot.slane %v7557_v2, 4 }
 0x1fb   : > { %v7546_v62 = vpop.f32.mrf.mxu2 }
 0x1fc   : > { %v7542_v59 = vpop.f32.mrf.mxu1  ;;  %v1225_v60 = vpop.f32.mrf.mxu0 }
 0x1fd   : > { %v7555_v1 = vmul.f32 0.17677669, %v1225_v60  ;;  %v6163_v4 = vpack.i.bf16 %v7542_v59, %v7540_v58  ;;  %v1638_v34 = vrot.slane %v7542_v59, 4 }
 0x1ff   : > { %v6173_v3 = vpack.i.bf16 %v7555_v1, %v7557_v2 }
 0x203   : > { %v7563_v5 = vpop.f32.mrf.mxu2 }
 0x204   : > { %v7544_v61 = vpop.f32.mrf.mxu1  ;;  %v1228_v51 = vpop.f32.mrf.mxu0 }
 0x205   : > { %v7570_v10 = vmul.f32 0.17677669, %v1228_v51  ;;  %v1694_v28 = vrot.slane %v7544_v61, 4 }
 0x20b   : > { %v7576_v14 = vpop.f32.mrf.mxu2 }
 0x20c   : > { %v7548_v63 = vpop.f32.mrf.mxu1  ;;  %v1230_v6 = vpop.f32.mrf.mxu0 }
 0x20d   : > { %v6153_v0 = vpack.i.bf16 %v7548_v63, %v7544_v61  ;;  %v7568_v8 = vmul.f32 0.17677669, %v1230_v6  ;;  %v1750_v29 = vrot.slane %v7548_v63, 4 }
 0x20f   : > { %6154 = vrot.lane.b32.xlu1 %v6153_v0, %s6964_s16  ;;  %6149 = vrot.lane.b32.xlu0 %v6153_v0, %s6965_s4  ;;  %v6188_v11 = vpack.i.bf16 %v7568_v8, %v7570_v10 }
 0x210   : > { %6144 = vrot.lane.b32.xlu2 %v6153_v0, %s6966_s22 }
 0x213   : > { %v7581_v15 = vpop.f32.mrf.mxu2 }
 0x214   : > { %9546 = vst [vmem:[#allocation62_spill] sm:$0xff] %v7581_v15  ;;  %v7585_v17 = vpack.i.bf16 %v7581_v15, %v7576_v14 }
 0x217   : > { %6174 = vrot.lane.b32.xlu1 %v6173_v3, %s6966_s22  ;;  %6164 = vrot.lane.b32.xlu0 %v6163_v4, %s6965_s4 }
 0x218   : > { %6159 = vrot.lane.b32.xlu2 %v6163_v4, %s6966_s22 }
 0x21f   : > { %6179 = vrot.lane.b32.xlu0 %v6173_v3, %s6965_s4  ;;  %6189 = vrot.lane.b32.xlu1 %v6188_v11, %s6966_s22 }
 0x220   : > { %6169 = vrot.lane.b32.xlu2 %v6163_v4, %s6964_s16 }
 0x227   : > { %6194 = vrot.lane.b32.xlu0 %v6188_v11, %s6965_s4 }
 0x228   : > { %6184 = vrot.lane.b32.xlu2 %v6173_v3, %s6964_s16 }
 0x22f   : > { %6204 = vrot.lane.b32.xlu0 %v7585_v17, %s6966_s22 }
 0x230   : > { %6199 = vrot.lane.b32.xlu2 %v6188_v11, %s6964_s16 }
 0x238   : > { %6209 = vrot.lane.b32.xlu2 %v7585_v17, %s6965_s4 }
 0x26a   : > { %v6145_v18 = vpop.permute.xlu2 %6144 }
 0x26b   : > { %v6147_v20 = vunpack.i.h.bf16 %v6145_v18  ;;  %v6146_v21 = vunpack.i.l.bf16 %v6145_v18 }
 0x26d   : > { %v1762_v23 = vrot.slane %v6147_v20, 4  ;;  %v1706_v37 = vrot.slane %v6146_v21, 4 }
 0x272   : > { %v7592_v19 = vpop.permute.xlu2 %6159 }
 0x273   : > { %v6162_v25 = vunpack.i.h.bf16 %v7592_v19  ;;  %v6161_v26 = vunpack.i.l.bf16 %v7592_v19 }
 0x275   : > { %v1650_v38 = vrot.slane %v6162_v25, 4  ;;  %v1594_v41 = vrot.slane %v6161_v26, 4 }
 0x27a   : > { %v6170_v30 = vpop.permute.xlu2 %6169 }
 0x27b   : > { %v6172_v42 = vunpack.i.h.bf16 %v6170_v30  ;;  %v6171_v45 = vunpack.i.l.bf16 %v6170_v30 }
 0x27d   : > { %v1648_v60 = vrot.slane %v6172_v42, 4  ;;  %v1592_v4 = vrot.slane %v6171_v45, 4 }
 0x281   : > { %v6155_v33 = vpop.permute.xlu1 %6154  ;;  %v6150_v36 = vpop.permute.xlu0 %6149 }
 0x282   : > { %v6157_v39 = vunpack.i.h.bf16 %v6155_v33  ;;  %v6156_v40 = vunpack.i.l.bf16 %v6155_v33  ;;  %v6152_v43 = vunpack.i.h.bf16 %v6150_v36  ;;  %v6151_v44 = vunpack.i.l.bf16 %v6150_v36 }
 0x283   : > { %v1593_v36 = vsel %vm1316_vm13, %v1592_v4, %v6161_v26 }
 0x284   : > { %v1760_v46 = vrot.slane %v6157_v39, 4  ;;  %v1704_v47 = vrot.slane %v6156_v40, 4  ;;  %v1707_v48 = vsel %vm1316_vm13, %v6156_v40, %v1706_v37  ;;  %v1763_v50 = vsel %vm1316_vm13, %v6157_v39, %v1762_v23 }
 0x285   : > { %v1715_v49 = vperm.slane %v1707_v48, %v7600_v32  ;;  %v1748_v52 = vrot.slane %v6152_v43, 4  ;;  %v1692_v53 = vrot.slane %v6151_v44, 4  ;;  %v1695_v57 = vsel %vm1316_vm13, %v6151_v44, %v1694_v28 }
 0x286   : > { %v1705_v54 = vsel %vm1316_vm13, %v1704_v47, %v6146_v21  ;;  %v1761_v56 = vsel %vm1316_vm13, %v1760_v46, %v6147_v20  ;;  %v1751_v55 = vsel %vm1316_vm13, %v6152_v43, %v1750_v29  ;;  %v1703_v18 = vperm.slane %v1695_v57, %v7600_v32 }
 0x287   : > { %v1711_v51 = vperm.slane %v1705_v54, %v7600_v32  ;;  %v1728_v0 = vrot.slane %v1715_v49, 4  ;;  %v1767_v3 = vperm.slane %v1761_v56, %v7600_v32  ;;  %v1749_v6 = vsel %vm1316_vm13, %v1748_v52, %v7548_v63 }
 0x288   : > { %v1693_v11 = vsel %vm1316_vm13, %v1692_v53, %v7544_v61  ;;  %v1771_v19 = vperm.slane %v1763_v50, %v7600_v32  ;;  %v1755_v20 = vperm.slane %v1749_v6, %v7600_v32  ;;  %v1759_v24 = vperm.slane %v1751_v55, %v7600_v32  ;;  %v6185_v50 = vpop.permute.xlu2 %6184 }
 0x289   : > { %v1699_v22 = vperm.slane %v1693_v11, %v7600_v32  ;;  %v1595_v21 = vsel %vm1316_vm13, %v6171_v45, %v1594_v41  ;;  %v1716_v28 = vrot.slane %v1711_v51, 4  ;;  %v7621_v29 = vunpack.c.0.s8 %v1345_v35  ;;  %v6165_v4 = vpop.permute.xlu0 %6164 }
 0x28a   : > { %v1730_v30 = vrot.slane %v1703_v18, 4  ;;  %v1651_v63 = vsel %vm1316_vm13, %v6172_v42, %v1650_v38  ;;  %v1772_v23 = vrot.slane %v1767_v3, 4  ;;  %v1729_v33 = vsel %vm1316_vm13, %v1728_v0, %v1703_v18 }
 0x28b   : > { %v1718_v61 = vrot.slane %v1699_v22, 4  ;;  %v1774_v37 = vrot.slane %v1755_v20, 4  ;;  %v7629_v40 = vperm.slane %v1595_v21, %v7600_v32  ;;  %v1649_v35 = vsel %vm1316_vm13, %v1648_v60, %v6162_v25 }
 0x28c   : > { %v1731_v39 = vsel %vm1316_vm13, %v1715_v49, %v1730_v30  ;;  %v1784_v41 = vrot.slane %v1771_v19, 4  ;;  %v1786_v43 = vrot.slane %v1759_v24, 4  ;;  %v7633_v38 = vperm.slane %v1651_v63, %v7600_v32 }
 0x28d   : > { %v1717_v42 = vsel %vm1316_vm13, %v1716_v28, %v1699_v22  ;;  %v1719_v44 = vsel %vm1316_vm13, %v1711_v51, %v1718_v61  ;;  %v1735_v45 = vperm.slane %v1729_v33, %v7621_v29  ;;  %v7639_v26 = vperm.slane %v1593_v36, %v7600_v32  ;;  %v6175_v22 = vpop.permute.xlu1 %6174 }
 0x28e   : > { %v1739_v46 = vperm.slane %v1731_v39, %v7621_v29  ;;  %v1773_v47 = vsel %vm1316_vm13, %v1772_v23, %v1755_v20  ;;  %v1374_v25 = vrot.slane %v7555_v1, 4  ;;  %v7645_v48 = vperm.slane %v1649_v35, %v7600_v32 }
 0x28f   : > { %v1775_v49 = vsel %vm1316_vm13, %v1767_v3, %v1774_v37  ;;  %v7651_v54 = vperm.slane %v1717_v42, %v7621_v29  ;;  %v1727_v56 = vperm.slane %v1719_v44, %v7621_v29  ;;  %v1785_v57 = vsel %vm1316_vm13, %v1784_v41, %v1759_v24 }
 0x290   : > { %v1787_v55 = vsel %vm1316_vm13, %v1771_v19, %v1786_v43  ;;  %v1616_v60 = vrot.slane %v7629_v40, 4  ;;  %v1672_v51 = vrot.slane %v7633_v38, 4  ;;  %v1744_v0 = vrot.slane %v1735_v45, 4 }
 0x291   : > { %v7659_v3 = vperm.slane %v1773_v47, %v7621_v29  ;;  %v1604_v6 = vrot.slane %v7639_v26, 4  ;;  %v1746_v11 = vrot.slane %v1739_v46, 4  ;;  %v1783_v18 = vperm.slane %v1775_v49, %v7621_v29 }
 0x292   : > { %v6187_v20 = vunpack.i.h.bf16 %v6185_v50  ;;  %v1660_v24 = vrot.slane %v7645_v48, 4  ;;  %v1791_v19 = vperm.slane %v1785_v57, %v7621_v29  ;;  %v1795_v21 = vperm.slane %v1787_v55, %v7621_v29 }
 0x293   : > { %v6186_v28 = vunpack.i.l.bf16 %v6185_v50  ;;  %v7667_v63 = vrot.slane %v1727_v56, 4  ;;  %v6167_v23 = vunpack.i.h.bf16 %v6165_v4  ;;  %v6166_v61 = vunpack.i.l.bf16 %v6165_v4 }
 0x294   : > { %v7670_v33 = vsel %vm1316_vm13, 0.0, %v1744_v0  ;;  %v6177_v37 = vunpack.i.h.bf16 %v6175_v22  ;;  %v6176_v39 = vunpack.i.l.bf16 %v6175_v22  ;;  %v7674_v35 = vsel %vm1316_vm13, 0.0, %v1746_v11 }
 0x295   : > { %v7676_v41 = vrot.slane %v1783_v18, 4  ;;  %v1384_v43 = vrot.slane %v6187_v20, 4  ;;  %v1636_v42 = vrot.slane %v6167_v23, 4  ;;  %v1800_v44 = vrot.slane %v1791_v19, 4 }
 0x296   : > { %v1802_v46 = vrot.slane %v1795_v21, 4  ;;  %v2419_v47 = vsel %vm1316_vm13, %v1746_v11, %v1735_v45  ;;  %v1580_v49 = vrot.slane %v6166_v61, 4  ;;  %v7681_v50 = vsel %vm1316_vm13, 0.0, %v7667_v63 }
 0x297   : > { %v1328_v56 = vrot.slane %v6186_v28, 4  ;;  %v1637_v57 = vsel %vm1316_vm13, %v1636_v42, %v7542_v59  ;;  %v1639_v55 = vsel %vm1316_vm13, %v6167_v23, %v1638_v34  ;;  %v1386_v0 = vrot.slane %v6177_v37, 4 }
 0x298   : > { %v1330_v4 = vrot.slane %v6176_v39, 4  ;;  %v1385_v18 = vsel %vm1316_vm13, %v1384_v43, %v6177_v37  ;;  %v1643_v22 = vperm.slane %v1637_v57, %v7600_v32  ;;  %v7690_v45 = vsel %vm1316_vm13, 0.0, %v7676_v41  ;;  %v7717_v57 = vpop.permute.xlu2 %6199 }
 0x299   : > { %v1329_v11 = vsel %vm1316_vm13, %v1328_v56, %v6176_v39  ;;  %v1581_v21 = vsel %vm1316_vm13, %v1580_v49, %v7540_v58  ;;  %v1583_v59 = vsel %vm1316_vm13, %v6166_v61, %v1582_v27  ;;  %v7699_v34 = vsel %vm1316_vm13, 0.0, %v1802_v46 }
 0x29a   : > { %v7702_v23 = vperm.slane %v2419_v47, %v7600_v32  ;;  %v1647_v37 = vperm.slane %v1639_v55, %v7600_v32  ;;  %v1587_v43 = vperm.slane %v1581_v21, %v7600_v32  ;;  %v2473_v39 = vsel %vm1316_vm13, %v1802_v46, %v1791_v19  ;;  %v6180_v46 = vpop.permute.xlu0 %6179 }
 0x29b   : > { %v7709_v49 = vperm.slane %v1385_v18, %v7600_v32  ;;  %v1591_v58 = vperm.slane %v1583_v59, %v7600_v32  ;;  %v1331_v27 = vsel %vm1316_vm13, %v6186_v28, %v1330_v4  ;;  %v7714_v61 = vperm.slane %v1329_v11, %v7600_v32 }
 0x29c   : > { %v1387_v47 = vsel %vm1316_vm13, %v6187_v20, %v1386_v0  ;;  %v1662_v56 = vrot.slane %v1643_v22, 4  ;;  %v7720_v55 = vsel %vm1316_vm13, 0.0, %v1800_v44  ;;  %v7726_v21 = vperm.slane %v2473_v39, %v7600_v32 }
 0x29d   : > { %v1674_v28 = vrot.slane %v1647_v37, 4  ;;  %v1606_v4 = vrot.slane %v1587_v43, 4  ;;  %v1617_v20 = vsel %vm1316_vm13, %v1616_v60, %v1591_v58  ;;  %v1339_v0 = vperm.slane %v1331_v27, %v7600_v32 }
 0x29e   : > { %v7733_v44 = vperm.slane %v1387_v47, %v7600_v32  ;;  %v9474_v11 = vunpack.i.h.bf16 %v7717_v57  ;;  %v9473_v59 = vunpack.i.l.bf16 %v7717_v57  ;;  %v1340_v18 = vrot.slane %v7714_v61, 4 }
 0x29f   : > { %v1396_v39 = vrot.slane %v7709_v49, 4  ;;  %v1618_v42 = vrot.slane %v1591_v58, 4  ;;  %v1663_v19 = vsel %vm1316_vm13, %v7645_v48, %v1662_v56  ;;  %v1605_v60 = vsel %vm1316_vm13, %v1604_v6, %v1587_v43 }
 0x2a0   : > { %v1623_v27 = vperm.slane %v1617_v20, %v7621_v29  ;;  %v1661_v47 = vsel %vm1316_vm13, %v1660_v24, %v1643_v22  ;;  %v1673_v36 = vsel %vm1316_vm13, %v1672_v51, %v1647_v37  ;;  %v1607_v58 = vsel %vm1316_vm13, %v7639_v26, %v1606_v4 }
 0x2a1   : > { %v1675_v56 = vsel %vm1316_vm13, %v7633_v38, %v1674_v28  ;;  %v6182_v30 = vunpack.i.h.bf16 %v6180_v46  ;;  %v6181_v53 = vunpack.i.l.bf16 %v6180_v46  ;;  %v1352_v52 = vrot.slane %v1339_v0, 4 }
 0x2a2   : > { %v1408_v6 = vrot.slane %v7733_v44, 4  ;;  %v1671_v43 = vperm.slane %v1663_v19, %v7621_v29  ;;  %v7759_v48 = vrot.slane %v9474_v11, 4  ;;  %v7762_v24 = vperm.slane %v1605_v60, %v7621_v29 }
 0x2a3   : > { %v1619_v26 = vsel %vm1316_vm13, %v7629_v40, %v1618_v42  ;;  %v7767_v51 = vperm.slane %v1661_v47, %v7621_v29  ;;  %v7771_v38 = vrot.slane %v9473_v59, 4  ;;  %v1615_v22 = vperm.slane %v1607_v58, %v7621_v29 }
 0x2a4   : > { %v1632_v37 = vrot.slane %v1623_v27, 4  ;;  %v1679_v19 = vperm.slane %v1673_v36, %v7621_v29  ;;  %v1683_v46 = vperm.slane %v1675_v56, %v7621_v29  ;;  %v1372_v28 = vrot.slane %v6182_v30, 4 }
 0x2a5   : > { %v1375_v4 = vsel %vm1316_vm13, %v6182_v30, %v1374_v25  ;;  %v1315_v40 = vrot.slane %v6181_v53, 4  ;;  %v1319_v42 = vsel %vm1316_vm13, %v6181_v53, %v1318_v31  ;;  %v1627_v20 = vperm.slane %v1619_v26, %v7621_v29 }
 0x2a6   : > { %v7783_v60 = vrot.slane %v1671_v43, 4  ;;  %v1383_v47 = vperm.slane %v1375_v4, %v7600_v32  ;;  %v1327_v36 = vperm.slane %v1319_v42, %v7600_v32  ;;  %v1373_v25 = vsel %vm1316_vm13, %v1372_v28, %v7555_v1 }
 0x2a7   : > { %v1317_v30 = vsel %vm1316_vm13, %v1315_v40, %v7557_v2  ;;  %v7793_v59 = vrot.slane %v1615_v22, 4  ;;  %v1379_v31 = vperm.slane %v1373_v25, %v7600_v32  ;;  %v7798_v26 = vsel %vm1316_vm13, 0.0, %v1632_v37 }
 0x2a8   : > { %v1410_v53 = vrot.slane %v1383_v47, 4  ;;  %v1323_v43 = vperm.slane %v1317_v30, %v7600_v32  ;;  %v1688_v4 = vrot.slane %v1679_v19, 4  ;;  %v1690_v42 = vrot.slane %v1683_v46, 4 }
 0x2a9   : > { %v1354_v58 = vrot.slane %v1327_v36, 4  ;;  %v1634_v56 = vrot.slane %v1627_v20, 4  ;;  %v7802_v1 = vsel %vm1316_vm13, 0.0, %v7783_v60  ;;  %v1398_v28 = vrot.slane %v1379_v31, 4 }
 0x2aa   : > { %v1342_v2 = vrot.slane %v1323_v43, 4  ;;  %v1341_v22 = vsel %vm1316_vm13, %v1340_v18, %v1323_v43  ;;  %v1353_v40 = vsel %vm1316_vm13, %v1352_v52, %v1327_v36  ;;  %v1397_v30 = vsel %vm1316_vm13, %v1396_v39, %v1379_v31 }
 0x2ab   : > { %v1355_v25 = vsel %vm1316_vm13, %v1339_v0, %v1354_v58  ;;  %v1399_v20 = vsel %vm1316_vm13, %v7709_v49, %v1398_v28  ;;  %v1411_v11 = vsel %vm1316_vm13, %v7733_v44, %v1410_v53  ;;  %v7817_v18 = vsel %vm1316_vm13, 0.0, %v7793_v59 }
 0x2ac   : > { %v1343_v37 = vsel %vm1316_vm13, %v7714_v61, %v1342_v2  ;;  %v1363_v46 = vperm.slane %v1355_v25, %v7621_v29  ;;  %v1407_v0 = vperm.slane %v1399_v20, %v7621_v29  ;;  %v1409_v39 = vsel %vm1316_vm13, %v1408_v6, %v1383_v47  ;;  %v6190_v25 = vpop.permute.xlu1 %6189 }
 0x2ad   : > { %v1351_v52 = vperm.slane %v1343_v37, %v7621_v29  ;;  %v7823_v61 = vsel %vm1316_vm13, 0.0, %v1634_v56  ;;  %v2311_v36 = vsel %vm1316_vm13, %v1634_v56, %v1623_v27  ;;  %v1359_v49 = vperm.slane %v1353_v40, %v7621_v29 }
 0x2ae   : > { %v1419_v58 = vperm.slane %v1411_v11, %v7621_v29  ;;  %v1347_v44 = vperm.slane %v1341_v22, %v7621_v29  ;;  %v1370_v53 = vrot.slane %v1363_v46, 4  ;;  %v1403_v43 = vperm.slane %v1397_v30, %v7621_v29 }
 0x2af   : > { %v1366_v31 = vrot.slane %v1351_v52, 4  ;;  %v7831_v28 = vsel %vm1316_vm13, 0.0, %v1688_v4  ;;  %v1415_v6 = vperm.slane %v1409_v39, %v7621_v29  ;;  %v1422_v47 = vrot.slane %v1407_v0, 4 }
 0x2b0   : > { %v1426_v2 = vrot.slane %v1419_v58, 4  ;;  %v7835_v27 = vsel %vm1316_vm13, 0.0, %v1690_v42  ;;  %v2365_v22 = vsel %vm1316_vm13, %v1690_v42, %v1679_v19  ;;  %v7841_v40 = vperm.slane %v2311_v36, %v7600_v32 }
 0x2b1   : > { %v1367_v30 = vsel %vm1316_vm13, 0.0, %v1366_v31  ;;  %v1368_v37 = vrot.slane %v1359_v49, 4  ;;  %v1364_v46 = vrot.slane %v1347_v44, 4  ;;  %v1371_v20 = vsel %vm1316_vm13, 0.0, %v1370_v53 }
 0x2b2   : > { %v1420_v52 = vrot.slane %v1403_v43, 4  ;;  %v6192_v0 = vunpack.i.h.bf16 %v6190_v25  ;;  %v1423_v39 = vsel %vm1316_vm13, 0.0, %v1422_v47  ;;  %v1424_v58 = vrot.slane %v1415_v6, 4 }
 0x2b3   : > { %v1427_v11 = vsel %vm1316_vm13, 0.0, %v1426_v2  ;;  %v2079_v19 = vsel %vm1316_vm13, %v1370_v53, %v1359_v49  ;;  %v7850_v42 = vperm.slane %v2365_v22, %v7600_v32  ;;  %v2073_v4 = vrot.slane %v1367_v30, 4 }
 0x2b4   : > { %v6191_v56 = vunpack.i.l.bf16 %v6190_v25  ;;  %v1369_v12 = vsel %vm1316_vm13, 0.0, %v1368_v37  ;;  %v2068_v16 = vsel %vm1316_vm13, %v1366_v31, %v1347_v44  ;;  %v2084_v9 = vrot.slane %v1371_v20, 4 }
 0x2b5   : > { %v2122_v13 = vsel %vm1316_vm13, %v1422_v47, %v1403_v43  ;;  %v1365_v7 = vsel %vm1316_vm13, 0.0, %v1364_v46  ;;  %v7858_v15 = vperm.slane %v2079_v19, %v7600_v32  ;;  %v2127_v49 = vrot.slane %v1423_v39, 4 }
 0x2b6   : > { %v2138_v53 = vrot.slane %v1427_v11, 4  ;;  %v1421_v22 = vsel %vm1316_vm13, 0.0, %v1420_v52  ;;  %v1425_v36 = vsel %vm1316_vm13, 0.0, %v1424_v58  ;;  %v1497_v25 = vsel %vm1316_vm13, %v7759_v48, %v6192_v0  ;;  %v6195_v11 = vpop.permute.xlu0 %6194 }
 0x2b7   : > { %v1498_v30 = vrot.slane %v6192_v0, 4  ;;  %v7865_v44 = vperm.slane %v2068_v16, %v7600_v32  ;;  %v7868_v31 = vsel %vm1316_vm13, %v2073_v4, %v1365_v7  ;;  %v7871_v43 = vperm.slane %v2122_v13, %v7600_v32 }
 0x2b8   : > { %v2133_v47 = vsel %vm1316_vm13, %v1426_v2, %v1415_v6  ;;  %v2085_v37 = vsel %vm1316_vm13, %v2084_v9, %v1369_v12  ;;  %v9547_v46 = vunpack.i.h.bf16 %v7717_v57  ;;  %v1441_v48 = vsel %vm1316_vm13, %v7771_v38, %v6191_v56 }
 0x2b9   : > { %v1442_v16 = vrot.slane %v6191_v56, 4  ;;  %v2104_v52 = vrot.slane %v7858_v15, 4  ;;  %v7882_v7 = vsel %vm1316_vm13, %v2127_v49, %v1421_v22  ;;  %v2139_v13 = vsel %vm1316_vm13, %v2138_v53, %v1425_v36 }
 0x2ba   : > { %v1499_v20 = vsel %vm1316_vm13, %v9547_v46, %v1498_v30  ;;  %v1503_v6 = vperm.slane %v1497_v25, %v7600_v32  ;;  %v9548_v2 = vunpack.i.l.bf16 %v7717_v57  ;;  %v1447_v12 = vperm.slane %v1441_v48, %v7600_v32 }
 0x2bb   : > { %v6197_v4 = vunpack.i.h.bf16 %v6195_v11  ;;  %v6196_v0 = vunpack.i.l.bf16 %v6195_v11  ;;  %v7891_v38 = vperm.slane %v2085_v37, %v7600_v32  ;;  %v7894_v56 = vperm.slane %v2133_v47, %v7600_v32 }
 0x2bc   : > { %v1443_v9 = vsel %vm1316_vm13, %v9548_v2, %v1442_v16  ;;  %v1507_v39 = vperm.slane %v1499_v20, %v7600_v32  ;;  %v9549_v57 = vrot.slane %v7570_v10, 4  ;;  %v9550_v53 = vrot.slane %v7568_v8, 4 }
 0x2bd   : > { %v1451_v58 = vperm.slane %v1443_v9, %v7600_v32  ;;  %v1484_v19 = vrot.slane %v6197_v4, 4  ;;  %v1428_v36 = vrot.slane %v6196_v0, 4  ;;  %v7905_v25 = vperm.slane %v2139_v13, %v7600_v32 }
 0x2be   : > { %v1431_v49 = vsel %vm1316_vm13, %v6196_v0, %v9549_v57  ;;  %v1487_v22 = vsel %vm1316_vm13, %v6197_v4, %v9550_v53  ;;  %v1508_v37 = vrot.slane %v1503_v6, 4  ;;  %v1452_v46 = vrot.slane %v1447_v12, 4 }
 0x2bf   : > { %v1464_v30 = vrot.slane %v1451_v58, 4  ;;  %v1439_v47 = vperm.slane %v1431_v49, %v7600_v32  ;;  %v1495_v11 = vperm.slane %v1487_v22, %v7600_v32  ;;  %v1485_v20 = vsel %vm1316_vm13, %v1484_v19, %v7568_v8 }
 0x2c0   : > { %v1429_v48 = vsel %vm1316_vm13, %v1428_v36, %v7570_v10  ;;  %v1491_v16 = vperm.slane %v1485_v20, %v7600_v32  ;;  %v1520_v4 = vrot.slane %v1507_v39, 4  ;;  %v2408_v49 = vsel %vm1316_vm13, %v7667_v63, %v7651_v54 }
 0x2c1   : > { %v1435_v2 = vperm.slane %v1429_v48, %v7600_v32  ;;  %v1465_v13 = vsel %vm1316_vm13, %v1464_v30, %v1439_v47  ;;  %v1466_v9 = vrot.slane %v1439_v47, 4  ;;  %v1522_v57 = vrot.slane %v1495_v11, 4 }
 0x2c2   : > { %v1471_v0 = vperm.slane %v1465_v13, %v7621_v29  ;;  %v1510_v53 = vrot.slane %v1491_v16, 4  ;;  %v1509_v30 = vsel %vm1316_vm13, %v1508_v37, %v1491_v16  ;;  %v1521_v47 = vsel %vm1316_vm13, %v1520_v4, %v1495_v11 }
 0x2c3   : > { %v1453_v8 = vsel %vm1316_vm13, %v1452_v46, %v1435_v2  ;;  %v1454_v19 = vrot.slane %v1435_v2, 4  ;;  %v1467_v10 = vsel %vm1316_vm13, %v1451_v58, %v1466_v9  ;;  %v1515_v63 = vperm.slane %v1509_v30, %v7621_v29 }
 0x2c4   : > { %v1459_v36 = vperm.slane %v1453_v8, %v7621_v29  ;;  %v1475_v22 = vperm.slane %v1467_v10, %v7621_v29  ;;  %v1511_v48 = vsel %vm1316_vm13, %v1503_v6, %v1510_v53  ;;  %v1523_v13 = vsel %vm1316_vm13, %v1507_v39, %v1522_v57 }
 0x2c5   : > { %v1455_v20 = vsel %vm1316_vm13, %v1447_v12, %v1454_v19  ;;  %v1480_v58 = vrot.slane %v1471_v0, 4  ;;  %v1519_v8 = vperm.slane %v1511_v48, %v7621_v29  ;;  %v1527_v10 = vperm.slane %v1521_v47, %v7621_v29 }
 0x2c6   : > { %v1463_v46 = vperm.slane %v1455_v20, %v7621_v29  ;;  %v1476_v2 = vrot.slane %v1459_v36, 4  ;;  %v1482_v9 = vrot.slane %v1475_v22, 4  ;;  %v1531_v37 = vperm.slane %v1523_v13, %v7621_v29 }
 0x2c7   : > { %v1532_v11 = vrot.slane %v1515_v63, 4  ;;  %v2158_v12 = vrot.slane %v7894_v56, 4  ;;  %v9551_v4 = vrot.slane %v7651_v54, 4  ;;  %v1534_v57 = vrot.slane %v1519_v8, 4 }
 0x2c8   : > { %v1478_v16 = vrot.slane %v1463_v46, 4  ;;  %v1483_v6 = vsel %vm1316_vm13, 0.0, %v1482_v9  ;;  %v1536_v53 = vrot.slane %v1527_v10, 4  ;;  %v1538_v19 = vrot.slane %v1531_v37, 4 }
 0x2c9   : > { %v1741_v39 = vsel %vm1316_vm13, 0.0, %v9551_v4  ;;  %v2187_v22 = vsel %vm1316_vm13, %v1482_v9, %v1471_v0  ;;  %v9552_v47 = vrot.slane %v7659_v3, 4  ;;  %v2412_v48 = vperm.slane %v2408_v49, %v7600_v32 }
 0x2ca   : > { %v7941_v30 = vsel %vm1316_vm13, 0.0, %v1478_v16  ;;  %v9553_v13 = vrot.slane %v7681_v50, 4  ;;  %v7951_v46 = vsel %vm1316_vm13, 0.0, %v1476_v2  ;;  %v1481_v8 = vsel %vm1316_vm13, 0.0, %v1480_v58 }
 0x2cb   : > { %v1797_v20 = vsel %vm1316_vm13, 0.0, %v9552_v47  ;;  %v7955_v0 = vsel %vm1316_vm13, 0.0, %v1532_v11  ;;  %v2192_v9 = vrot.slane %v1483_v6, 4  ;;  %v7958_v37 = vsel %vm1316_vm13, 0.0, %v1534_v57 }
 0x2cc   : > { %v2414_v54 = vsel %vm1316_vm13, %v9553_v13, %v1741_v39  ;;  %v7961_v4 = vsel %vm1316_vm13, 0.0, %v1536_v53  ;;  %v7964_v49 = vsel %vm1316_vm13, %v1478_v16, %v1459_v36  ;;  %v7967_v50 = vperm.slane %v2187_v22, %v7600_v32 }
 0x2cd   : > { %v7970_v2 = vsel %vm1316_vm13, 0.0, %v1538_v19  ;;  %v2418_v11 = vperm.slane %v2414_v54, %v7600_v32  ;;  %v9554_v6 = vrot.slane %v7674_v35, 4  ;;  %v2432_v47 = vrot.slane %v2412_v48, 4 }
 0x2ce   : > { %v2444_v36 = vrot.slane %v7702_v23, 4  ;;  %v2462_v16 = vsel %vm1316_vm13, %v7676_v41, %v7659_v3  ;;  %v7984_v22 = vsel %vm1316_vm13, %v2192_v9, %v1481_v8  ;;  %v9555_v54 = vrot.slane %v7690_v45, 4 }
 0x2cf   : > { %v2425_v39 = vsel %vm1316_vm13, %v9554_v6, %v7670_v33  ;;  %v2466_v13 = vperm.slane %v2462_v16, %v7600_v32  ;;  %v9556_v33 = vrot.slane %v7699_v34, 4  ;;  %v8002_v16 = vsel %vm1316_vm13, %v1534_v57, %v1515_v63 }
 0x2d0   : > { %v2429_v53 = vperm.slane %v2425_v39, %v7600_v32  ;;  %v2468_v35 = vsel %vm1316_vm13, %v9555_v54, %v1797_v20  ;;  %v2433_v39 = vsel %vm1316_vm13, %v2418_v11, %v2432_v47  ;;  %v2498_v20 = vrot.slane %v7726_v21, 4 }
 0x2d1   : > { %v2479_v6 = vsel %vm1316_vm13, %v9556_v33, %v7720_v55  ;;  %v2472_v3 = vperm.slane %v2468_v35, %v7600_v32  ;;  %v2441_v8 = vperm.slane %v2433_v39, %v7621_v29  ;;  %v2486_v45 = vrot.slane %v2466_v13, 4 }
 0x2d2   : > { %v2445_v58 = vsel %vm1316_vm13, %v2429_v53, %v2444_v36  ;;  %v2483_v41 = vperm.slane %v2479_v6, %v7600_v32  ;;  %v8006_v55 = vsel %vm1316_vm13, %v1538_v19, %v1527_v10  ;;  %v2430_v47 = vrot.slane %v2418_v11, 4 }
 0x2d3   : > { %v2453_v9 = vperm.slane %v2445_v58, %v7621_v29  ;;  %v2487_v54 = vsel %vm1316_vm13, %v2472_v3, %v2486_v45  ;;  %v2442_v33 = vrot.slane %v2429_v53, 4  ;;  %v2484_v19 = vrot.slane %v2472_v3, 4 }
 0x2d4   : > { %v2499_v35 = vsel %vm1316_vm13, %v2483_v41, %v2498_v20  ;;  %v2495_v6 = vperm.slane %v2487_v54, %v7621_v29  ;;  %v2431_v57 = vsel %vm1316_vm13, %v2430_v47, %v2412_v48  ;;  %v2460_v34 = vrot.slane %v2441_v8, 4 }
 0x2d5   : > { %v2458_v36 = vrot.slane %v2453_v9, 4  ;;  %v2507_v39 = vperm.slane %v2499_v35, %v7621_v29  ;;  %v2443_v10 = vsel %vm1316_vm13, %v2442_v33, %v7702_v23  ;;  %v8018_v20 = vperm.slane %v2431_v57, %v7621_v29 }
 0x2d6   : > { %v8021_v53 = vperm.slane %v2443_v10, %v7621_v29  ;;  %v2485_v54 = vsel %vm1316_vm13, %v2484_v19, %v2466_v13  ;;  %v2496_v35 = vrot.slane %v2483_v41, 4  ;;  %v2514_v58 = vrot.slane %v2495_v6, 4 }
 0x2d7   : > { %v2459_v63 = vsel %vm1316_vm13, %v2458_v36, %v2441_v8  ;;  %v2512_v11 = vrot.slane %v2507_v39, 4  ;;  %v8027_v23 = vperm.slane %v2485_v54, %v7621_v29  ;;  %v2300_v54 = vsel %vm1316_vm13, %v7793_v59, %v7762_v24 }
 0x2d8   : > { %v2526_v45 = vpack.c.bf16 %v2459_v63, %v2459_v63  ;;  %v2454_v47 = vrot.slane %v8021_v53, 4  ;;  %v2497_v33 = vsel %vm1316_vm13, %v2496_v35, %v7726_v21  ;;  %v2461_v63 = vsel %vm1316_vm13, %v2453_v9, %v2460_v34 }
 0x2d9   : > { %v2513_v36 = vsel %vm1316_vm13, %v2512_v11, %v2495_v6  ;;  %v2515_v57 = vsel %vm1316_vm13, %v2507_v39, %v2514_v58  ;;  %v8036_v41 = vperm.slane %v2497_v33, %v7621_v29  ;;  %v2530_v8 = vpack.c.bf16 %v2461_v63, %v2461_v63 }
 0x2da   : > { %v2883_v48 = vunpack.c.l.b16 %v2526_v45  ;;  %v2527_v3 = vpack.c.bf16 %v2513_v36, %v2513_v36  ;;  %v2455_v13 = vsel %vm1316_vm13, %v2454_v47, %v8018_v20  ;;  %v2531_v6 = vpack.c.bf16 %v2515_v57, %v2515_v57 }
 0x2db   : > { %v2518_v19 = vpack.c.bf16 %v2455_v13, %v2455_v13  ;;  %v9557_v11 = vrot.slane %v7762_v24, 4  ;;  %v9558_v21 = vrot.slane %v7767_v51, 4  ;;  %v2508_v34 = vrot.slane %v8036_v41, 4 }
 0x2dc   : > { %v2884_v10 = vunpack.c.l.b16 %v2527_v3  ;;  %v2934_v58 = vunpack.c.l.b16 %v2530_v8  ;;  %v2935_v39 = vunpack.c.l.b16 %v2531_v6  ;;  %v2304_v47 = vperm.slane %v2300_v54, %v7600_v32 }
 0x2dd   : > { %v1629_v45 = vsel %vm1316_vm13, 0.0, %v9557_v11  ;;  %v1685_v9 = vsel %vm1316_vm13, 0.0, %v9558_v21  ;;  %v2780_v36 = vunpack.c.l.b16 %v2518_v19  ;;  %v9559_v3 = vrot.slane %v7817_v18, 4 }
 0x2de   : > { %v2886_v35 = vpack.c.b16 %v2884_v10, %v2883_v48  ;;  %v2509_v63 = vsel %vm1316_vm13, %v2508_v34, %v8027_v23  ;;  %v2937_v57 = vpack.c.b16 %v2935_v39, %v2934_v58  ;;  %v9560_v8 = vrot.slane %v7823_v61, 4 }
 0x2df   : > { %v2306_v33 = vsel %vm1316_vm13, %v9559_v3, %v1629_v45  ;;  %v2519_v24 = vpack.c.bf16 %v2509_v63, %v2509_v63  ;;  %v2324_v10 = vrot.slane %v2304_v47, 4  ;;  %v2336_v19 = vrot.slane %v7841_v40, 4 }
 0x2e0   : > { %v2310_v13 = vperm.slane %v2306_v33, %v7600_v32  ;;  %v2317_v6 = vsel %vm1316_vm13, %v9560_v8, %v7798_v26  ;;  %v2897_v59 = vsel %vm2784_vm14, %v2886_v35, 0  ;;  %v2948_v18 = vsel %vm2784_vm14, %v2937_v57, 0 }
 0x2e1   : > { %v2321_v48 = vperm.slane %v2317_v6, %v7600_v32  ;;  %2905 = vmatpush.bf16.xpose.msrb.mxu0 %v2897_v59  ;;  %v2354_v11 = vsel %vm1316_vm13, %v7783_v60, %v7767_v51  ;;  %v9561_v45 = vrot.slane %v7802_v1, 4  ;;  %v2781_v26 = vunpack.c.l.b16 %v2519_v24  ;;  %2956 = vmatpush.bf16.xpose.msrb.mxu1 %v2948_v18 }
 0x2e2   : > { %v2325_v21 = vsel %vm1316_vm13, %v2310_v13, %v2324_v10  ;;  %v2358_v34 = vperm.slane %v2354_v11, %v7600_v32  ;;  %v9562_v35 = vrot.slane %v7835_v27, 4  ;;  %v2390_v60 = vrot.slane %v7850_v42, 4 }
 0x2e3   : > { %v2360_v61 = vsel %vm1316_vm13, %v9561_v45, %v1685_v9  ;;  %v2333_v39 = vperm.slane %v2325_v21, %v7621_v29  ;;  %v2337_v54 = vsel %vm1316_vm13, %v2321_v48, %v2336_v19  ;;  %v2783_v1 = vpack.c.b16 %v2781_v26, %v2780_v36 }
 0x2e4   : > { %v2364_v58 = vperm.slane %v2360_v61, %v7600_v32  ;;  %v2371_v51 = vsel %vm1316_vm13, %v9562_v35, %v7831_v28  ;;  %v2345_v9 = vperm.slane %v2337_v54, %v7621_v29  ;;  %v2378_v33 = vrot.slane %v2358_v34, 4 }
 0x2e5   : > { %v2375_v3 = vperm.slane %v2371_v51, %v7600_v32  ;;  %v2322_v63 = vrot.slane %v2310_v13, 4  ;;  %v2334_v57 = vrot.slane %v2321_v48, 4  ;;  %v2352_v6 = vrot.slane %v2333_v39, 4 }
 0x2e6   : > { %v2376_v8 = vrot.slane %v2364_v58, 4  ;;  %v2795_v59 = vsel %vm2784_vm14, %v2783_v1, 0  ;;  %v2350_v24 = vrot.slane %v2345_v9, 4  ;;  %v2379_v10 = vsel %vm1316_vm13, %v2364_v58, %v2378_v33 }
 0x2e7   : > { %v2391_v27 = vsel %vm1316_vm13, %v2375_v3, %v2390_v60  ;;  %2803 = vmatpush.bf16.xpose.msra.mxu3 %v2795_v59  ;;  %v2387_v28 = vperm.slane %v2379_v10, %v7621_v29  ;;  %v2323_v18 = vsel %vm1316_vm13, %v2322_v63, %v2304_v47  ;;  %v2335_v13 = vsel %vm1316_vm13, %v2334_v57, %v7841_v40 }
 0x2e8   : > { %v2399_v36 = vperm.slane %v2391_v27, %v7621_v29  ;;  %v2351_v48 = vsel %vm1316_vm13, %v2350_v24, %v2333_v39  ;;  %v8091_v19 = vperm.slane %v2323_v18, %v7621_v29  ;;  %v8094_v11 = vperm.slane %v2335_v13, %v7621_v29 }
 0x2e9   : > { %v2377_v45 = vsel %vm1316_vm13, %v2376_v8, %v2358_v34  ;;  %v2524_v26 = vpack.c.bf16 %v2351_v48, %v2351_v48  ;;  %v2388_v58 = vrot.slane %v2375_v3, 4  ;;  %v2353_v40 = vsel %vm1316_vm13, %v2345_v9, %v2352_v6 }
 0x2ea   : > { %v2404_v61 = vrot.slane %v2399_v36, 4  ;;  %v8098_v21 = vperm.slane %v2377_v45, %v7621_v29  ;;  %v2346_v47 = vrot.slane %v8094_v11, 4  ;;  %v2406_v54 = vrot.slane %v2387_v28, 4 }
 0x2eb   : > { %v2456_v39 = vrot.slane %v8018_v20, 4  ;;  %v2881_v51 = vunpack.c.l.b16 %v2524_v26  ;;  %v2389_v60 = vsel %vm1316_vm13, %v2388_v58, %v7850_v42  ;;  %v2528_v34 = vpack.c.bf16 %v2353_v40, %v2353_v40 }
 0x2ec   : > { %v2405_v35 = vsel %vm1316_vm13, %v2404_v61, %v2387_v28  ;;  %v2347_v33 = vsel %vm1316_vm13, %v2346_v47, %v8091_v19  ;;  %v8109_v3 = vperm.slane %v2389_v60, %v7621_v29  ;;  %v2407_v63 = vsel %vm1316_vm13, %v2399_v36, %v2406_v54 }
 0x2ed   : > { %v2525_v1 = vpack.c.bf16 %v2405_v35, %v2405_v35  ;;  %v2516_v9 = vpack.c.bf16 %v2347_v33, %v2347_v33  ;;  %v2529_v57 = vpack.c.bf16 %v2407_v63, %v2407_v63  ;;  %v2932_v8 = vunpack.c.l.b16 %v2528_v34 }
 0x2ee   : > { %v2457_v20 = vsel %vm1316_vm13, %v8021_v53, %v2456_v39  ;;  %v2400_v59 = vrot.slane %v8109_v3, 4  ;;  %v2510_v42 = vrot.slane %v8027_v23, 4  ;;  %v2078_v28 = vperm.slane %v7868_v31, %v7600_v32 }
 0x2ef   : > { %v2882_v6 = vunpack.c.l.b16 %v2525_v1  ;;  %v2522_v24 = vpack.c.bf16 %v2457_v20, %v2457_v20  ;;  %v2778_v10 = vunpack.c.l.b16 %v2516_v9  ;;  %v2933_v27 = vunpack.c.l.b16 %v2529_v57 }
 0x2f0   : > { %v2092_v18 = vrot.slane %v7865_v44, 4  ;;  %v2401_v13 = vsel %vm1316_vm13, %v2400_v59, %v8098_v21  ;;  %v2511_v53 = vsel %vm1316_vm13, %v8036_v41, %v2510_v42  ;;  %v2105_v31 = vsel %vm1316_vm13, %v7891_v38, %v2104_v52 }
 0x2f1   : > { %v2885_v36 = vpack.c.b16 %v2882_v6, %v2881_v51  ;;  %v2832_v48 = vunpack.c.l.b16 %v2522_v24  ;;  %v2517_v45 = vpack.c.bf16 %v2401_v13, %v2401_v13  ;;  %v2936_v61 = vpack.c.b16 %v2933_v27, %v2932_v8 }
 0x2f2   : > { %v2523_v26 = vpack.c.bf16 %v2511_v53, %v2511_v53  ;;  %v2093_v23 = vsel %vm1316_vm13, %v2078_v28, %v2092_v18  ;;  %v2132_v40 = vperm.slane %v7882_v7, %v7600_v32  ;;  %v2113_v35 = vperm.slane %v2105_v31, %v7621_v29 }
 0x2f3   : > { %v2894_v58 = vsel %vm2784_vm14, %v2885_v36, 0  ;;  %v2101_v47 = vperm.slane %v2093_v23, %v7621_v29  ;;  %v2779_v41 = vunpack.c.l.b16 %v2517_v45  ;;  %v2945_v54 = vsel %vm2784_vm14, %v2936_v61, 0 }
 0x2f4   : > { %2906 = vmatpush.bf16.xpose.msrb.mxu0 %v2894_v58  ;;  %v2833_v39 = vunpack.c.l.b16 %v2523_v26  ;;  %2957 = vmatpush.bf16.xpose.msrb.mxu1 %v2945_v54  ;;  %v2146_v51 = vrot.slane %v7871_v43, 4  ;;  %v2159_v60 = vsel %vm1316_vm13, %v7905_v25, %v2158_v12  ;;  %v2090_v34 = vrot.slane %v2078_v28, 4 }
 0x2f5   : > { %v2102_v52 = vrot.slane %v7891_v38, 4  ;;  %v2782_v1 = vpack.c.b16 %v2779_v41, %v2778_v10  ;;  %v2118_v33 = vrot.slane %v2113_v35, 4  ;;  %v2167_v63 = vperm.slane %v2159_v60, %v7621_v29 }
 0x2f6   : > { %v2835_v7 = vpack.c.b16 %v2833_v39, %v2832_v48  ;;  %v2147_v9 = vsel %vm1316_vm13, %v2132_v40, %v2146_v51  ;;  %v2091_v57 = vsel %vm1316_vm13, %v2090_v34, %v7865_v44  ;;  %v2144_v20 = vrot.slane %v2132_v40, 4 }
 0x2f7   : > { %v2103_v8 = vsel %vm1316_vm13, %v2102_v52, %v7858_v15  ;;  %v2792_v6 = vsel %vm2784_vm14, %v2782_v1, 0  ;;  %v2119_v38 = vsel %vm1316_vm13, %v2118_v33, %v2101_v47  ;;  %v2155_v59 = vperm.slane %v2147_v9, %v7621_v29 }
 0x2f8   : > { %v2846_v12 = vsel %vm2784_vm14, %v2835_v7, 0  ;;  %2804 = vmatpush.bf16.xpose.msra.mxu3 %v2792_v6  ;;  %v2172_v42 = vrot.slane %v2167_v63, 4  ;;  %v2292_v24 = vpack.c.bf16 %v2119_v38, %v2119_v38  ;;  %v8151_v10 = vperm.slane %v2091_v57, %v7621_v29 }
 0x2f9   : > { %v8154_v44 = vperm.slane %v2103_v8, %v7621_v29  ;;  %v2145_v15 = vsel %vm1316_vm13, %v2144_v20, %v7871_v43  ;;  %v2156_v27 = vrot.slane %v7905_v25, 4  ;;  %v2120_v28 = vrot.slane %v2101_v47, 4 }
 0x2fa   : > { %v2174_v18 = vrot.slane %v2155_v59, 4  ;;  %v8161_v36 = vperm.slane %v8006_v55, %v7600_v32  ;;  %v2173_v13 = vsel %vm1316_vm13, %v2172_v42, %v2155_v59  ;;  %v2871_v53 = vunpack.c.l.b16 %v2292_v24 }
 0x2fb   : > { %v2114_v48 = vrot.slane %v8154_v44, 4  ;;  %v2293_v45 = vpack.c.bf16 %v2173_v13, %v2173_v13  ;;  %v8166_v61 = vperm.slane %v2145_v15, %v7621_v29  ;;  %v2157_v43 = vsel %vm1316_vm13, %v2156_v27, %v7894_v56 }
 0x2fc   : > { %v2121_v25 = vsel %vm1316_vm13, %v2113_v35, %v2120_v28  ;;  %v8174_v55 = vperm.slane %v2157_v43, %v7621_v29  ;;  %v2175_v23 = vsel %vm1316_vm13, %v2167_v63, %v2174_v18  ;;  %v9563_v47 = vrot.slane %v7970_v2, 4 }
 0x2fd   : > { %v2115_v26 = vsel %vm1316_vm13, %v2114_v48, %v8151_v10  ;;  %v2296_v58 = vpack.c.bf16 %v2121_v25, %v2121_v25  ;;  %v2872_v40 = vunpack.c.l.b16 %v2293_v45  ;;  %v2297_v54 = vpack.c.bf16 %v2175_v23, %v2175_v23 }
 0x2fe   : > { %v2247_v31 = vsel %vm1316_vm13, %v9563_v47, %v7961_v4  ;;  %v2284_v41 = vpack.c.bf16 %v2115_v26, %v2115_v26  ;;  %v2168_v56 = vrot.slane %v8174_v55, 4  ;;  %v2348_v35 = vrot.slane %v8091_v19, 4 }
 0x2ff   : > { %v2922_v39 = vunpack.c.l.b16 %v2296_v58  ;;  %v2402_v51 = vrot.slane %v8098_v21, 4  ;;  %v2875_v60 = vpack.c.b16 %v2872_v40, %v2871_v53  ;;  %v2923_v52 = vunpack.c.l.b16 %v2297_v54 }
 0x300   : > { %2854 = vmatpush.bf16.xpose.msrb.mxu3 %v2846_v12  ;;  %v2768_v34 = vunpack.c.l.b16 %v2284_v41  ;;  %v2180_v1 = vperm.slane %v7964_v49, %v7600_v32  ;;  %v2169_v2 = vsel %vm1316_vm13, %v2168_v56, %v8166_v61  ;;  %v2349_v4 = vsel %vm1316_vm13, %v8094_v11, %v2348_v35 }
 0x301   : > { %v2403_v7 = vsel %vm1316_vm13, %v8109_v3, %v2402_v51  ;;  %v9564_v19 = vrot.slane %v7941_v30, 4  ;;  %5569 = vmatmul.msk.bf16.vlgmr.msrb.gmra.mxu0 %vm2784_vm14, %v2875_v60  ;;  %v2285_v33 = vpack.c.bf16 %v2169_v2, %v2169_v2  ;;  %v2926_v63 = vpack.c.b16 %v2923_v52, %v2922_v39 }
 0x302   : > { %v2520_v9 = vpack.c.bf16 %v2349_v4, %v2349_v4  ;;  %v2521_v49 = vpack.c.bf16 %v2403_v7, %v2403_v7  ;;  %v2197_v8 = vperm.slane %v7984_v22, %v7600_v32  ;;  %v2200_v11 = vrot.slane %v2180_v1, 4 }
 0x303   : > { %v2182_v21 = vsel %vm1316_vm13, %v9564_v19, %v7951_v46  ;;  %v2212_v20 = vrot.slane %v7967_v50, 4  ;;  %v2769_v3 = vunpack.c.l.b16 %v2285_v33  ;;  %5571 = vmatmul.msk.bf16.vlgmr.msrb.gmra.mxu1 %vm2784_vm14, %v2926_v63  ;;  %v2234_v46 = vperm.slane %v8002_v16, %v7600_v32 }
 0x304   : > { %v2186_v57 = vperm.slane %v2182_v21, %v7600_v32  ;;  %v2830_v30 = vunpack.c.l.b16 %v2520_v9  ;;  %v2831_v6 = vunpack.c.l.b16 %v2521_v49  ;;  %v9565_v59 = vrot.slane %v7958_v37, 4 }
 0x305   : > { %v2213_v38 = vsel %vm1316_vm13, %v2197_v8, %v2212_v20  ;;  %v2251_v42 = vperm.slane %v2247_v31, %v7600_v32  ;;  %v2772_v24 = vpack.c.b16 %v2769_v3, %v2768_v34  ;;  %v2254_v16 = vrot.slane %v2234_v46, 4 }
 0x306   : > { %v2201_v12 = vsel %vm1316_vm13, %v2186_v57, %v2200_v11  ;;  %v2236_v22 = vsel %vm1316_vm13, %v9565_v59, %v7955_v0  ;;  %v2834_v15 = vpack.c.b16 %v2831_v6, %v2830_v30  ;;  %v2221_v28 = vperm.slane %v2213_v38, %v7621_v29 }
 0x307   : > { %v2209_v27 = vperm.slane %v2201_v12, %v7621_v29  ;;  %v2240_v18 = vperm.slane %v2236_v22, %v7600_v32  ;;  %v2266_v13 = vrot.slane %v8161_v36, 4  ;;  %v2198_v53 = vrot.slane %v2186_v57, 4  ;;  %5565 = vmatmul.msk.bf16.vlgmr.msra.gmra.mxu3 %vm2784_vm14, %v2772_v24 }
 0x308   : > { %v2843_v37 = vsel %vm2784_vm14, %v2834_v15, 0  ;;  %v2226_v48 = vrot.slane %v2221_v28, 4  ;;  %v2210_v0 = vrot.slane %v2197_v8, 4  ;;  %v2264_v45 = vrot.slane %v2251_v42, 4 }
 0x309   : > { %2855 = vmatpush.bf16.xpose.msrb.mxu3 %v2843_v37  ;;  %v2255_v43 = vsel %vm1316_vm13, %v2240_v18, %v2254_v16  ;;  %v2267_v25 = vsel %vm1316_vm13, %v2251_v42, %v2266_v13  ;;  %v2199_v26 = vsel %vm1316_vm13, %v2198_v53, %v2180_v1  ;;  %v2252_v23 = vrot.slane %v2240_v18, 4 }
 0x30a   : > { %v2227_v58 = vsel %vm1316_vm13, %v2226_v48, %v2209_v27  ;;  %v2263_v47 = vperm.slane %v2255_v43, %v7621_v29  ;;  %v2275_v31 = vperm.slane %v2267_v25, %v7621_v29  ;;  %v2205_v40 = vperm.slane %v2199_v26, %v7621_v29 }
 0x30b   : > { %v2294_v41 = vpack.c.bf16 %v2227_v58, %v2227_v58  ;;  %v2211_v54 = vsel %vm1316_vm13, %v2210_v0, %v7967_v50  ;;  %v2253_v56 = vsel %vm1316_vm13, %v2252_v23, %v2234_v46  ;;  %v2265_v39 = vsel %vm1316_vm13, %v2264_v45, %v8161_v36 }
 0x30c   : > { %v2280_v35 = vrot.slane %v2275_v31, 4  ;;  %v2217_v51 = vperm.slane %v2211_v54, %v7621_v29  ;;  %v2259_v60 = vperm.slane %v2253_v56, %v7621_v29  ;;  %v2271_v34 = vperm.slane %v2265_v39, %v7621_v29 }
 0x30d   : > { %v2228_v52 = vrot.slane %v2209_v27, 4  ;;  %v2282_v1 = vrot.slane %v2263_v47, 4  ;;  %v2873_v50 = vunpack.c.l.b16 %v2294_v41  ;;  %v2116_v59 = vrot.slane %v8151_v10, 4 }
 0x30e   : > { %v2281_v2 = vsel %vm1316_vm13, %v2280_v35, %v2263_v47  ;;  %v2222_v4 = vrot.slane %v2217_v51, 4  ;;  %v2276_v7 = vrot.slane %v2271_v34, 4  ;;  %v2170_v22 = vrot.slane %v8166_v61, 4 }
 0x30f   : > { %v2295_v19 = vpack.c.bf16 %v2281_v2, %v2281_v2  ;;  %v2229_v21 = vsel %vm1316_vm13, %v2221_v28, %v2228_v52  ;;  %v2283_v33 = vsel %vm1316_vm13, %v2275_v31, %v2282_v1  ;;  %v2117_v42 = vsel %vm1316_vm13, %v8154_v44, %v2116_v59  ;;  %v8314_v59 = vpop.permute.xlu2 %6209 }
 0x310   : > { %v2223_v36 = vsel %vm1316_vm13, %v2222_v4, %v2205_v40  ;;  %v2277_v63 = vsel %vm1316_vm13, %v2276_v7, %v2259_v60  ;;  %v2298_v9 = vpack.c.bf16 %v2229_v21, %v2229_v21  ;;  %v2299_v49 = vpack.c.bf16 %v2283_v33, %v2283_v33 }
 0x311   : > { %v2874_v57 = vunpack.c.l.b16 %v2295_v19  ;;  %v2286_v8 = vpack.c.bf16 %v2223_v36, %v2223_v36  ;;  %v2287_v11 = vpack.c.bf16 %v2277_v63, %v2277_v63  ;;  %v2171_v24 = vsel %vm1316_vm13, %v8174_v55, %v2170_v22 }
 0x312   : > { %v2924_v20 = vunpack.c.l.b16 %v2298_v9  ;;  %v2925_v3 = vunpack.c.l.b16 %v2299_v49  ;;  %v2288_v15 = vpack.c.bf16 %v2117_v42, %v2117_v42  ;;  %v2289_v27 = vpack.c.bf16 %v2171_v24, %v2171_v24 }
 0x313   : > { %v2876_v30 = vpack.c.b16 %v2874_v57, %v2873_v50  ;;  %v2770_v6 = vunpack.c.l.b16 %v2286_v8  ;;  %v2771_v46 = vunpack.c.l.b16 %v2287_v11  ;;  %v2224_v13 = vrot.slane %v2205_v40, 4 }
 0x314   : > { %v2927_v12 = vpack.c.b16 %v2925_v3, %v2924_v20  ;;  %v2820_v28 = vunpack.c.l.b16 %v2288_v15  ;;  %v2821_v18 = vunpack.c.l.b16 %v2289_v27  ;;  %v2278_v53 = vrot.slane %v2259_v60, 4  ;;  %v8311_v20 = vpop.permute.xlu0 %6204 }
 0x315   : > { %5570 = vmatmul.msk.bf16.gmra.mxu0 %vm2784_vm14, %v2876_v30  ;;  %v2773_v38 = vpack.c.b16 %v2771_v46, %v2770_v6  ;;  %v2225_v10 = vsel %vm1316_vm13, %v2217_v51, %v2224_v13  ;;  %v6218_v36 = vpack.i.bf16 %v7563_v5, %v7546_v62 }
 0x316   : > { %5572 = vmatmul.msk.bf16.gmra.mxu1 %vm2784_vm14, %v2927_v12  ;;  %v2824_v16 = vpack.c.b16 %v2821_v18, %v2820_v28  ;;  %v2279_v61 = vsel %vm1316_vm13, %v2271_v34, %v2278_v53  ;;  %v2290_v37 = vpack.c.bf16 %v2225_v10, %v2225_v10 }
 0x317   : > { %5566 = vmatmul.msk.bf16.gmra.mxu3 %vm2784_vm14, %v2773_v38  ;;  %v2291_v48 = vpack.c.bf16 %v2279_v61, %v2279_v61 }
 0x318   : > { %v2822_v0 = vunpack.c.l.b16 %v2290_v37 }
 0x319   : > { %v2823_v44 = vunpack.c.l.b16 %v2291_v48 }
 0x31b   : > { %v2825_v45 = vpack.c.b16 %v2823_v44, %v2822_v0 }
 0x327   : > { %5567 = vmatmul.msk.bf16.vlgmr.msrb.gmra.mxu3 %vm2784_vm14, %v2824_v16 }
 0x337   : > { %5568 = vmatmul.msk.bf16.gmra.mxu3 %vm2784_vm14, %v2825_v45 }
 0x37e   : > { %v2908_v55 = vpop.f32.mrf.mxu0 }
 0x37f   : > { %v2993_v43 = vsel %vm2784_vm14, %v2908_v55, -inf }
 0x380   : > { %v2959_v25 = vpop.f32.mrf.mxu1  ;;  %2994 = vmax.xlane.f32.xlu0 %v2993_v43 }
 0x381   : > { %v3005_v26 = vsel %vm2784_vm14, %v2959_v25, -inf }
 0x382   : > { %3006 = vmax.xlane.f32.xlu1 %v3005_v26 }
 0x386   : > { %v8252_v23 = vpop.f32.mrf.mxu0 }
 0x387   : > { %v2996_v58 = vsel %vm2784_vm14, %v8252_v23, -inf }
 0x388   : > { %v8256_v47 = vpop.f32.mrf.mxu1  ;;  %2997 = vmax.xlane.f32.xlu2 %v2996_v58 }
 0x389   : > { %v3008_v31 = vsel %vm2784_vm14, %v8256_v47, -inf }
 0x38a   : > { %v2806_v40 = vpop.f32.mrf.mxu3  ;;  %3009 = vmax.xlane.f32.xlu0 %v3008_v31 }
 0x38b   : > { %v2969_v41 = vsel %vm2784_vm14, %v2806_v40, -inf }
 0x38c   : > { %2970 = vmax.xlane.f32.xlu1 %v2969_v41 }
 0x392   : > { %v8261_v54 = vpop.f32.mrf.mxu0  ;;  %v8263_v56 = vpop.f32.mrf.mxu3 }
 0x393   : > { %v8265_v39 = vpop.f32.mrf.mxu1  ;;  %v2972_v35 = vsel %vm2784_vm14, %v8263_v56, -inf  ;;  %v2999_v60 = vsel %vm2784_vm14, %v8261_v54, -inf }
 0x394   : > { %v3011_v51 = vsel %vm2784_vm14, %v8265_v39, -inf  ;;  %2973 = vmax.xlane.f32.xlu0 %v2972_v35  ;;  %3000 = vmax.xlane.f32.xlu1 %v2999_v60 }
 0x395   : > { %3012 = vmax.xlane.f32.xlu2 %v3011_v51 }
 0x39a   : > { %v8273_v34 = vpop.f32.mrf.mxu0  ;;  %v8275_v52 = vpop.f32.mrf.mxu3 }
 0x39b   : > { %v8277_v1 = vpop.f32.mrf.mxu1  ;;  %v3002_v4 = vsel %vm2784_vm14, %v8273_v34, -inf  ;;  %v2975_v7 = vsel %vm2784_vm14, %v8275_v52, -inf }
 0x39c   : > { %v3014_v2 = vsel %vm2784_vm14, %v8277_v1, -inf  ;;  %3003 = vmax.xlane.f32.xlu0 %v3002_v4 }
 0x39d   : > { %2976 = vmax.xlane.f32.xlu2 %v2975_v7  ;;  %3015 = vmax.xlane.f32.xlu1 %v3014_v2 }
 0x3a2   : > { %v8285_v19 = vpop.f32.mrf.mxu3 }
 0x3a3   : > { %v2978_v50 = vsel %vm2784_vm14, %v8285_v19, -inf }
 0x3a5   : > { %2979 = vmax.xlane.f32.xlu1 %v2978_v50 }
 0x3aa   : > { %v8289_v21 = vpop.f32.mrf.mxu3 }
 0x3ab   : > { %v2981_v33 = vsel %vm2784_vm14, %v8289_v21, -inf }
 0x3ac   : > { %2982 = vmax.xlane.f32.xlu2 %v2981_v33 }
 0x3b0   : > { %6219 = vrot.lane.b32.xlu0 %v6218_v36, %s6966_s22 }
 0x3b2   : > { %v8296_v63 = vpop.f32.mrf.mxu3 }
 0x3b3   : > { %v2984_v9 = vsel %vm2784_vm14, %v8296_v63, -inf }
 0x3b4   : > { %2985 = vmax.xlane.f32.xlu1 %v2984_v9 }
 0x3ba   : > { %v8300_v49 = vpop.f32.mrf.mxu3 }
 0x3bb   : > { %v2987_v11 = vsel %vm2784_vm14, %v8300_v49, -inf }
 0x3c2   : > { %v8302_v57 = vpop.f32.mrf.mxu3 }
 0x3c3   : > { %v2990_v8 = vsel %vm2784_vm14, %v8302_v57, -inf }
 0x3c4   : > { %2991 = vmax.xlane.f32.xlu2 %v2990_v8 }
 0x3cd   : > { %6214 = vrot.lane.b32.xlu1 %v7585_v17, %s6964_s16 }
 0x3da   : > { %2988 = vmax.xlane.f32.xlu0 %v2987_v11 }
 0x3dc   : > { %6224 = vrot.lane.b32.xlu2 %v6218_v36, %s6965_s4 }
 0x3ee   : > { %6229 = vrot.lane.b32.xlu0 %v6218_v36, %s6964_s16 }
 0x3f3   : > { %v2995_v3 = vpop.xlane.xlu0 %2994 }
 0x3f4   : > { %v3025_v30 = vsub.f32 %v2908_v55, %v2995_v3 }
 0x3f5   : > { %v3007_v6 = vpop.xlane.xlu1 %3006 }
 0x3f6   : > { %v3049_v46 = vmul.f32 1.442695, %v3025_v30  ;;  %v3029_v12 = vsub.f32 %v2959_v25, %v3007_v6 }
 0x3f8   : > { %v3057_v38 = vmul.f32 1.442695, %v3029_v12  ;;  %6279 = vpow2.f32 %v3049_v46 }
 0x3fa   : > { %6281 = vpow2.f32 %v3057_v38 }
 0x3fb   : > { %v2998_v16 = vpop.xlane.xlu2 %2997 }
 0x3fc   : > { %v3026_v13 = vsub.f32 %v8252_v23, %v2998_v16 }
 0x3fd   : > { %v3010_v17 = vpop.xlane.xlu0 %3009 }
 0x3fe   : > { %v8316_v22 = vpop.eup %6279  ;;  %v3051_v37 = vmul.f32 1.442695, %v3026_v13  ;;  %v3030_v48 = vsub.f32 %v8256_v47, %v3010_v17 }
 0x3ff   : > { %v2971_v42 = vpop.xlane.xlu1 %2970  ;;  %v3089_v18 = vsel %vm2784_vm14, %v8316_v22, 0.0 }
 0x400   : > { %v8318_v24 = vpop.eup %6281  ;;  %v3017_v15 = vsub.f32 %v2806_v40, %v2971_v42  ;;  %v3059_v43 = vmul.f32 1.442695, %v3030_v48 }
 0x401   : > { %v3101_v27 = vsel %vm2784_vm14, %v8318_v24, 0.0 }
 0x402   : > { %v3033_v28 = vmul.f32 1.442695, %v3017_v15  ;;  %3102 = vadd.xlane.f32.xlu1 %v3101_v27 }
 0x404   : > { %6283 = vpow2.f32 %v3033_v28 }
 0x405   : > { %3090 = vadd.xlane.f32.xlu2 %v3089_v18 }
 0x407   : > { %v2974_v53 = vpop.xlane.xlu0 %2973  ;;  %v3001_v44 = vpop.xlane.xlu1 %3000 }
 0x408   : > { %v3018_v10 = vsub.f32 %v8263_v56, %v2974_v53  ;;  %v3013_v55 = vpop.xlane.xlu2 %3012  ;;  %v3027_v3 = vsub.f32 %v8261_v54, %v3001_v44 }
 0x40a   : > { %v8326_v61 = vpop.eup %6283  ;;  %v3035_v0 = vmul.f32 1.442695, %v3018_v10  ;;  %v3053_v42 = vmul.f32 1.442695, %v3027_v3 }
 0x40b   : > { %v3065_v45 = vsel %vm2784_vm14, %v8326_v61, 0.0 }
 0x40c   : > { %6285 = vpow2.f32 %v3035_v0  ;;  %3066 = vadd.xlane.f32.xlu1 %v3065_v45 }
 0x40d   : > { %6287 = vpow2.f32 %v3051_v37 }
 0x40e   : > { %6289 = vpow2.f32 %v3059_v43 }
 0x40f   : > { %v3004_v11 = vpop.xlane.xlu0 %3003 }
 0x410   : > { %v3016_v58 = vpop.xlane.xlu1 %3015  ;;  %v2977_v47 = vpop.xlane.xlu2 %2976  ;;  %v3028_v6 = vsub.f32 %v8273_v34, %v3004_v11  ;;  %v1958_v34 = vrot.slane %v7576_v14, 4 }
 0x411   : > { %v3019_v60 = vsub.f32 %v8275_v52, %v2977_v47  ;;  %v3031_v52 = vsub.f32 %v8265_v39, %v3013_v55 }
 0x412   : > { %v8331_v25 = vpop.eup %6285  ;;  %v3055_v15 = vmul.f32 1.442695, %v3028_v6 }
 0x413   : > { %v3068_v26 = vsel %vm2784_vm14, %v8331_v25, 0.0  ;;  %v8335_v23 = vpop.eup %6287  ;;  %v3037_v4 = vmul.f32 1.442695, %v3019_v60  ;;  %v3061_v12 = vmul.f32 1.442695, %v3031_v52 }
 0x414   : > { %3069 = vadd.xlane.f32.xlu2 %v3068_v26  ;;  %v3092_v31 = vsel %vm2784_vm14, %v8335_v23, 0.0  ;;  %v8339_v40 = vpop.eup %6289  ;;  %v6206_v26 = vunpack.i.l.bf16 %v8311_v20 }
 0x415   : > { %v3104_v41 = vsel %vm2784_vm14, %v8339_v40, 0.0 }
 0x418   : > { %3093 = vadd.xlane.f32.xlu0 %v3092_v31  ;;  %v2980_v56 = vpop.xlane.xlu1 %2979 }
 0x419   : > { %v3020_v36 = vsub.f32 %v8285_v19, %v2980_v56  ;;  %v3032_v19 = vsub.f32 %v8277_v1, %v3016_v58  ;;  %v9566_v1 = vld [vmem:[#allocation62_spill] sm:$0xff]  ;;  %v1846_v56 = vrot.slane %v7546_v62, 4 }
 0x41a   : > { %v2014_v28 = vrot.slane %v9566_v1, 4 }
 0x41b   : > { %v3039_v30 = vmul.f32 1.442695, %v3020_v36  ;;  %v3063_v27 = vmul.f32 1.442695, %v3032_v19 }
 0x41c   : > { %3105 = vadd.xlane.f32.xlu2 %v3104_v41 }
 0x41f   : > { %v2983_v35 = vpop.xlane.xlu2 %2982 }
 0x420   : > { %v3021_v51 = vsub.f32 %v8289_v21, %v2983_v35  ;;  %v6212_v21 = vunpack.i.h.bf16 %v8314_v59  ;;  %v1902_v35 = vrot.slane %v7563_v5, 4 }
 0x422   : > { %v3041_v2 = vmul.f32 1.442695, %v3021_v51  ;;  %v2012_v17 = vrot.slane %v6212_v21, 4  ;;  %v2015_v16 = vsel %vm1316_vm13, %v6212_v21, %v2014_v28  ;;  %v8386_v55 = vpop.permute.xlu0 %6219 }
 0x423   : > { %v2023_v0 = vperm.slane %v2015_v16, %v7600_v32  ;;  %v6222_v60 = vunpack.i.h.bf16 %v8386_v55  ;;  %v6221_v36 = vunpack.i.l.bf16 %v8386_v55 }
 0x424   : > { %6291 = vpow2.f32 %v3041_v2  ;;  %v2013_v18 = vsel %vm1316_vm13, %v2012_v17, %v9566_v1 }
 0x425   : > { %6293 = vpow2.f32 %v3037_v4  ;;  %v8376_v48 = vperm.slane %v2013_v18, %v7600_v32  ;;  %v8418_v6 = vrot.slane %v6222_v60, 4 }
 0x427   : > { %v2986_v7 = vpop.xlane.xlu1 %2985  ;;  %v2038_v51 = vrot.slane %v8376_v48, 4 }
 0x428   : > { %v3022_v50 = vsub.f32 %v8296_v63, %v2986_v7  ;;  %v6211_v63 = vunpack.i.l.bf16 %v8314_v59 }
 0x42a   : > { %v8346_v33 = vpop.eup %6291  ;;  %v3043_v9 = vmul.f32 1.442695, %v3022_v50  ;;  %v1956_v39 = vrot.slane %v6211_v63, 4  ;;  %v1959_v53 = vsel %vm1316_vm13, %v6211_v63, %v1958_v34  ;;  %v1970_v50 = vrot.slane %v6206_v26, 4 }
 0x42b   : > { %v3077_v8 = vsel %vm2784_vm14, %v8346_v33, 0.0  ;;  %v8356_v46 = vpop.eup %6293  ;;  %v8383_v45 = vperm.slane %v1959_v53, %v7600_v32 }
 0x42c   : > { %6295 = vpow2.f32 %v3043_v9  ;;  %3078 = vadd.xlane.f32.xlu0 %v3077_v8  ;;  %v3071_v59 = vsel %vm2784_vm14, %v8356_v46, 0.0  ;;  %v1957_v13 = vsel %vm1316_vm13, %v1956_v39, %v7576_v14  ;;  %v6207_v14 = vunpack.i.h.bf16 %v8311_v20 }
 0x42d   : > { %6297 = vpow2.f32 %v3039_v30  ;;  %v8380_v44 = vperm.slane %v1957_v13, %v7600_v32  ;;  %v2050_v20 = vrot.slane %v2023_v0, 4  ;;  %v1994_v4 = vrot.slane %v8383_v45, 4 }
 0x42e   : > { %6299 = vpow2.f32 %v3061_v12  ;;  %v2026_v7 = vrot.slane %v6207_v14, 4 }
 0x42f   : > { %6301 = vpow2.f32 %v3053_v42 }
 0x430   : > { %6303 = vpow2.f32 %v3055_v15 }
 0x431   : > { %6305 = vpow2.f32 %v3063_v27 }
 0x432   : > { %v8359_v38 = vpop.eup %6295 }
 0x433   : > { %v3080_v54 = vsel %vm2784_vm14, %v8359_v38, 0.0  ;;  %v8373_v37 = vpop.eup %6297 }
 0x434   : > { %3081 = vadd.xlane.f32.xlu1 %v3080_v54  ;;  %3072 = vadd.xlane.f32.xlu0 %v3071_v59  ;;  %v8388_v43 = vpop.eup %6299  ;;  %v3074_v47 = vsel %vm2784_vm14, %v8373_v37, 0.0  ;;  %v8431_v59 = vrot.slane %v6221_v36, 4 }
 0x435   : > { %v8394_v31 = vpop.eup %6301  ;;  %v8411_v52 = vsel %vm2784_vm14, %v8388_v43, 0.0 }
 0x436   : > { %v8396_v41 = vpop.eup %6303  ;;  %v3095_v63 = vsel %vm2784_vm14, %v8394_v31, 0.0 }
 0x437   : > { %v2992_v10 = vpop.xlane.xlu2 %2991  ;;  %v8402_v2 = vpop.eup %6305  ;;  %v8425_v17 = vsel %vm2784_vm14, %v8396_v41, 0.0 }
 0x438   : > { %v3024_v58 = vsub.f32 %v8302_v57, %v2992_v10  ;;  %v1982_v57 = vrot.slane %v8380_v44, 4  ;;  %v3110_v12 = vsel %vm2784_vm14, %v8402_v2, 0.0 }
 0x43a   : > { %v3047_v9 = vmul.f32 1.442695, %v3024_v58 }
 0x43c   : > { %3075 = vadd.xlane.f32.xlu1 %v3074_v47  ;;  %6307 = vpow2.f32 %v3047_v9 }
 0x43f   : > { %v6215_v8 = vpop.permute.xlu1 %6214  ;;  %v8407_v11 = vpop.permute.xlu2 %6224 }
 0x440   : > { %v6217_v21 = vunpack.i.h.bf16 %v6215_v8  ;;  %v6216_v3 = vunpack.i.l.bf16 %v6215_v8  ;;  %v6227_v30 = vunpack.i.h.bf16 %v8407_v11  ;;  %v6226_v19 = vunpack.i.l.bf16 %v8407_v11 }
 0x442   : > { %v2024_v42 = vrot.slane %v6217_v21, 4  ;;  %v2027_v39 = vsel %vm1316_vm13, %v6217_v21, %v2026_v7  ;;  %v1968_v15 = vrot.slane %v6216_v3, 4  ;;  %v1971_v54 = vsel %vm1316_vm13, %v6216_v3, %v1970_v50 }
 0x443   : > { %v2035_v27 = vperm.slane %v2027_v39, %v7600_v32  ;;  %v1979_v34 = vperm.slane %v1971_v54, %v7600_v32  ;;  %v1900_v18 = vrot.slane %v6227_v30, 4  ;;  %v1903_v16 = vsel %vm1316_vm13, %v6227_v30, %v1902_v35 }
 0x444   : > { %v2025_v1 = vsel %vm1316_vm13, %v2024_v42, %v6207_v14  ;;  %v1969_v28 = vsel %vm1316_vm13, %v1968_v15, %v6206_v26  ;;  %3096 = vadd.xlane.f32.xlu1 %v3095_v63  ;;  %v1844_v14 = vrot.slane %v6226_v19, 4  ;;  %v8450_v63 = vpop.eup %6307 }
 0x445   : > { %v2031_v13 = vperm.slane %v2025_v1, %v7600_v32  ;;  %v2048_v53 = vrot.slane %v2035_v27, 4  ;;  %v2051_v10 = vsel %vm1316_vm13, %v2035_v27, %v2050_v20  ;;  %v1975_v58 = vperm.slane %v1969_v28, %v7600_v32 }
 0x446   : > { %v2059_v47 = vperm.slane %v2051_v10, %v7621_v29  ;;  %v1992_v7 = vrot.slane %v1979_v34, 4  ;;  %v1995_v50 = vsel %vm1316_vm13, %v1979_v34, %v1994_v4 }
 0x447   : > { %v2036_v26 = vrot.slane %v2031_v13, 4  ;;  %v2039_v9 = vsel %vm1316_vm13, %v2031_v13, %v2038_v51  ;;  %v2049_v35 = vsel %vm1316_vm13, %v2048_v53, %v2023_v0  ;;  %v1980_v8 = vrot.slane %v1975_v58, 4 }
 0x448   : > { %v2047_v21 = vperm.slane %v2039_v9, %v7621_v29  ;;  %v2055_v20 = vperm.slane %v2049_v35, %v7621_v29  ;;  %v2066_v3 = vrot.slane %v2059_v47, 4  ;;  %v1983_v30 = vsel %vm1316_vm13, %v1975_v58, %v1982_v57 }
 0x449   : > { %v2037_v4 = vsel %vm1316_vm13, %v2036_v26, %v8376_v48  ;;  %v1981_v42 = vsel %vm1316_vm13, %v1980_v8, %v8380_v44  ;;  %v1991_v51 = vperm.slane %v1983_v30, %v7621_v29  ;;  %v1993_v0 = vsel %vm1316_vm13, %v1992_v7, %v8383_v45 }
 0x44a   : > { %v2043_v39 = vperm.slane %v2037_v4, %v7621_v29  ;;  %v2062_v15 = vrot.slane %v2047_v21, 4  ;;  %v2064_v54 = vrot.slane %v2055_v20, 4  ;;  %v2067_v27 = vsel %vm1316_vm13, 0.0, %v2066_v3 }
 0x44b   : > { %v2705_v57 = vsel %vm1316_vm13, %v2066_v3, %v2055_v20  ;;  %v2710_v34 = vrot.slane %v2067_v27, 4  ;;  %v1987_v1 = vperm.slane %v1981_v42, %v7621_v29  ;;  %v1999_v48 = vperm.slane %v1993_v0, %v7621_v29 }
 0x44c   : > { %v2060_v28 = vrot.slane %v2043_v39, 4  ;;  %v2063_v44 = vsel %vm1316_vm13, 0.0, %v2062_v15  ;;  %v2065_v13 = vsel %vm1316_vm13, 0.0, %v2064_v54  ;;  %v2694_v45 = vsel %vm1316_vm13, %v2062_v15, %v2043_v39  ;;  %3111 = vadd.xlane.f32.xlu1 %v3110_v12 }
 0x44d   : > { %v8468_v53 = vperm.slane %v2705_v57, %v7600_v32  ;;  %v2711_v10 = vsel %vm1316_vm13, %v2710_v34, %v2065_v13  ;;  %v1901_v58 = vsel %vm1316_vm13, %v1900_v18, %v7563_v5  ;;  %v8474_v47 = vperm.slane %v1903_v16, %v7600_v32  ;;  %v2989_v0 = vpop.xlane.xlu0 %2988 }
 0x44e   : > { %v2698_v7 = vperm.slane %v2694_v45, %v7600_v32  ;;  %v2699_v26 = vrot.slane %v2063_v44, 4  ;;  %v2003_v9 = vperm.slane %v1995_v50, %v7621_v29  ;;  %v2004_v35 = vrot.slane %v1987_v1, 4 }
 0x44f   : > { %v2061_v8 = vsel %vm1316_vm13, 0.0, %v2060_v28  ;;  %v8480_v12 = vperm.slane %v2711_v10, %v7600_v32  ;;  %v2006_v21 = vrot.slane %v1991_v51, 4  ;;  %v2008_v20 = vrot.slane %v1999_v48, 4 }
 0x450   : > { %v2730_v3 = vrot.slane %v8468_v53, 4  ;;  %v2010_v30 = vrot.slane %v2003_v9, 4  ;;  %v8484_v5 = vperm.slane %v1901_v58, %v7600_v32  ;;  %v1845_v18 = vsel %vm1316_vm13, %v1844_v14, %v7546_v62 }
 0x451   : > { %v2005_v16 = vsel %vm1316_vm13, 0.0, %v2004_v35  ;;  %v2007_v50 = vsel %vm1316_vm13, 0.0, %v2006_v21  ;;  %v2009_v4 = vsel %vm1316_vm13, 0.0, %v2008_v20  ;;  %v2640_v42 = vsel %vm1316_vm13, %v2006_v21, %v1987_v1 }
 0x452   : > { %v2011_v51 = vsel %vm1316_vm13, 0.0, %v2010_v30  ;;  %v2644_v39 = vperm.slane %v2640_v42, %v7600_v32  ;;  %v2645_v15 = vrot.slane %v2007_v50, 4  ;;  %v2651_v54 = vsel %vm1316_vm13, %v2010_v30, %v1999_v48 }
 0x453   : > { %v2655_v27 = vperm.slane %v2651_v54, %v7600_v32  ;;  %v2656_v57 = vrot.slane %v2011_v51, 4  ;;  %v1847_v14 = vsel %vm1316_vm13, %v6226_v19, %v1846_v56  ;;  %v8502_v34 = vperm.slane %v1845_v18, %v7600_v32 }
 0x454   : > { %v1938_v1 = vrot.slane %v8474_v47, 4  ;;  %v3086_v28 = vsel %vm2784_vm14, %v8450_v63, 0.0  ;;  %v3023_v44 = vsub.f32 %v8300_v49, %v2989_v0  ;;  %v2646_v48 = vsel %vm1316_vm13, %v2645_v15, %v2005_v16 }
 0x455   : > { %v2657_v13 = vsel %vm1316_vm13, %v2656_v57, %v2009_v4  ;;  %v2676_v45 = vrot.slane %v2655_v27, 4  ;;  %v8511_v62 = vperm.slane %v1847_v14, %v7600_v32  ;;  %3087 = vadd.xlane.f32.xlu0 %v3086_v28  ;;  %v2650_v56 = vperm.slane %v2646_v48, %v7600_v32 }
 0x456   : > { %v2661_v11 = vperm.slane %v2657_v13, %v7600_v32  ;;  %v1870_v19 = vrot.slane %v8502_v34, 4  ;;  %v3045_v10 = vmul.f32 1.442695, %v3023_v44  ;;  %v2664_v58 = vrot.slane %v2644_v39, 4 }
 0x457   : > { %v2700_v9 = vsel %vm1316_vm13, %v2699_v26, %v2061_v8  ;;  %v2718_v49 = vrot.slane %v2698_v7, 4  ;;  %v2731_v35 = vsel %vm1316_vm13, %v8480_v12, %v2730_v3  ;;  %v2662_v21 = vrot.slane %v2650_v56, 4 }
 0x458   : > { %6309 = vpow2.f32 %v3045_v10  ;;  %v2665_v20 = vsel %vm1316_vm13, %v2650_v56, %v2664_v58  ;;  %v2677_v30 = vsel %vm1316_vm13, %v2661_v11, %v2676_v45  ;;  %v2704_v18 = vperm.slane %v2700_v9, %v7600_v32 }
 0x459   : > { %v2673_v16 = vperm.slane %v2665_v20, %v7621_v29  ;;  %v2685_v50 = vperm.slane %v2677_v30, %v7621_v29  ;;  %v2739_v4 = vperm.slane %v2731_v35, %v7621_v29  ;;  %v2663_v26 = vsel %vm1316_vm13, %v2662_v21, %v2644_v39 }
 0x45a   : > { %v2719_v8 = vsel %vm1316_vm13, %v2704_v18, %v2718_v49  ;;  %v2669_v3 = vperm.slane %v2663_v26, %v7621_v29  ;;  %v2674_v42 = vrot.slane %v2661_v11, 4  ;;  %v2716_v0 = vrot.slane %v2704_v18, 4 }
 0x45b   : > { %v2690_v51 = vrot.slane %v2685_v50, 4  ;;  %v2727_v15 = vperm.slane %v2719_v8, %v7621_v29  ;;  %v2744_v54 = vrot.slane %v2739_v4, 4  ;;  %v2728_v57 = vrot.slane %v8480_v12, 4 }
 0x45c   : > { %v2675_v14 = vsel %vm1316_vm13, %v2674_v42, %v2655_v27  ;;  %v2688_v28 = vrot.slane %v2669_v3, 4  ;;  %v2717_v44 = vsel %vm1316_vm13, %v2716_v0, %v2698_v7  ;;  %v2692_v48 = vrot.slane %v2673_v16, 4 }
 0x45d   : > { %3108 = vadd.xlane.f32.xlu0 %v8411_v52  ;;  %v2691_v39 = vsel %vm1316_vm13, %v2690_v51, %v2673_v16  ;;  %v2745_v13 = vsel %vm1316_vm13, %v2744_v54, %v2727_v15  ;;  %v2681_v45 = vperm.slane %v2675_v14, %v7621_v29  ;;  %v2723_v56 = vperm.slane %v2717_v44, %v7621_v29 }
 0x45e   : > { %v8537_v11 = vpop.eup %6309  ;;  %v2758_v10 = vpack.c.bf16 %v2691_v39, %v2691_v39  ;;  %v2759_v12 = vpack.c.bf16 %v2745_v13, %v2745_v13  ;;  %v2729_v27 = vsel %vm1316_vm13, %v2728_v57, %v8468_v53  ;;  %v2693_v7 = vsel %vm1316_vm13, %v2685_v50, %v2692_v48 }
 0x45f   : > { %v3083_v52 = vsel %vm2784_vm14, %v8537_v11, 0.0  ;;  %v2686_v58 = vrot.slane %v2681_v45, 4  ;;  %v2735_v9 = vperm.slane %v2729_v27, %v7621_v29  ;;  %v2742_v49 = vrot.slane %v2723_v56, 4 }
 0x460   : > { %v3271_v35 = vunpack.c.l.b16 %v2758_v10  ;;  %v3272_v21 = vunpack.c.l.b16 %v2759_v12  ;;  %3084 = vadd.xlane.f32.xlu2 %v3083_v52  ;;  %v2746_v20 = vrot.slane %v2727_v15, 4  ;;  %v2762_v30 = vpack.c.bf16 %v2693_v7, %v2693_v7  ;;  %v6230_v50 = vpop.permute.xlu0 %6229 }
 0x461   : > { %v2687_v18 = vsel %vm1316_vm13, %v2686_v58, %v2669_v3  ;;  %v2740_v16 = vrot.slane %v2735_v9, 4  ;;  %v2689_v26 = vsel %vm1316_vm13, %v2681_v45, %v2688_v28  ;;  %v2743_v53 = vsel %vm1316_vm13, %v2735_v9, %v2742_v49 }
 0x462   : > { %v3274_v8 = vpack.c.b16 %v3272_v21, %v3271_v35  ;;  %v2750_v42 = vpack.c.bf16 %v2687_v18, %v2687_v18  ;;  %v2747_v0 = vsel %vm1316_vm13, %v2739_v4, %v2746_v20  ;;  %v3318_v51 = vunpack.c.l.b16 %v2762_v30 }
 0x463   : > { %v2741_v54 = vsel %vm1316_vm13, %v2740_v16, %v2723_v56  ;;  %v2763_v57 = vpack.c.bf16 %v2747_v0, %v2747_v0  ;;  %v2754_v14 = vpack.c.bf16 %v2689_v26, %v2689_v26  ;;  %v2755_v44 = vpack.c.bf16 %v2743_v53, %v2743_v53 }
 0x464   : > { %3289 = vmatpush.bf16.msra.mxu0 %v3274_v8  ;;  %v2751_v15 = vpack.c.bf16 %v2741_v54, %v2741_v54  ;;  %v3177_v48 = vunpack.c.l.b16 %v2750_v42  ;;  %v6232_v3 = vunpack.i.h.bf16 %v6230_v50  ;;  %v6231_v39 = vunpack.i.l.bf16 %v6230_v50 }
 0x465   : > { %v1882_v28 = vrot.slane %v8511_v62, 4  ;;  %v3319_v13 = vunpack.c.l.b16 %v2763_v57  ;;  %v3224_v45 = vunpack.c.l.b16 %v2754_v14  ;;  %v3225_v10 = vunpack.c.l.b16 %v2755_v44 }
 0x466   : > { %v3178_v12 = vunpack.c.l.b16 %v2751_v15  ;;  %v1912_v27 = vrot.slane %v6232_v3, 4  ;;  %v1915_v4 = vsel %vm1316_vm13, %v6232_v3, %v8418_v6  ;;  %v1856_v7 = vrot.slane %v6231_v39, 4 }
 0x467   : > { %v3321_v56 = vpack.c.b16 %v3319_v13, %v3318_v51  ;;  %v3227_v52 = vpack.c.b16 %v3225_v10, %v3224_v45  ;;  %v1923_v58 = vperm.slane %v1915_v4, %v7600_v32  ;;  %v1859_v9 = vsel %vm1316_vm13, %v6231_v39, %v8431_v59 }
 0x468   : > { %v3180_v49 = vpack.c.b16 %v3178_v12, %v3177_v48  ;;  %v1913_v35 = vsel %vm1316_vm13, %v1912_v27, %v6222_v60  ;;  %v1857_v21 = vsel %vm1316_vm13, %v1856_v7, %v6221_v36  ;;  %v1867_v20 = vperm.slane %v1859_v9, %v7600_v32  ;;  %3099 = vadd.xlane.f32.xlu2 %v8425_v17 }
 0x469   : > { %3336 = vmatpush.bf16.msra.mxu1 %v3321_v56  ;;  %3242 = vmatpush.bf16.msra.mxu3 %v3227_v52  ;;  %v1919_v6 = vperm.slane %v1913_v35, %v7600_v32  ;;  %v1936_v30 = vrot.slane %v1923_v58, 4  ;;  %v1863_v59 = vperm.slane %v1857_v21, %v7600_v32  ;;  %v1939_v18 = vsel %vm1316_vm13, %v1923_v58, %v1938_v1 }
 0x46a   : > { %v1926_v60 = vrot.slane %v8484_v5, 4  ;;  %3195 = vmatpush.bf16.msrb.mxu2 %v3180_v49  ;;  %v1880_v55 = vrot.slane %v1867_v20, 4  ;;  %v1883_v36 = vsel %vm1316_vm13, %v1867_v20, %v1882_v28  ;;  %v1947_v16 = vperm.slane %v1939_v18, %v7621_v29 }
 0x46b   : > { %v1924_v17 = vrot.slane %v1919_v6, 4  ;;  %v1868_v26 = vrot.slane %v1863_v59, 4  ;;  %v1871_v53 = vsel %vm1316_vm13, %v1863_v59, %v1870_v19  ;;  %v1891_v50 = vperm.slane %v1883_v36, %v7621_v29 }
 0x46c   : > { %v1879_v8 = vperm.slane %v1871_v53, %v7621_v29  ;;  %v1881_v1 = vsel %vm1316_vm13, %v1880_v55, %v8511_v62  ;;  %v1927_v42 = vsel %vm1316_vm13, %v1919_v6, %v1926_v60  ;;  %v1937_v0 = vsel %vm1316_vm13, %v1936_v30, %v8474_v47 }
 0x46d   : > { %v1869_v51 = vsel %vm1316_vm13, %v1868_v26, %v8502_v34  ;;  %v1887_v54 = vperm.slane %v1881_v1, %v7621_v29  ;;  %v1898_v57 = vrot.slane %v1891_v50, 4  ;;  %v1925_v19 = vsel %vm1316_vm13, %v1924_v17, %v8484_v5 }
 0x46e   : > { %v1875_v14 = vperm.slane %v1869_v51, %v7621_v29  ;;  %v1894_v44 = vrot.slane %v1879_v8, 4  ;;  %v1931_v15 = vperm.slane %v1925_v19, %v7621_v29  ;;  %v1935_v62 = vperm.slane %v1927_v42, %v7621_v29 }
 0x46f   : > { %v1896_v48 = vrot.slane %v1887_v54, 4  ;;  %v1899_v3 = vsel %vm1316_vm13, 0.0, %v1898_v57  ;;  %v1943_v47 = vperm.slane %v1937_v0, %v7621_v29  ;;  %v1954_v39 = vrot.slane %v1947_v16, 4 }
 0x470   : > { %v1892_v34 = vrot.slane %v1875_v14, 4  ;;  %v1895_v28 = vsel %vm1316_vm13, 0.0, %v1894_v44  ;;  %v1948_v13 = vrot.slane %v1931_v15, 4  ;;  %v1950_v45 = vrot.slane %v1935_v62, 4 }
 0x471   : > { %v1897_v5 = vsel %vm1316_vm13, 0.0, %v1896_v48  ;;  %v1952_v10 = vrot.slane %v1943_v47, 4  ;;  %v1955_v12 = vsel %vm1316_vm13, 0.0, %v1954_v39  ;;  %v2537_v27 = vrot.slane %v1895_v28, 4 }
 0x472   : > { %v1951_v4 = vsel %vm1316_vm13, 0.0, %v1950_v45  ;;  %v2543_v7 = vsel %vm1316_vm13, %v1898_v57, %v1887_v54  ;;  %v2548_v56 = vrot.slane %v1899_v3, 4  ;;  %v2597_v52 = vsel %vm1316_vm13, %v1954_v39, %v1943_v47 }
 0x473   : > { %v1953_v58 = vsel %vm1316_vm13, 0.0, %v1952_v10  ;;  %v2547_v9 = vperm.slane %v2543_v7, %v7600_v32  ;;  %v2591_v49 = vrot.slane %v1951_v4, 4  ;;  %v2601_v35 = vperm.slane %v2597_v52, %v7600_v32 }
 0x474   : > { %v2602_v21 = vrot.slane %v1955_v12, 4  ;;  %v1893_v20 = vsel %vm1316_vm13, 0.0, %v1892_v34  ;;  %v1949_v6 = vsel %vm1316_vm13, 0.0, %v1948_v13  ;;  %v2532_v30 = vsel %vm1316_vm13, %v1894_v44, %v1875_v14 }
 0x475   : > { %v8604_v59 = vpop.xlane.xlu1 %3102  ;;  %v2536_v18 = vperm.slane %v2532_v30, %v7600_v32  ;;  %v2538_v60 = vsel %vm1316_vm13, %v2537_v27, %v1893_v20  ;;  %v2549_v55 = vsel %vm1316_vm13, %v2548_v56, %v1897_v5  ;;  %v2568_v36 = vrot.slane %v2547_v9, 4 }
 0x476   : > { %v2542_v16 = vperm.slane %v2538_v60, %v7600_v32  ;;  %v2553_v17 = vperm.slane %v2549_v55, %v7600_v32  ;;  %v2586_v26 = vsel %vm1316_vm13, %v1950_v45, %v1931_v15  ;;  %v2592_v8 = vsel %vm1316_vm13, %v2591_v49, %v1949_v6 }
 0x477   : > { %v2556_v53 = vrot.slane %v2536_v18, 4  ;;  %v2590_v50 = vperm.slane %v2586_v26, %v7600_v32  ;;  %v2603_v1 = vsel %vm1316_vm13, %v2602_v21, %v1953_v58  ;;  %v2596_v0 = vperm.slane %v2592_v8, %v7600_v32 }
 0x478   : > { %v2569_v42 = vsel %vm1316_vm13, %v2553_v17, %v2568_v36  ;;  %v2607_v51 = vperm.slane %v2603_v1, %v7600_v32  ;;  %v2622_v54 = vrot.slane %v2601_v35, 4  ;;  %v2554_v62 = vrot.slane %v2542_v16, 4  ;;  %v3091_v58 = vpop.xlane.xlu2 %3090 }
 0x479   : > { %v2557_v57 = vsel %vm1316_vm13, %v2542_v16, %v2556_v53  ;;  %v2577_v19 = vperm.slane %v2569_v42, %v7621_v29  ;;  %v2610_v14 = vrot.slane %v2590_v50, 4  ;;  %v2566_v48 = vrot.slane %v2553_v17, 4 }
 0x47a   : > { %v2565_v44 = vperm.slane %v2557_v57, %v7621_v29  ;;  %v2623_v15 = vsel %vm1316_vm13, %v2607_v51, %v2622_v54  ;;  %v2608_v34 = vrot.slane %v2596_v0, 4  ;;  %v2555_v13 = vsel %vm1316_vm13, %v2554_v62, %v2536_v18 }
 0x47b   : > { %v2582_v3 = vrot.slane %v2577_v19, 4  ;;  %v2611_v47 = vsel %vm1316_vm13, %v2596_v0, %v2610_v14  ;;  %v2631_v39 = vperm.slane %v2623_v15, %v7621_v29  ;;  %v2567_v45 = vsel %vm1316_vm13, %v2566_v48, %v2547_v9 }
 0x47c   : > { %v2619_v28 = vperm.slane %v2611_v47, %v7621_v29  ;;  %v2620_v5 = vrot.slane %v2607_v51, 4  ;;  %v2561_v27 = vperm.slane %v2555_v13, %v7621_v29  ;;  %v2573_v7 = vperm.slane %v2567_v45, %v7621_v29 }
 0x47d   : > { %v2583_v10 = vsel %vm1316_vm13, %v2582_v3, %v2565_v44  ;;  %v2636_v12 = vrot.slane %v2631_v39, 4  ;;  %v2609_v56 = vsel %vm1316_vm13, %v2608_v34, %v2590_v50  ;;  %v2584_v16 = vrot.slane %v2565_v44, 4 }
 0x47e   : > { %v2756_v4 = vpack.c.bf16 %v2583_v10, %v2583_v10  ;;  %v2621_v52 = vsel %vm1316_vm13, %v2620_v5, %v2601_v35  ;;  %v2580_v20 = vrot.slane %v2561_v27, 4  ;;  %v2615_v9 = vperm.slane %v2609_v56, %v7621_v29 }
 0x47f   : > { %v2637_v49 = vsel %vm1316_vm13, %v2636_v12, %v2619_v28  ;;  %v3067_v21 = vpop.xlane.xlu1 %3066  ;;  %v2578_v18 = vrot.slane %v2573_v7, 4  ;;  %v2627_v60 = vperm.slane %v2621_v52, %v7621_v29  ;;  %v2638_v17 = vrot.slane %v2619_v28, 4 }
 0x480   : > { %v2757_v6 = vpack.c.bf16 %v2637_v49, %v2637_v49  ;;  %v3269_v30 = vunpack.c.l.b16 %v2756_v4  ;;  %v2634_v55 = vrot.slane %v2615_v9, 4  ;;  %6311 = vrcp.f32 %v3067_v21 }
 0x481   : > { %v2579_v26 = vsel %vm1316_vm13, %v2578_v18, %v2561_v27  ;;  %v2632_v35 = vrot.slane %v2627_v60, 4  ;;  %v2581_v53 = vsel %vm1316_vm13, %v2573_v7, %v2580_v20  ;;  %6313 = vrcp.f32 %v3091_v58 }
 0x482   : > { %v3270_v36 = vunpack.c.l.b16 %v2757_v6  ;;  %v2635_v50 = vsel %vm1316_vm13, %v2627_v60, %v2634_v55  ;;  %v2748_v1 = vpack.c.bf16 %v2579_v26, %v2579_v26  ;;  %v2585_v42 = vsel %vm1316_vm13, %v2577_v19, %v2584_v16 }
 0x483   : > { %v2633_v0 = vsel %vm1316_vm13, %v2632_v35, %v2615_v9  ;;  %v2639_v51 = vsel %vm1316_vm13, %v2631_v39, %v2638_v17  ;;  %v2760_v54 = vpack.c.bf16 %v2585_v42, %v2585_v42  ;;  %v2752_v57 = vpack.c.bf16 %v2581_v53, %v2581_v53 }
 0x484   : > { %v3273_v8 = vpack.c.b16 %v3270_v36, %v3269_v30  ;;  %v2749_v14 = vpack.c.bf16 %v2633_v0, %v2633_v0  ;;  %v3175_v44 = vunpack.c.l.b16 %v2748_v1  ;;  %v2761_v15 = vpack.c.bf16 %v2639_v51, %v2639_v51 }
 0x485   : > { %v2753_v62 = vpack.c.bf16 %v2635_v50, %v2635_v50  ;;  %v3316_v48 = vunpack.c.l.b16 %v2760_v54  ;;  %v3222_v3 = vunpack.c.l.b16 %v2752_v57 }
 0x486   : > { %3290 = vmatpush.bf16.msra.mxu0 %v3273_v8  ;;  %v6312_v34 = vpop.eup %6311  ;;  %v3176_v28 = vunpack.c.l.b16 %v2749_v14  ;;  %v3317_v13 = vunpack.c.l.b16 %v2761_v15 }
 0x487   : > { %v3070_v47 = vpop.xlane.xlu2 %3069  ;;  %v3223_v45 = vunpack.c.l.b16 %v2753_v62  ;;  %v6314_v19 = vpop.eup %6313  ;;  %v3129_v12 = vmul.f32 %v6312_v34, %v8326_v61 }
 0x488   : > { %6315 = vrcp.f32 %v3070_v47  ;;  %v3179_v5 = vpack.c.b16 %v3176_v28, %v3175_v44  ;;  %v3320_v39 = vpack.c.b16 %v3317_v13, %v3316_v48  ;;  %v3137_v56 = vmul.f32 %v6314_v19, %v8316_v22 }
 0x489   : > { %6317 = vrcp.f32 %v8604_v59  ;;  %v3226_v10 = vpack.c.b16 %v3223_v45, %v3222_v3  ;;  %v3145_v52 = vpack.c.bf16 %v3129_v12, %v3129_v12 }
 0x48a   : > { %3196 = vmatpush.bf16.msrb.mxu2 %v3179_v5  ;;  %3337 = vmatpush.bf16.msra.mxu1 %v3320_v39  ;;  %v3153_v9 = vpack.c.bf16 %v3137_v56, %v3137_v56 }
 0x48b   : > { %v3094_v27 = vpop.xlane.xlu0 %3093  ;;  %3243 = vmatpush.bf16.msra.mxu3 %v3226_v10  ;;  %v3165_v61 = vunpack.c.l.b16 %v3145_v52 }
 0x48c   : > { %6319 = vrcp.f32 %v3094_v27  ;;  %v3259_v36 = vunpack.c.l.b16 %v3153_v9 }
 0x48e   : > { %v6316_v4 = vpop.eup %6315 }
 0x48f   : > { %v6318_v7 = vpop.eup %6317  ;;  %v3130_v58 = vmul.f32 %v6316_v4, %v8331_v25  ;;  %v3106_v49 = vpop.xlane.xlu2 %3105 }
 0x490   : > { %6321 = vrcp.f32 %v3106_v49  ;;  %v3141_v20 = vmul.f32 %v6318_v7, %v8318_v24 }
 0x491   : > { %v3146_v59 = vpack.c.bf16 %v3130_v58, %v3130_v58 }
 0x492   : > { %v6320_v21 = vpop.eup %6319  ;;  %v3157_v16 = vpack.c.bf16 %v3141_v20, %v3141_v20 }
 0x493   : > { %v3166_v6 = vunpack.c.l.b16 %v3146_v59  ;;  %v3138_v30 = vmul.f32 %v6320_v21, %v8335_v23 }
 0x494   : > { %v3306_v35 = vunpack.c.l.b16 %v3157_v16 }
 0x495   : > { %v3154_v18 = vpack.c.bf16 %v3138_v30, %v3138_v30  ;;  %v3169_v60 = vpack.c.b16 %v3166_v6, %v3165_v61 }
 0x496   : > { %v6322_v55 = vpop.eup %6321 }
 0x497   : > { %v3260_v22 = vunpack.c.l.b16 %v3154_v18  ;;  %v3142_v17 = vmul.f32 %v6322_v55, %v8339_v40  ;;  %5573 = vmatmul.msk.bf16.vlgmr.msrb.gmra.mxu2 %vm2784_vm14, %v3169_v60 }
 0x499   : > { %v3263_v25 = vpack.c.b16 %v3260_v22, %v3259_v36  ;;  %v3158_v26 = vpack.c.bf16 %v3142_v17, %v3142_v17 }
 0x49b   : > { %v3307_v53 = vunpack.c.l.b16 %v3158_v26  ;;  %5577 = vmatmul.msk.bf16.vlgmr.msra.gmra.mxu0 %vm2784_vm14, %v3263_v25 }
 0x49d   : > { %v3310_v24 = vpack.c.b16 %v3307_v53, %v3306_v35 }
 0x49f   : > { %v3079_v50 = vpop.xlane.xlu0 %3078  ;;  %5579 = vmatmul.msk.bf16.vlgmr.msra.gmra.mxu1 %vm2784_vm14, %v3310_v24 }
 0x4a0   : > { %6323 = vrcp.f32 %v3079_v50 }
 0x4a6   : > { %v6324_v1 = vpop.eup %6323 }
 0x4a7   : > { %v3082_v23 = vpop.xlane.xlu1 %3081  ;;  %v3073_v8 = vpop.xlane.xlu0 %3072  ;;  %v3133_v40 = vmul.f32 %v6324_v1, %v8346_v33 }
 0x4a8   : > { %6325 = vrcp.f32 %v3082_v23 }
 0x4a9   : > { %6327 = vrcp.f32 %v3073_v8  ;;  %v3149_v0 = vpack.c.bf16 %v3133_v40, %v3133_v40 }
 0x4ab   : > { %v3212_v44 = vunpack.c.l.b16 %v3149_v0 }
 0x4ae   : > { %v6326_v42 = vpop.eup %6325 }
 0x4af   : > { %v3134_v51 = vmul.f32 %v6326_v42, %v8359_v38  ;;  %v3076_v54 = vpop.xlane.xlu1 %3075  ;;  %v6328_v57 = vpop.eup %6327 }
 0x4b0   : > { %6329 = vrcp.f32 %v3076_v54  ;;  %v3131_v62 = vmul.f32 %v6328_v57, %v8356_v46 }
 0x4b1   : > { %v3150_v14 = vpack.c.bf16 %v3134_v51, %v3134_v51 }
 0x4b2   : > { %v3147_v34 = vpack.c.bf16 %v3131_v62, %v3131_v62 }
 0x4b3   : > { %v3213_v15 = vunpack.c.l.b16 %v3150_v14 }
 0x4b4   : > { %v3167_v28 = vunpack.c.l.b16 %v3147_v34 }
 0x4b5   : > { %v3216_v48 = vpack.c.b16 %v3213_v15, %v3212_v44 }
 0x4b6   : > { %v6330_v3 = vpop.eup %6329 }
 0x4b7   : > { %5575 = vmatmul.msk.bf16.vlgmr.msra.gmra.mxu3 %vm2784_vm14, %v3216_v48  ;;  %v3132_v47 = vmul.f32 %v6330_v3, %v8373_v37  ;;  %v3097_v45 = vpop.xlane.xlu1 %3096 }
 0x4b9   : > { %v3148_v33 = vpack.c.bf16 %v3132_v47, %v3132_v47 }
 0x4bb   : > { %v3168_v13 = vunpack.c.l.b16 %v3148_v33 }
 0x4bd   : > { %v3170_v38 = vpack.c.b16 %v3168_v13, %v3167_v28 }
 0x4bf   : > { %5574 = vmatmul.msk.bf16.gmra.mxu2 %vm2784_vm14, %v3170_v38  ;;  %v3112_v19 = vpop.xlane.xlu1 %3111 }
 0x4c0   : > { %6331 = vrcp.f32 %v3112_v19 }
 0x4c6   : > { %v6332_v39 = vpop.eup %6331 }
 0x4c7   : > { %v3144_v10 = vmul.f32 %v6332_v39, %v8402_v2 }
 0x4c8   : > { %v3088_v5 = vpop.xlane.xlu0 %3087 }
 0x4c9   : > { %6333 = vrcp.f32 %v3088_v5  ;;  %v3160_v37 = vpack.c.bf16 %v3144_v10, %v3144_v10 }
 0x4cb   : > { %v3309_v49 = vunpack.c.l.b16 %v3160_v37 }
 0x4cf   : > { %v6334_v27 = vpop.eup %6333 }
 0x4d0   : > { %v3109_v46 = vpop.xlane.xlu0 %3108  ;;  %v3136_v7 = vmul.f32 %v6334_v27, %v8450_v63 }
 0x4d1   : > { %6335 = vrcp.f32 %v3109_v46 }
 0x4d2   : > { %v3152_v20 = vpack.c.bf16 %v3136_v7, %v3136_v7 }
 0x4d3   : > { %v3085_v12 = vpop.xlane.xlu2 %3084 }
 0x4d4   : > { %6337 = vrcp.f32 %v3085_v12  ;;  %v3215_v18 = vunpack.c.l.b16 %v3152_v20 }
 0x4d5   : > { %6339 = vrcp.f32 %v3097_v45 }
 0x4d7   : > { %v6336_v4 = vpop.eup %6335 }
 0x4d8   : > { %v3143_v56 = vmul.f32 %v6336_v4, %v8388_v43 }
 0x4da   : > { %v6338_v52 = vpop.eup %6337  ;;  %v3159_v58 = vpack.c.bf16 %v3143_v56, %v3143_v56 }
 0x4db   : > { %v3100_v59 = vpop.xlane.xlu2 %3099  ;;  %v3135_v21 = vmul.f32 %v6338_v52, %v8537_v11  ;;  %v6340_v9 = vpop.eup %6339 }
 0x4dc   : > { %v3308_v61 = vunpack.c.l.b16 %v3159_v58  ;;  %6341 = vrcp.f32 %v3100_v59  ;;  %v3139_v60 = vmul.f32 %v6340_v9, %v8394_v31 }
 0x4dd   : > { %v3151_v2 = vpack.c.bf16 %v3135_v21, %v3135_v21 }
 0x4de   : > { %v3311_v6 = vpack.c.b16 %v3309_v49, %v3308_v61  ;;  %v3155_v36 = vpack.c.bf16 %v3139_v60, %v3139_v60 }
 0x4df   : > { %v3214_v30 = vunpack.c.l.b16 %v3151_v2 }
 0x4e0   : > { %5580 = vmatmul.msk.bf16.gmra.mxu1 %vm2784_vm14, %v3311_v6  ;;  %v3261_v16 = vunpack.c.l.b16 %v3155_v36 }
 0x4e1   : > { %v3217_v63 = vpack.c.b16 %v3215_v18, %v3214_v30 }
 0x4e2   : > { %v6342_v43 = vpop.eup %6341 }
 0x4e3   : > { %5576 = vmatmul.msk.bf16.gmra.mxu3 %vm2784_vm14, %v3217_v63  ;;  %v3140_v55 = vmul.f32 %v6342_v43, %v8396_v41 }
 0x4e5   : > { %v3156_v11 = vpack.c.bf16 %v3140_v55, %v3140_v55 }
 0x4e7   : > { %v3262_v22 = vunpack.c.l.b16 %v3156_v11 }
 0x4e9   : > { %v3264_v17 = vpack.c.b16 %v3262_v22, %v3261_v16 }
 0x4eb   : > { %5578 = vmatmul.msk.bf16.gmra.mxu0 %vm2784_vm14, %v3264_v17 }
 0x518   : > { %v3292_v25 = vpop.f32.mrf.mxu0 }
 0x519   : > { %v3349_v35 = vrot.slane %v3292_v25, 4 }
 0x51a   : > { %v3198_v26 = vpop.f32.mrf.mxu2 }
 0x51b   : > { %v3351_v53 = vrot.slane %v3198_v26, 4  ;;  %v3350_v31 = vsel %vm1316_vm13, %v3349_v35, %v3198_v26 }
 0x51c   : > { %v3339_v24 = vpop.f32.mrf.mxu1  ;;  %v3356_v8 = vperm.slane %v3350_v31, %v7600_v32 }
 0x51d   : > { %v3352_v23 = vsel %vm1316_vm13, %v3292_v25, %v3351_v53  ;;  %v3361_v1 = vrot.slane %v3339_v24, 4 }
 0x51e   : > { %v3360_v42 = vperm.slane %v3352_v23, %v7600_v32  ;;  %v3375_v14 = vrot.slane %v3356_v8, 4 }
 0x520   : > { %v3294_v50 = vpop.f32.mrf.mxu0  ;;  %v3387_v48 = vrot.slane %v3360_v42, 4 }
 0x521   : > { %v3405_v40 = vrot.slane %v3294_v50, 4 }
 0x522   : > { %v3200_v41 = vpop.f32.mrf.mxu2 }
 0x523   : > { %v3407_v51 = vrot.slane %v3200_v41, 4  ;;  %v3406_v15 = vsel %vm1316_vm13, %v3405_v40, %v3200_v41 }
 0x524   : > { %v3341_v28 = vpop.f32.mrf.mxu1  ;;  %v3412_v45 = vperm.slane %v3406_v15, %v7600_v32 }
 0x525   : > { %v3408_v33 = vsel %vm1316_vm13, %v3294_v50, %v3407_v51  ;;  %v3417_v27 = vrot.slane %v3341_v28, 4 }
 0x526   : > { %v3416_v12 = vperm.slane %v3408_v33, %v7600_v32  ;;  %v3431_v49 = vrot.slane %v3412_v45, 4 }
 0x528   : > { %v3443_v43 = vrot.slane %v3416_v12, 4 }
 0x53a   : > { %v3245_v0 = vpop.f32.mrf.mxu3 }
 0x53b   : > { %v3362_v54 = vsel %vm1316_vm13, %v3361_v1, %v3245_v0  ;;  %v3363_v57 = vrot.slane %v3245_v0, 4 }
 0x53c   : > { %v3368_v44 = vperm.slane %v3362_v54, %v7600_v32 }
 0x53d   : > { %v3364_v62 = vsel %vm1316_vm13, %v3339_v24, %v3363_v57 }
 0x53e   : > { %v3372_v3 = vperm.slane %v3364_v62, %v7600_v32  ;;  %v3373_v47 = vrot.slane %v3368_v44, 4  ;;  %v3376_v34 = vsel %vm1316_vm13, %v3368_v44, %v3375_v14 }
 0x53f   : > { %v3384_v13 = vperm.slane %v3376_v34, %v7621_v29 }
 0x540   : > { %v3374_v38 = vsel %vm1316_vm13, %v3373_v47, %v3356_v8  ;;  %v3385_v19 = vrot.slane %v3372_v3, 4  ;;  %v3388_v5 = vsel %vm1316_vm13, %v3372_v3, %v3387_v48 }
 0x541   : > { %v3380_v39 = vperm.slane %v3374_v38, %v7621_v29  ;;  %v3396_v46 = vperm.slane %v3388_v5, %v7621_v29  ;;  %v3399_v10 = vrot.slane %v3384_v13, 4 }
 0x542   : > { %v3386_v37 = vsel %vm1316_vm13, %v3385_v19, %v3360_v42  ;;  %v3247_v4 = vpop.f32.mrf.mxu3 }
 0x543   : > { %v3392_v7 = vperm.slane %v3386_v37, %v7621_v29  ;;  %v3397_v56 = vrot.slane %v3380_v39, 4  ;;  %v3400_v52 = vsel %vm1316_vm13, 0.0, %v3399_v10  ;;  %v3403_v58 = vrot.slane %v3396_v46, 4 }
 0x544   : > { %v3573_v59 = vsel %vm1316_vm13, %v3399_v10, %v3380_v39  ;;  %v3578_v21 = vrot.slane %v3400_v52, 4  ;;  %v3418_v20 = vsel %vm1316_vm13, %v3417_v27, %v3247_v4  ;;  %v3419_v63 = vrot.slane %v3247_v4, 4 }
 0x545   : > { %v3398_v9 = vsel %vm1316_vm13, 0.0, %v3397_v56  ;;  %v3401_v61 = vrot.slane %v3392_v7, 4  ;;  %v3404_v2 = vsel %vm1316_vm13, 0.0, %v3403_v58  ;;  %v3577_v6 = vperm.slane %v3573_v59, %v7600_v32 }
 0x546   : > { %v3579_v30 = vsel %vm1316_vm13, %v3578_v21, %v3398_v9  ;;  %v3584_v18 = vsel %vm1316_vm13, %v3403_v58, %v3392_v7  ;;  %v3589_v60 = vrot.slane %v3404_v2, 4  ;;  %v3424_v36 = vperm.slane %v3418_v20, %v7600_v32 }
 0x547   : > { %v3583_v55 = vperm.slane %v3579_v30, %v7600_v32  ;;  %v3402_v11 = vsel %vm1316_vm13, 0.0, %v3401_v61  ;;  %v3597_v16 = vrot.slane %v3577_v6, 4  ;;  %v3420_v22 = vsel %vm1316_vm13, %v3341_v28, %v3419_v63 }
 0x548   : > { %v3588_v17 = vperm.slane %v3584_v18, %v7600_v32  ;;  %v3590_v25 = vsel %vm1316_vm13, %v3589_v60, %v3402_v11  ;;  %v3428_v26 = vperm.slane %v3420_v22, %v7600_v32  ;;  %v3429_v35 = vrot.slane %v3424_v36, 4 }
 0x549   : > { %v3432_v53 = vsel %vm1316_vm13, %v3424_v36, %v3431_v49  ;;  %v3594_v31 = vperm.slane %v3590_v25, %v7600_v32  ;;  %v3595_v1 = vrot.slane %v3583_v55, 4  ;;  %v3598_v54 = vsel %vm1316_vm13, %v3583_v55, %v3597_v16 }
 0x54a   : > { %v3440_v24 = vperm.slane %v3432_v53, %v7621_v29  ;;  %v3609_v50 = vrot.slane %v3588_v17, 4  ;;  %v3430_v23 = vsel %vm1316_vm13, %v3429_v35, %v3412_v45  ;;  %v3441_v8 = vrot.slane %v3428_v26, 4 }
 0x54b   : > { %v3444_v41 = vsel %vm1316_vm13, %v3428_v26, %v3443_v43  ;;  %v3436_v40 = vperm.slane %v3430_v23, %v7621_v29  ;;  %v3596_v47 = vsel %vm1316_vm13, %v3595_v1, %v3577_v6  ;;  %v3607_v34 = vrot.slane %v3594_v31, 4 }
 0x54c   : > { %v3452_v42 = vperm.slane %v3444_v41, %v7621_v29  ;;  %v3455_v0 = vrot.slane %v3440_v24, 4  ;;  %v3442_v51 = vsel %vm1316_vm13, %v3441_v8, %v3416_v12  ;;  %v3610_v57 = vsel %vm1316_vm13, %v3594_v31, %v3609_v50 }
 0x54d   : > { %v3448_v14 = vperm.slane %v3442_v51, %v7621_v29  ;;  %v3453_v44 = vrot.slane %v3436_v40, 4  ;;  %v3606_v39 = vperm.slane %v3598_v54, %v7621_v29  ;;  %v3618_v37 = vperm.slane %v3610_v57, %v7621_v29 }
 0x54e   : > { %v3456_v15 = vsel %vm1316_vm13, 0.0, %v3455_v0  ;;  %v3459_v62 = vrot.slane %v3452_v42, 4  ;;  %v3627_v48 = vsel %vm1316_vm13, %v3455_v0, %v3436_v40  ;;  %v3602_v7 = vperm.slane %v3596_v47, %v7621_v29  ;;  %v3203_v42 = vpop.f32.mrf.mxu2 }
 0x54f   : > { %v3632_v3 = vrot.slane %v3456_v15, 4  ;;  %v3454_v33 = vsel %vm1316_vm13, 0.0, %v3453_v44  ;;  %v3457_v28 = vrot.slane %v3448_v14, 4  ;;  %v3631_v45 = vperm.slane %v3627_v48, %v7600_v32 }
 0x550   : > { %v3460_v13 = vsel %vm1316_vm13, 0.0, %v3459_v62  ;;  %v3638_v19 = vsel %vm1316_vm13, %v3459_v62, %v3448_v14  ;;  %v3608_v56 = vsel %vm1316_vm13, %v3607_v34, %v3588_v17  ;;  %v3625_v21 = vrot.slane %v3606_v39, 4 }
 0x551   : > { %v3633_v38 = vsel %vm1316_vm13, %v3632_v3, %v3454_v33  ;;  %v3643_v5 = vrot.slane %v3460_v13, 4  ;;  %v3651_v10 = vrot.slane %v3631_v45, 4  ;;  %v3458_v12 = vsel %vm1316_vm13, 0.0, %v3457_v28 }
 0x552   : > { %v3637_v46 = vperm.slane %v3633_v38, %v7600_v32  ;;  %v3642_v27 = vperm.slane %v3638_v19, %v7600_v32  ;;  %v3614_v59 = vperm.slane %v3608_v56, %v7621_v29  ;;  %v3623_v60 = vrot.slane %v3618_v37, 4 }
 0x553   : > { %v3644_v4 = vsel %vm1316_vm13, %v3643_v5, %v3458_v12  ;;  %v3621_v43 = vrot.slane %v3602_v7, 4  ;;  %v3626_v16 = vsel %vm1316_vm13, %v3618_v37, %v3625_v21  ;;  %v3463_v54 = vrot.slane %v3203_v42, 4 }
 0x554   : > { %v3648_v52 = vperm.slane %v3644_v4, %v7600_v32  ;;  %v3652_v58 = vsel %vm1316_vm13, %v3637_v46, %v3651_v10  ;;  %v3663_v49 = vrot.slane %v3642_v27, 4  ;;  %v3649_v9 = vrot.slane %v3637_v46, 4  ;;  %v5912_v4 = vld [vmem:[%s7373_s24 + $0x38] sm:$0xff] }
 0x555   : > { %v3660_v20 = vperm.slane %v3652_v58, %v7621_v29  ;;  %v3619_v2 = vrot.slane %v3614_v59, 4  ;;  %v3624_v53 = vsel %vm1316_vm13, %v3623_v60, %v3606_v39  ;;  %v3622_v23 = vsel %vm1316_vm13, %v3614_v59, %v3621_v43  ;;  %3921 = vmatpush.bf16.msra.mxu2 %v5912_v4 }
 0x556   : > { %v3664_v61 = vsel %vm1316_vm13, %v3648_v52, %v3663_v49  ;;  %v3661_v6 = vrot.slane %v3648_v52, 4  ;;  %v3650_v63 = vsel %vm1316_vm13, %v3649_v9, %v3631_v45  ;;  %v3205_v39 = vpop.f32.mrf.mxu2 }
 0x557   : > { %v3672_v30 = vperm.slane %v3664_v61, %v7621_v29  ;;  %v3679_v18 = vrot.slane %v3660_v20, 4  ;;  %v3656_v55 = vperm.slane %v3650_v63, %v7621_v29  ;;  %v8738_v11 = vsel %vm1316_vm13, %v3619_v2, %v3602_v7 }
 0x558   : > { %v3662_v36 = vsel %vm1316_vm13, %v3661_v6, %v3642_v27  ;;  %v3519_v9 = vrot.slane %v3205_v39, 4 }
 0x559   : > { %v3680_v22 = vsel %vm1316_vm13, %v3672_v30, %v3679_v18  ;;  %v3677_v17 = vrot.slane %v3672_v30, 4  ;;  %v3668_v25 = vperm.slane %v3662_v36, %v7621_v29  ;;  %v3675_v35 = vrot.slane %v3656_v55, 4 }
 0x55a   : > { %v6243_v26 = vpack.i.bf16 %v3680_v22, %v3626_v16 }
 0x55b   : > { %v3678_v31 = vsel %vm1316_vm13, %v3677_v17, %v3660_v20  ;;  %v3673_v24 = vrot.slane %v3668_v25, 4  ;;  %v3676_v8 = vsel %vm1316_vm13, %v3668_v25, %v3675_v35 }
 0x55c   : > { %6244 = vrot.lane.b32.xlu1 %v6243_v26, %s6966_s22  ;;  %v6238_v50 = vpack.i.bf16 %v3678_v31, %v3624_v53  ;;  %v6233_v41 = vpack.i.bf16 %v3676_v8, %v3622_v23 }
 0x55d   : > { %v8749_v1 = vsel %vm1316_vm13, %v3673_v24, %v3656_v55  ;;  %v3344_v40 = vpop.f32.mrf.mxu1 }
 0x55e   : > { %6239 = vrot.lane.b32.xlu0 %v6238_v50, %s6965_s4  ;;  %6234 = vrot.lane.b32.xlu2 %v6233_v41, %s6964_s16  ;;  %v3473_v0 = vrot.slane %v3344_v40, 4 }
 0x565   : > { %v3346_v47 = vpop.f32.mrf.mxu1 }
 0x566   : > { %v3250_v51 = vpop.f32.mrf.mxu3  ;;  %v3529_v5 = vrot.slane %v3346_v47, 4 }
 0x567   : > { %v3474_v57 = vsel %vm1316_vm13, %v3473_v0, %v3250_v51  ;;  %v3475_v14 = vrot.slane %v3250_v51, 4 }
 0x568   : > { %v3480_v44 = vperm.slane %v3474_v57, %v7600_v32  ;;  %v3297_v15 = vpop.f32.mrf.mxu0 }
 0x569   : > { %v3476_v62 = vsel %vm1316_vm13, %v3344_v40, %v3475_v14  ;;  %v3461_v48 = vrot.slane %v3297_v15, 4  ;;  %v3464_v3 = vsel %vm1316_vm13, %v3297_v15, %v3463_v54 }
 0x56a   : > { %v3484_v34 = vperm.slane %v3476_v62, %v7600_v32  ;;  %v3472_v33 = vperm.slane %v3464_v3, %v7600_v32  ;;  %v3485_v13 = vrot.slane %v3480_v44, 4 }
 0x56b   : > { %v3462_v28 = vsel %vm1316_vm13, %v3461_v48, %v3203_v42 }
 0x56c   : > { %v3497_v45 = vrot.slane %v3484_v34, 4  ;;  %v3468_v38 = vperm.slane %v3462_v28, %v7600_v32  ;;  %v3499_v19 = vrot.slane %v3472_v33, 4 }
 0x56e   : > { %v3486_v46 = vsel %vm1316_vm13, %v3485_v13, %v3468_v38  ;;  %v3487_v10 = vrot.slane %v3468_v38, 4  ;;  %v3498_v12 = vsel %vm1316_vm13, %v3497_v45, %v3472_v33  ;;  %v3500_v27 = vsel %vm1316_vm13, %v3484_v34, %v3499_v19  ;;  %v3252_v37 = vpop.f32.mrf.mxu3 }
 0x56f   : > { %v3492_v7 = vperm.slane %v3486_v46, %v7621_v29  ;;  %v3504_v56 = vperm.slane %v3498_v12, %v7621_v29  ;;  %v3508_v52 = vperm.slane %v3500_v27, %v7621_v29  ;;  %v3530_v58 = vsel %vm1316_vm13, %v3529_v5, %v3252_v37 }
 0x570   : > { %v3488_v49 = vsel %vm1316_vm13, %v3480_v44, %v3487_v10  ;;  %v3531_v59 = vrot.slane %v3252_v37, 4  ;;  %v3536_v21 = vperm.slane %v3530_v58, %v7600_v32  ;;  %v3299_v20 = vpop.f32.mrf.mxu0 }
 0x571   : > { %v3496_v61 = vperm.slane %v3488_v49, %v7621_v29  ;;  %v3513_v2 = vrot.slane %v3504_v56, 4  ;;  %v3515_v6 = vrot.slane %v3508_v52, 4  ;;  %v3509_v30 = vrot.slane %v3492_v7, 4 }
 0x572   : > { %v3532_v18 = vsel %vm1316_vm13, %v3346_v47, %v3531_v59  ;;  %v3541_v60 = vrot.slane %v3536_v21, 4  ;;  %v3517_v63 = vrot.slane %v3299_v20, 4  ;;  %v3520_v16 = vsel %vm1316_vm13, %v3299_v20, %v3519_v9 }
 0x573   : > { %v3511_v43 = vrot.slane %v3496_v61, 4  ;;  %v3514_v55 = vsel %vm1316_vm13, 0.0, %v3513_v2  ;;  %v3516_v36 = vsel %vm1316_vm13, 0.0, %v3515_v6  ;;  %v3692_v22 = vsel %vm1316_vm13, %v3515_v6, %v3504_v56 }
 0x574   : > { %v3697_v17 = vrot.slane %v3516_v36, 4  ;;  %v3540_v25 = vperm.slane %v3532_v18, %v7600_v32  ;;  %v3518_v26 = vsel %vm1316_vm13, %v3517_v63, %v3205_v39  ;;  %v3696_v31 = vperm.slane %v3692_v22, %v7600_v32 }
 0x575   : > { %v3512_v35 = vsel %vm1316_vm13, 0.0, %v3511_v43  ;;  %v3681_v53 = vsel %vm1316_vm13, %v3511_v43, %v3492_v7  ;;  %v3524_v24 = vperm.slane %v3518_v26, %v7600_v32  ;;  %v3528_v41 = vperm.slane %v3520_v16, %v7600_v32 }
 0x576   : > { %v3686_v50 = vrot.slane %v3512_v35, 4  ;;  %v3698_v23 = vsel %vm1316_vm13, %v3697_v17, %v3514_v55  ;;  %v3553_v8 = vrot.slane %v3540_v25, 4  ;;  %v3510_v40 = vsel %vm1316_vm13, 0.0, %v3509_v30 }
 0x577   : > { %v3702_v42 = vperm.slane %v3698_v23, %v7600_v32  ;;  %v3542_v0 = vsel %vm1316_vm13, %v3541_v60, %v3524_v24  ;;  %v3543_v51 = vrot.slane %v3524_v24, 4  ;;  %v3555_v14 = vrot.slane %v3528_v41, 4 }
 0x578   : > { %v3548_v54 = vperm.slane %v3542_v0, %v7621_v29  ;;  %v3554_v57 = vsel %vm1316_vm13, %v3553_v8, %v3528_v41  ;;  %v3685_v44 = vperm.slane %v3681_v53, %v7600_v32  ;;  %v3717_v15 = vrot.slane %v3696_v31, 4 }
 0x579   : > { %v3544_v62 = vsel %vm1316_vm13, %v3536_v21, %v3543_v51  ;;  %v3560_v48 = vperm.slane %v3554_v57, %v7621_v29  ;;  %v3687_v3 = vsel %vm1316_vm13, %v3686_v50, %v3510_v40  ;;  %v3556_v34 = vsel %vm1316_vm13, %v3540_v25, %v3555_v14 }
 0x57a   : > { %v3552_v47 = vperm.slane %v3544_v62, %v7621_v29  ;;  %v3565_v33 = vrot.slane %v3548_v54, 4  ;;  %v3691_v28 = vperm.slane %v3687_v3, %v7600_v32  ;;  %v3564_v13 = vperm.slane %v3556_v34, %v7621_v29 }
 0x57b   : > { %v3705_v45 = vrot.slane %v3685_v44, 4  ;;  %v3569_v19 = vrot.slane %v3560_v48, 4  ;;  %v3718_v46 = vsel %vm1316_vm13, %v3702_v42, %v3717_v15  ;;  %v3715_v10 = vrot.slane %v3702_v42, 4 }
 0x57c   : > { %v3567_v38 = vrot.slane %v3552_v47, 4  ;;  %v3703_v5 = vrot.slane %v3691_v28, 4  ;;  %v3571_v39 = vrot.slane %v3564_v13, 4  ;;  %v3566_v12 = vsel %vm1316_vm13, 0.0, %v3565_v33  ;;  %v5911_v33 = vld [vmem:[%s7373_s24 + $0x30] sm:$0xff]  ;;  %v5909_v13 = vld [vmem:[%s7373_s24 + $0x20] sm:$0xff] }
 0x57d   : > { %v3706_v4 = vsel %vm1316_vm13, %v3691_v28, %v3705_v45  ;;  %v3570_v49 = vsel %vm1316_vm13, 0.0, %v3569_v19  ;;  %v3716_v6 = vsel %vm1316_vm13, %v3715_v10, %v3696_v31  ;;  %v3726_v60 = vperm.slane %v3718_v46, %v7621_v29  ;;  %3922 = vmatpush.bf16.msra.mxu2 %v5911_v33  ;;  %v5910_v28 = vld [vmem:[%s7373_s24 + $0x28] sm:$0xff]  ;;  %v5908_v45 = vld [vmem:[%s7373_s24 + $0x18] sm:$0xff] }
 0x57e   : > { %v3568_v27 = vsel %vm1316_vm13, 0.0, %v3567_v38  ;;  %v3735_v37 = vsel %vm1316_vm13, %v3567_v38, %v3548_v54  ;;  %v3572_v7 = vsel %vm1316_vm13, 0.0, %v3571_v39  ;;  %v3746_v52 = vsel %vm1316_vm13, %v3571_v39, %v3560_v48  ;;  %v5907_v38 = vld [vmem:[%s7373_s24 + $0x10] sm:$0xff]  ;;  %v5906_v19 = vld [vmem:[%s7373_s24 + $0x8] sm:$0xff]  ;;  %v5729_v33 = vld [vmem:[%s7390_s1 + $0xf0] sm:$0xf0] }
 0x57f   : > { %v3740_v56 = vrot.slane %v3568_v27, 4  ;;  %v3739_v58 = vperm.slane %v3735_v37, %v7600_v32  ;;  %v3750_v59 = vperm.slane %v3746_v52, %v7600_v32  ;;  %v3751_v21 = vrot.slane %v3572_v7, 4 }
 0x580   : > { %v3704_v20 = vsel %vm1316_vm13, %v3703_v5, %v3685_v44  ;;  %v3714_v9 = vperm.slane %v3706_v4, %v7621_v29  ;;  %v3722_v36 = vperm.slane %v3716_v6, %v7621_v29  ;;  %v3731_v53 = vrot.slane %v3726_v60, 4  ;;  %v5905_v5 = vld [vmem:[%s7373_s24] sm:$0xff]  ;;  %s9572_s24 = sld [smem:[#allocation44_spill]] }
 0x581   : > { %v3741_v61 = vsel %vm1316_vm13, %v3740_v56, %v3566_v12  ;;  %v3759_v2 = vrot.slane %v3739_v58, 4  ;;  %v3752_v30 = vsel %vm1316_vm13, %v3751_v21, %v3570_v49  ;;  %v3771_v18 = vrot.slane %v3750_v59, 4  ;;  %3923 = vmatpush.bf16.msra.mxu2 %v5910_v28  ;;  %v5735_v28 = vld [vmem:[%s7390_s1 + $0xe8] sm:$0xf] }
 0x582   : > { %v3745_v63 = vperm.slane %v3741_v61, %v7600_v32  ;;  %v3756_v43 = vperm.slane %v3752_v30, %v7600_v32  ;;  %v3710_v55 = vperm.slane %v3704_v20, %v7621_v29  ;;  %v3733_v26 = vrot.slane %v3714_v9, 4 }
 0x583   : > { %v3727_v35 = vrot.slane %v3722_v36, 4  ;;  %v3732_v14 = vsel %vm1316_vm13, %v3731_v53, %v3714_v9 }
 0x584   : > { %v3760_v16 = vsel %vm1316_vm13, %v3745_v63, %v3759_v2  ;;  %v3757_v22 = vrot.slane %v3745_v63, 4  ;;  %v3772_v25 = vsel %vm1316_vm13, %v3756_v43, %v3771_v18  ;;  %v3769_v50 = vrot.slane %v3756_v43, 4 }
 0x585   : > { %v3768_v17 = vperm.slane %v3760_v16, %v7621_v29  ;;  %v3780_v31 = vperm.slane %v3772_v25, %v7621_v29  ;;  %v3729_v23 = vrot.slane %v3710_v55, 4  ;;  %v3728_v41 = vsel %vm1316_vm13, %v3727_v35, %v3710_v55  ;;  %3924 = vmatpush.bf16.msra.mxu2 %v5909_v13  ;;  %v5944_v13 = vld [vmem:[%s7390_s1 + $0xf4] sm:$0xf0] }
 0x586   : > { %v3758_v24 = vsel %vm1316_vm13, %v3757_v22, %v3739_v58  ;;  %v3770_v42 = vsel %vm1316_vm13, %v3769_v50, %v3750_v59  ;;  %v3734_v0 = vsel %vm1316_vm13, %v3726_v60, %v3733_v26  ;;  %v6265_v26 = vld [vmem:[%s758_s9] ss:$0 sm:$0xff]  ;;  %s9343_s9 = sld [smem:[#allocation5 + %s9572_s24]] }
 0x587   : > { %v3787_v32 = vrot.slane %v3768_v17, 4  ;;  %v3764_v8 = vperm.slane %v3758_v24, %v7621_v29  ;;  %v3785_v40 = vrot.slane %v3780_v31, 4  ;;  %v3776_v54 = vperm.slane %v3770_v42, %v7621_v29 }
 0x588   : > { %v3730_v48 = vsel %vm1316_vm13, %v3722_v36, %v3729_v23 }
 0x589   : > { %v3788_v51 = vsel %vm1316_vm13, %v3780_v31, %v3787_v32  ;;  %v3783_v57 = vrot.slane %v3764_v8, 4  ;;  %v3786_v44 = vsel %vm1316_vm13, %v3785_v40, %v3768_v17  ;;  %v3781_v3 = vrot.slane %v3776_v54, 4  ;;  %3925 = vmatpush.bf16.msra.mxu2 %v5908_v45  ;;  %v9567_v31 = vld [vmem:[#allocation57_spill] sm:$0xff] }
 0x58a   : > { %v6258_v15 = vpack.i.bf16 %v3788_v51, %v3734_v0  ;;  %v6253_v62 = vpack.i.bf16 %v3786_v44, %v3732_v14  ;;  %v9569_v51 = vld [vmem:[#allocation58_spill] sm:$0xff] }
 0x58b   : > { %v3784_v47 = vsel %vm1316_vm13, %v3776_v54, %v3783_v57  ;;  %v3782_v34 = vsel %vm1316_vm13, %v3781_v3, %v3764_v8  ;;  %v9568_v8 = vld [vmem:[#allocation59_spill] sm:$0xff] }
 0x58c   : > { %6259 = vrot.lane.b32.xlu1 %v6258_v15, %s6966_s22  ;;  %v6248_v29 = vpack.i.bf16 %v3784_v47, %v3730_v48  ;;  %6254 = vrot.lane.b32.xlu2 %v6253_v62, %s6965_s4  ;;  %v9570_v15 = vld [vmem:[#allocation60_spill] sm:$0xff]  ;;  %v5943_v47 = vld [vmem:[%s7390_s1 + $0xec] sm:$0xf0]  ;;  %p5869_p13 = scmp.ne.s32.totalorder %s9343_s9, 1 }
 0x58d   : > { %3926 = vmatpush.bf16.msra.mxu2 %v5907_v38  ;;  %v5727_v3 = vld [vmem:[%s7390_s1 + $0xe0] sm:$0xf]  ;;  %v5736_v38 = vor.u32 %v5944_v13, %v5735_v28  ;;  %v5926_v13 = vld [vmem:[%s7390_s1 + $0x6c] sm:$0xf] }
 0x58e   : > { %6249 = vrot.lane.b32.xlu0 %v6248_v29, %s6964_s16  ;;  %v5941_v29 = vld [vmem:[%s7390_s1 + $0xe4] sm:$0xf] }
 0x58f   : > { %v5732_v45 = vor.u32 %v5941_v29, %v5729_v33  ;;  %4290 = vmatpush.bf16.msrb.mxu1 %v5736_v38  ;;  %v5671_v29 = vld [vmem:[%s7390_s1 + $0x68] sm:$0xf]  ;;  %v5647_v38 = vld [vmem:[%s7390_s1 + $0x40] sm:$0xf] }
 0x591   : > { %3927 = vmatpush.bf16.msra.mxu2 %v5906_v19  ;;  %v5942_v19 = vld [vmem:[%s7390_s1 + $0xec] sm:$0xf]  ;;  %4271 = vmatpush.bf16.msrb.mxu0 %v5732_v45  ;;  %v5673_v45 = vld [vmem:[%s7390_s1 + $0x78] sm:$0xf0] }
 0x595   : > { %3928 = vmatpush.bf16.msra.mxu2 %v5905_v5  ;;  %v5737_v5 = vld [vmem:[%s7390_s1 + $0xf8] sm:$0xf0] }
 0x5b8   : > { %v6235_v39 = vpop.permute.xlu2 %6234 }
 0x5b9   : > { %v6237_v46 = vunpack.i.h.bf16 %v6235_v39  ;;  %v6236_v10 = vunpack.i.l.bf16 %v6235_v39  ;;  %v5740_v39 = vor.u32 %v5942_v19, %v5737_v5  ;;  %v5676_v5 = vor.u32 %v5926_v13, %v5673_v45 }
 0x5bb   : > { %v3837_v7 = vsel %vm2784_vm14, %v8738_v11, %v6236_v10  ;;  %v3838_v56 = vsel %vm2784_vm14, %v8749_v1, %v6237_v46  ;;  %v5711_v46 = vld [vmem:[%s7390_s1 + $0xc0] sm:$0xf]  ;;  %v5939_v10 = vld [vmem:[%s7390_s1 + $0xcc] sm:$0xf0]  ;;  %4309 = vmatpush.bf16.msrb.mxu2 %v5740_v39 }
 0x5bc   : > { %v5923_v39 = vld [vmem:[%s7390_s1 + $0x4c] sm:$0xf0] }
 0x5ce   : > { %v6245_v12 = vpop.permute.xlu1 %6244 }
 0x5cf   : > { %v6247_v52 = vunpack.i.h.bf16 %v6245_v12  ;;  %v6246_v58 = vunpack.i.l.bf16 %v6245_v12  ;;  %v5937_v12 = vld [vmem:[%s7390_s1 + $0xc4] sm:$0xf] }
 0x5d0   : > { %v6240_v27 = vpop.permute.xlu0 %6239 }
 0x5d1   : > { %v6242_v37 = vunpack.i.h.bf16 %v6240_v27  ;;  %v6241_v4 = vunpack.i.l.bf16 %v6240_v27  ;;  %v5712_v27 = vor.u32 %v5939_v10, %v5711_v46  ;;  %v5921_v46 = vld [vmem:[%s7390_s1 + $0x44] sm:$0xf]  ;;  %v5649_v10 = vld [vmem:[%s7390_s1 + $0x50] sm:$0xf0] }
 0x5d3   : > { %v3842_v49 = vsel %vm3841_vm15, %v3837_v7, %v6241_v4  ;;  %v3843_v59 = vsel %vm3841_vm15, %v3838_v56, %v6242_v37  ;;  %v5713_v37 = vld [vmem:[%s7390_s1 + $0xd0] sm:$0xf0]  ;;  %v5719_v4 = vld [vmem:[%s7390_s1 + $0xc8] sm:$0xf]  ;;  %v5940_v7 = vld [vmem:[%s7390_s1 + $0xd4] sm:$0xf0] }
 0x5d4   : > { %v3847_v21 = vsel %vm3846_vm0, %v3842_v49, %v6246_v58  ;;  %v3848_v20 = vsel %vm3846_vm0, %v3843_v59, %v6247_v52  ;;  %v5716_v56 = vor.u32 %v5937_v12, %v5713_v37  ;;  %v5720_v52 = vor.u32 %v5940_v7, %v5719_v4  ;;  %v5938_v58 = vld [vmem:[%s7390_s1 + $0xcc] sm:$0xf]  ;;  %v5721_v49 = vld [vmem:[%s7390_s1 + $0xd8] sm:$0xf0]  ;;  %v5655_v37 = vld [vmem:[%s7390_s1 + $0x48] sm:$0xf] }
 0x5d5   : > { %v3851_v9 = vpack.c.bf16 %v3848_v20, %v3847_v21  ;;  %v5724_v59 = vor.u32 %v5938_v58, %v5721_v49  ;;  %v5695_v21 = vld [vmem:[%s7390_s1 + $0xa0] sm:$0xf]  ;;  %v5935_v20 = vld [vmem:[%s7390_s1 + $0xac] sm:$0xf0]  ;;  %v5924_v4 = vld [vmem:[%s7390_s1 + $0x54] sm:$0xf0]  ;;  %v5652_v58 = vor.u32 %v5921_v46, %v5649_v10 }
 0x5d6   : > { %4272 = vmatpush.bf16.msrb.mxu0 %v5716_v56  ;;  %4291 = vmatpush.bf16.msrb.mxu1 %v5720_v52  ;;  %v5922_v7 = vld [vmem:[%s7390_s1 + $0x4c] sm:$0xf]  ;;  %v5657_v49 = vld [vmem:[%s7390_s1 + $0x58] sm:$0xf0] }
 0x5d7   : > { %3929 = vmatmul.bf16.vlgmr.msra.gmra.mxu2 %v3851_v9  ;;  %v5933_v9 = vld [vmem:[%s7390_s1 + $0xa4] sm:$0xf] }
 0x5d8   : > { %4310 = vmatpush.bf16.msrb.mxu2 %v5724_v59  ;;  %v5631_v59 = vld [vmem:[%s7390_s1 + $0x20] sm:$0xf] }
 0x5e6   : > { %v6255_v61 = vpop.permute.xlu2 %6254 }
 0x5e7   : > { %v6257_v18 = vunpack.i.h.bf16 %v6255_v61  ;;  %v6256_v1 = vunpack.i.l.bf16 %v6255_v61 }
 0x5fe   : > { %v6260_v2 = vpop.permute.xlu1 %6259 }
 0x5ff   : > { %v6262_v60 = vunpack.i.h.bf16 %v6260_v2  ;;  %v6261_v63 = vunpack.i.l.bf16 %v6260_v2  ;;  %v5696_v2 = vor.u32 %v5935_v20, %v5695_v21  ;;  %v5919_v21 = vld [vmem:[%s7390_s1 + $0x2c] sm:$0xf0]  ;;  %v5656_v20 = vor.u32 %v5924_v4, %v5655_v37 }
 0x600   : > { %v6250_v6 = vpop.permute.xlu0 %6249 }
 0x601   : > { %v6252_v11 = vunpack.i.h.bf16 %v6250_v6  ;;  %v6251_v30 = vunpack.i.l.bf16 %v6250_v6  ;;  %v5697_v6 = vld [vmem:[%s7390_s1 + $0xb0] sm:$0xf0] }
 0x603   : > { %v3839_v43 = vsel %vm2784_vm14, %v3728_v41, %v6251_v30  ;;  %v3840_v55 = vsel %vm2784_vm14, %v3782_v34, %v6252_v11  ;;  %v5728_v34 = vor.u32 %v5943_v47, %v5727_v3  ;;  %v5703_v11 = vld [vmem:[%s7390_s1 + $0xa8] sm:$0xf]  ;;  %v5936_v30 = vld [vmem:[%s7390_s1 + $0xb4] sm:$0xf0] }
 0x604   : > { %v3844_v36 = vsel %vm3841_vm15, %v3839_v43, %v6256_v1  ;;  %v3845_v16 = vsel %vm3841_vm15, %v3840_v55, %v6257_v18  ;;  %v9571_v18 = vld [vmem:[#allocation61_spill] sm:$0xff]  ;;  %v5705_v55 = vld [vmem:[%s7390_s1 + $0xb8] sm:$0xf0] }
 0x605   : > { %v3849_v22 = vsel %vm3846_vm0, %v3844_v36, %v6261_v63  ;;  %v3850_v17 = vsel %vm3846_vm0, %v3845_v16, %v6262_v60  ;;  %4252 = vmatpush.bf16.msrb.mxu3 %v5728_v34  ;;  %v5700_v60 = vor.u32 %v5933_v9, %v5697_v6  ;;  %v5704_v63 = vor.u32 %v5936_v30, %v5703_v11  ;;  %v5934_v43 = vld [vmem:[%s7390_s1 + $0xac] sm:$0xf]  ;;  %v5928_v34 = vld [vmem:[%s7390_s1 + $0x74] sm:$0xf0]  ;;  %v5639_v6 = vld [vmem:[%s7390_s1 + $0x28] sm:$0xf] }
 0x606   : > { %v3852_v25 = vpack.c.bf16 %v3850_v17, %v3849_v22  ;;  %v5708_v16 = vor.u32 %v5934_v43, %v5705_v55  ;;  %v5672_v28 = vor.u32 %v5928_v34, %v5671_v29  ;;  %v5660_v9 = vor.u32 %v5922_v7, %v5657_v49  ;;  %v5920_v30 = vld [vmem:[%s7390_s1 + $0x34] sm:$0xf0]  ;;  %v5615_v55 = vld [vmem:[%s7390_s1] sm:$0xf] }
 0x607   : > { %4273 = vmatpush.bf16.msrb.mxu0 %v5700_v60  ;;  %4292 = vmatpush.bf16.msrb.mxu1 %v5704_v63  ;;  %v5918_v60 = vld [vmem:[%s7390_s1 + $0x2c] sm:$0xf]  ;;  %v5641_v63 = vld [vmem:[%s7390_s1 + $0x38] sm:$0xf0]  ;;  %v5632_v43 = vor.u32 %v5919_v21, %v5631_v59 }
 0x608   : > { %3934 = vmatmul.bf16.gmra.mxu2 %v3852_v25  ;;  %v5679_v25 = vld [vmem:[%s7390_s1 + $0x80] sm:$0xf] }
 0x609   : > { %4253 = vmatpush.bf16.msrb.mxu3 %v5712_v27  ;;  %4311 = vmatpush.bf16.msrb.mxu2 %v5708_v16  ;;  %v5648_v27 = vor.u32 %v5923_v39, %v5647_v38  ;;  %v6266_v38 = vld [vmem:[%s767_s23] ss:$0 sm:$0xff]  ;;  %s9573_s23 = scalar_lea.vmem [#allocation24], %s7357_s3 }
 0x60d   : > { %4254 = vmatpush.bf16.msrb.mxu3 %v5696_v2  ;;  %v5633_v2 = vld [vmem:[%s7390_s1 + $0x30] sm:$0xf0] }
 0x65a   : > { %v3930_v35 = vpop.f32.mrf.mxu2 }
 0x65b   : > { %v3931_v53 = vadd.f32 %v6265_v26, %v3930_v35  ;;  %v5929_v35 = vld [vmem:[%s7390_s1 + $0x84] sm:$0xf] }
 0x65d   : > { %v8861_v24 = vadd.f32 %v3931_v53, %v9567_v31  ;;  %v5681_v31 = vld [vmem:[%s7390_s1 + $0x90] sm:$0xf0] }
 0x65f   : > { %3946 = vadd.xlane.f32.xlu0 %v8861_v24  ;;  %v3958_v50 = vmul.f32 %v8861_v24, %v8861_v24 }
 0x661   : > { %3962 = vadd.xlane.f32.xlu1 %v3958_v50  ;;  %v5687_v50 = vld [vmem:[%s7390_s1 + $0x88] sm:$0xf] }
 0x662   : > { %v3932_v32 = vpop.f32.mrf.mxu2 }
 0x663   : > { %v3933_v23 = vadd.f32 %v6265_v26, %v3932_v32  ;;  %v5932_v32 = vld [vmem:[%s7390_s1 + $0x94] sm:$0xf0] }
 0x665   : > { %v8867_v41 = vadd.f32 %v3933_v23, %v9568_v8  ;;  %v5684_v8 = vor.u32 %v5929_v35, %v5681_v31  ;;  %v5617_v31 = vld [vmem:[%s7390_s1 + $0x10] sm:$0xf0] }
 0x667   : > { %3948 = vadd.xlane.f32.xlu2 %v8867_v41  ;;  %v3959_v40 = vmul.f32 %v8867_v41, %v8867_v41  ;;  %4274 = vmatpush.bf16.msrb.mxu0 %v5684_v8  ;;  %v5625_v8 = vld [vmem:[%s7390_s1 + $0x18] sm:$0xf0] }
 0x669   : > { %3964 = vadd.xlane.f32.xlu0 %v3959_v40  ;;  %v5688_v40 = vor.u32 %v5932_v32, %v5687_v50  ;;  %v5623_v50 = vld [vmem:[%s7390_s1 + $0x8] sm:$0xf]  ;;  %v5916_v32 = vld [vmem:[%s7390_s1 + $0x14] sm:$0xf0] }
 0x66b   : > { %4293 = vmatpush.bf16.msrb.mxu1 %v5688_v40 }
 0x66f   : > { %4294 = vmatpush.bf16.msrb.mxu1 %v5672_v28 }
 0x673   : > { %4295 = vmatpush.bf16.msrb.mxu1 %v5656_v20 }
 0x68b   : > { %v3935_v42 = vpop.f32.mrf.mxu2 }
 0x68c   : > { %v3936_v0 = vadd.f32 %v6265_v26, %v3935_v42  ;;  %v5930_v42 = vld [vmem:[%s7390_s1 + $0x8c] sm:$0xf] }
 0x68e   : > { %v8873_v54 = vadd.f32 %v3936_v0, %v9569_v51  ;;  %v5689_v0 = vld [vmem:[%s7390_s1 + $0x98] sm:$0xf0]  ;;  %v5663_v51 = vld [vmem:[%s7390_s1 + $0x60] sm:$0xf] }
 0x690   : > { %3950 = vadd.xlane.f32.xlu2 %v8873_v54  ;;  %v3960_v57 = vmul.f32 %v8873_v54, %v8873_v54 }
 0x692   : > { %3966 = vadd.xlane.f32.xlu0 %v3960_v57  ;;  %v5692_v57 = vor.u32 %v5930_v42, %v5689_v0 }
 0x693   : > { %v3937_v14 = vpop.f32.mrf.mxu2 }
 0x694   : > { %v3938_v44 = vadd.f32 %v6265_v26, %v3937_v14  ;;  %v5931_v26 = vld [vmem:[%s7390_s1 + $0x8c] sm:$0xf0]  ;;  %4312 = vmatpush.bf16.msrb.mxu2 %v5692_v57 }
 0x695   : > { %v5680_v53 = vor.u32 %v5931_v26, %v5679_v25  ;;  %v5927_v14 = vld [vmem:[%s7390_s1 + $0x6c] sm:$0xf0]  ;;  %v5913_v26 = vld [vmem:[%s7390_s1 + $0x4] sm:$0xf] }
 0x696   : > { %v8879_v62 = vadd.f32 %v3938_v44, %v9570_v15  ;;  %v5925_v44 = vld [vmem:[%s7390_s1 + $0x64] sm:$0xf]  ;;  %v5665_v15 = vld [vmem:[%s7390_s1 + $0x70] sm:$0xf0]  ;;  %v5664_v3 = vor.u32 %v5927_v14, %v5663_v51  ;;  %v5915_v25 = vld [vmem:[%s7390_s1 + $0xc] sm:$0xf0]  ;;  %v5620_v0 = vor.u32 %v5913_v26, %v5617_v31  ;;  %v5624_v51 = vor.u32 %v5916_v32, %v5623_v50 }
 0x697   : > { %4255 = vmatpush.bf16.msrb.mxu3 %v5680_v53  ;;  %v5668_v47 = vor.u32 %v5925_v44, %v5665_v15  ;;  %v5644_v53 = vor.u32 %v5918_v60, %v5641_v63  ;;  %v5616_v42 = vor.u32 %v5915_v25, %v5615_v55 }
 0x698   : > { %3952 = vadd.xlane.f32.xlu1 %v8879_v62  ;;  %v3961_v48 = vmul.f32 %v8879_v62, %v8879_v62  ;;  %4313 = vmatpush.bf16.msrb.mxu2 %v5676_v5 }
 0x699   : > { %4275 = vmatpush.bf16.msrb.mxu0 %v5668_v47 }
 0x69a   : > { %3968 = vadd.xlane.f32.xlu2 %v3961_v48 }
 0x69b   : > { %4256 = vmatpush.bf16.msrb.mxu3 %v5664_v3 }
 0x69c   : > { %4314 = vmatpush.bf16.msrb.mxu2 %v5660_v9 }
 0x69d   : > { %4276 = vmatpush.bf16.msrb.mxu0 %v5652_v58 }
 0x69f   : > { %4257 = vmatpush.bf16.msrb.mxu3 %v5648_v27 }
 0x6a0   : > { %4315 = vmatpush.bf16.msrb.mxu2 %v5644_v53 }
 0x6a3   : > { %4258 = vmatpush.bf16.msrb.mxu3 %v5632_v43 }
 0x6a7   : > { %4259 = vmatpush.bf16.msrb.mxu3 %v5616_v42 }
 0x6d2   : > { %v3947_v61 = vpop.xlane.xlu0 %3946 }
 0x6d3   : > { %v8907_v1 = vmul.f32 %v3947_v61, %v9571_v18  ;;  %v5917_v61 = vld [vmem:[%s7390_s1 + $0x24] sm:$0xf] }
 0x6d4   : > { %v3963_v36 = vpop.xlane.xlu1 %3962 }
 0x6d5   : > { %v3974_v22 = vmul.f32 %v8907_v1, %v8907_v1  ;;  %v3970_v17 = vmul.f32 %v3963_v36, %v9571_v18  ;;  %v3982_v28 = vsub.f32 %v8861_v24, %v8907_v1 }
 0x6d7   : > { %v3978_v23 = vsub.f32 %v3970_v17, %v3974_v22  ;;  %v5636_v22 = vor.u32 %v5917_v61, %v5633_v2  ;;  %v5640_v17 = vor.u32 %v5920_v30, %v5639_v6 }
 0x6d9   : > { %v8926_v48 = vadd.f32 1e-05, %v3978_v23  ;;  %v5914_v23 = vld [vmem:[%s7390_s1 + $0xc] sm:$0xf]  ;;  %4277 = vmatpush.bf16.msrb.mxu0 %v5636_v22  ;;  %4296 = vmatpush.bf16.msrb.mxu1 %v5640_v17 }
 0x6da   : > { %v3949_v33 = vpop.xlane.xlu2 %3948  ;;  %v5628_v14 = vor.u32 %v5914_v23, %v5625_v8 }
 0x6db   : > { %6343 = vrsqrt.f32 %v8926_v48  ;;  %v8935_v19 = vmul.f32 %v3949_v33, %v9571_v18  ;;  %vm3996_vm2 = vweird.f32 %v8926_v48 }
 0x6dc   : > { %v3965_v12 = vpop.xlane.xlu0 %3964  ;;  %4316 = vmatpush.bf16.msrb.mxu2 %v5628_v14 }
 0x6dd   : > { %v3975_v56 = vmul.f32 %v8935_v19, %v8935_v19  ;;  %v3971_v52 = vmul.f32 %v3965_v12, %v9571_v18  ;;  %4278 = vmatpush.bf16.msrb.mxu0 %v5620_v0  ;;  %4297 = vmatpush.bf16.msrb.mxu1 %v5624_v51  ;;  %v3983_v39 = vsub.f32 %v8867_v41, %v8935_v19  ;;  %v6267_v12 = vld [vmem:[%s776_s0] ss:$0 sm:$0xff] }
 0x6df   : > { %v3979_v11 = vsub.f32 %v3971_v52, %v3975_v56 }
 0x6e1   : > { %v6344_v36 = vpop.eup %6343  ;;  %v3987_v16 = vadd.f32 1e-05, %v3979_v11 }
 0x6e2   : > { %v3991_v35 = vmul.f32 %v6344_v36, %v8926_v48  ;;  %vm3997_vm1 = vweird.f32 %v6344_v36 }
 0x6e3   : > { %6345 = vrsqrt.f32 %v3987_v16  ;;  %vm3998_vm3 = vmor %vm3996_vm2, %vm3997_vm1  ;;  %vm4006_vm5 = vweird.f32 %v3987_v16 }
 0x6e4   : > { %v3992_v40 = vmul.f32 %v6344_v36, %v3991_v35 }
 0x6e6   : > { %v3993_v57 = vmul.f32 0.5, %v3992_v40 }
 0x6e8   : > { %v3994_v44 = vsub.f32 1.5, %v3993_v57  ;;  %v4082_v57 = vld [vmem:[%s7393_s5] sm:$0xf] }
 0x6e9   : > { %v6346_v15 = vpop.eup %6345  ;;  %v8980_v14 = vperm.slane %v4082_v57, 1 }
 0x6ea   : > { %v3995_v3 = vmul.f32 %v6344_v36, %v3994_v44  ;;  %v4001_v47 = vmul.f32 %v6346_v15, %v3987_v16  ;;  %vm4007_vm4 = vweird.f32 %v6346_v15  ;;  %v8982_v44 = vperm.slane %v4082_v57, 2 }
 0x6eb   : > { %vm4008_vm6 = vmor %vm4006_vm5, %vm4007_vm4 }
 0x6ec   : > { %v4002_v29 = vmul.f32 %v6346_v15, %v4001_v47  ;;  %v3999_v34 = vsel %vm3998_vm3, %v6344_v36, %v3995_v3 }
 0x6ed   : > { %v4030_v45 = vmul.f32 %v3999_v34, %v3982_v28 }
 0x6ee   : > { %v4003_v33 = vmul.f32 0.5, %v4002_v29 }
 0x6ef   : > { %v4037_v10 = vmul.f32 %v6266_v38, %v4030_v45 }
 0x6f0   : > { %v4004_v13 = vsub.f32 1.5, %v4003_v33  ;;  %v8993_v33 = vperm.slane %v4082_v57, 0 }
 0x6f1   : > { %v4044_v37 = vadd.f32 %v6267_v12, %v4037_v10 }
 0x6f2   : > { %v4005_v5 = vmul.f32 %v6346_v15, %v4004_v13  ;;  %v8998_v13 = vperm.slane %v4082_v57, 3 }
 0x6f4   : > { %v4009_v48 = vsel %vm4008_vm6, %v6346_v15, %v4005_v5 }
 0x6f5   : > { %v4031_v46 = vmul.f32 %v4009_v48, %v3983_v39 }
 0x6f7   : > { %v4038_v27 = vmul.f32 %v6266_v38, %v4031_v46 }
 0x6f9   : > { %v4045_v4 = vadd.f32 %v6267_v12, %v4038_v27 }
 0x6fb   : > { %v4048_v1 = vpack.c.bf16 %v4045_v4, %v4044_v37 }
 0x6fd   : > { %4260 = vmatmul.bf16.vlgmr.msrb.gmra.mxu3 %v4048_v1  ;;  %4279 = vmatmul.bf16.vlgmr.msrb.gmra.mxu0 %v4048_v1 }
 0x6fe   : > { %4298 = vmatmul.bf16.vlgmr.msrb.gmra.mxu1 %v4048_v1  ;;  %4317 = vmatmul.bf16.vlgmr.msrb.gmra.mxu2 %v4048_v1 }
 0x703   : > { %v3951_v7 = vpop.xlane.xlu2 %3950 }
 0x704   : > { %v3956_v56 = vmul.f32 %v3951_v7, %v9571_v18 }
 0x705   : > { %v3967_v52 = vpop.xlane.xlu0 %3966 }
 0x706   : > { %v3976_v58 = vmul.f32 %v3956_v56, %v3956_v56  ;;  %v3972_v19 = vmul.f32 %v3967_v52, %v9571_v18  ;;  %v3984_v35 = vsub.f32 %v8873_v54, %v3956_v56 }
 0x708   : > { %v3980_v49 = vsub.f32 %v3972_v19, %v3976_v58 }
 0x70a   : > { %v3988_v59 = vadd.f32 1e-05, %v3980_v49 }
 0x70b   : > { %v3953_v21 = vpop.xlane.xlu1 %3952 }
 0x70c   : > { %6347 = vrsqrt.f32 %v3988_v59  ;;  %v3957_v20 = vmul.f32 %v3953_v21, %v9571_v18  ;;  %vm4016_vm8 = vweird.f32 %v3988_v59 }
 0x70d   : > { %v3969_v9 = vpop.xlane.xlu2 %3968 }
 0x70e   : > { %v3977_v61 = vmul.f32 %v3957_v20, %v3957_v20  ;;  %v3973_v2 = vmul.f32 %v3969_v9, %v9571_v18  ;;  %v3985_v50 = vsub.f32 %v8879_v62, %v3957_v20 }
 0x710   : > { %v3981_v6 = vsub.f32 %v3973_v2, %v3977_v61  ;;  %v5968_v2 = vld [vmem:[%s7399_s11 + $0xb8] sm:$0xff] }
 0x711   : > { %5050 = vmatpush.bf16.msra.mxu1 %v5968_v2 }
 0x712   : > { %v6348_v11 = vpop.eup %6347  ;;  %v3989_v30 = vadd.f32 1e-05, %v3981_v6 }
 0x713   : > { %v4011_v60 = vmul.f32 %v6348_v11, %v3988_v59  ;;  %vm4017_vm7 = vweird.f32 %v6348_v11  ;;  %v5960_v59 = vld [vmem:[%s7399_s11 + $0x78] sm:$0xff] }
 0x714   : > { %6349 = vrsqrt.f32 %v3989_v30  ;;  %vm4018_vm9 = vmor %vm4016_vm8, %vm4017_vm7  ;;  %vm4026_vm11 = vweird.f32 %v3989_v30  ;;  %5031 = vmatpush.bf16.msra.mxu0 %v5960_v59 }
 0x715   : > { %v4012_v63 = vmul.f32 %v6348_v11, %v4011_v60 }
 0x717   : > { %v4013_v43 = vmul.f32 0.5, %v4012_v63 }
 0x719   : > { %v4014_v55 = vsub.f32 1.5, %v4013_v43 }
 0x71a   : > { %v6350_v36 = vpop.eup %6349 }
 0x71b   : > { %v4015_v16 = vmul.f32 %v6348_v11, %v4014_v55  ;;  %v4021_v22 = vmul.f32 %v6350_v36, %v3989_v30  ;;  %vm4027_vm10 = vweird.f32 %v6350_v36 }
 0x71c   : > { %vm4028_vm12 = vmor %vm4026_vm11, %vm4027_vm10 }
 0x71d   : > { %v4022_v17 = vmul.f32 %v6350_v36, %v4021_v22  ;;  %v4019_v25 = vsel %vm4018_vm9, %v6348_v11, %v4015_v16  ;;  %v5959_v16 = vld [vmem:[%s7399_s11 + $0x70] sm:$0xff] }
 0x71e   : > { %v4032_v53 = vmul.f32 %v4019_v25, %v3984_v35  ;;  %v5967_v35 = vld [vmem:[%s7399_s11 + $0xb0] sm:$0xff]  ;;  %5032 = vmatpush.bf16.msra.mxu0 %v5959_v16 }
 0x71f   : > { %v4023_v26 = vmul.f32 0.5, %v4022_v17  ;;  %5051 = vmatpush.bf16.msra.mxu1 %v5967_v35  ;;  %v5950_v35 = vld [vmem:[%s7399_s11 + $0x28] sm:$0xff] }
 0x720   : > { %v4039_v8 = vmul.f32 %v6266_v38, %v4032_v53 }
 0x721   : > { %v4024_v18 = vsub.f32 1.5, %v4023_v26 }
 0x722   : > { %v4046_v42 = vadd.f32 %v6267_v12, %v4039_v8 }
 0x723   : > { %v4025_v31 = vmul.f32 %v6350_v36, %v4024_v18 }
 0x725   : > { %v4029_v32 = vsel %vm4028_vm12, %v6350_v36, %v4025_v31 }
 0x726   : > { %v4033_v23 = vmul.f32 %v4029_v32, %v3985_v50 }
 0x728   : > { %v4040_v40 = vmul.f32 %v6266_v38, %v4033_v23 }
 0x72a   : > { %v4047_v0 = vadd.f32 %v6267_v12, %v4040_v40 }
 0x72c   : > { %v4049_v51 = vpack.c.bf16 %v4047_v0, %v4046_v42  ;;  %v5952_v42 = vld [vmem:[%s7399_s11 + $0x38] sm:$0xff] }
 0x72d   : > { %v5976_v0 = vld [vmem:[%s7399_s11 + $0xf8] sm:$0xff]  ;;  %5012 = vmatpush.bf16.msra.mxu3 %v5952_v42 }
 0x72e   : > { %4265 = vmatmul.bf16.gmra.mxu3 %v4049_v51  ;;  %4284 = vmatmul.bf16.gmra.mxu0 %v4049_v51  ;;  %v5956_v42 = vld [vmem:[%s7399_s11 + $0x58] sm:$0xff] }
 0x72f   : > { %4303 = vmatmul.bf16.gmra.mxu1 %v4049_v51  ;;  %4322 = vmatmul.bf16.gmra.mxu2 %v4049_v51 }
 0x730   : > { %5069 = vmatpush.bf16.msra.mxu2 %v5976_v0 }
 0x77a   : > { %v4280_v15 = vpop.f32.mrf.mxu0 }
 0x77b   : > { %v8985_v3 = vadd.f32 %v4280_v15, %v8980_v14  ;;  %v4299_v47 = vpop.f32.mrf.mxu1 }
 0x77c   : > { %v8988_v29 = vadd.f32 %v4299_v47, %v8982_v44  ;;  %v5958_v47 = vld [vmem:[%s7399_s11 + $0x68] sm:$0xff] }
 0x77d   : > { %v8991_v34 = vmul.f32 0.70710677, %v8985_v3  ;;  %5033 = vmatpush.bf16.msra.mxu0 %v5958_v47  ;;  %v5964_v47 = vld [vmem:[%s7399_s11 + $0x98] sm:$0xff] }
 0x77e   : > { %v8996_v28 = vmul.f32 0.70710677, %v8988_v29 }
 0x77f   : > { %v4361_v45 = vand.u32 2147483647, %v8991_v34  ;;  %vm4665_vm13 = vcmp.ge.f32.partialorder %v8991_v34, 0.0 }
 0x780   : > { %v4362_v38 = vand.u32 2147483647, %v8996_v28  ;;  %v4261_v5 = vpop.f32.mrf.mxu3  ;;  %vm4666_vm14 = vcmp.ge.f32.partialorder %v8996_v28, 0.0 }
 0x781   : > { %v4377_v39 = vmul.f32 0.3275911, %v4361_v45  ;;  %v9003_v48 = vadd.f32 %v4261_v5, %v8993_v33  ;;  %v4318_v46 = vpop.f32.mrf.mxu2  ;;  %v4569_v37 = vmul.f32 %v4361_v45, %v4361_v45  ;;  %v5966_v45 = vld [vmem:[%s7399_s11 + $0xa8] sm:$0xff] }
 0x782   : > { %v4378_v10 = vmul.f32 0.3275911, %v4362_v38  ;;  %v9006_v12 = vadd.f32 %v4318_v46, %v8998_v13  ;;  %v4282_v56 = vpop.f32.mrf.mxu0  ;;  %v4570_v19 = vmul.f32 %v4362_v38, %v4362_v38  ;;  %5052 = vmatpush.bf16.msra.mxu1 %v5966_v45 }
 0x783   : > { %v4393_v27 = vadd.f32 1.0, %v4377_v39  ;;  %v9009_v4 = vmul.f32 0.70710677, %v9003_v48  ;;  %v4301_v58 = vpop.f32.mrf.mxu1  ;;  %v4585_v21 = vsub.f32 0.0, %v4569_v37  ;;  %v9018_v61 = vadd.f32 %v4282_v56, %v8980_v14  ;;  %v5951_v56 = vld [vmem:[%s7399_s11 + $0x30] sm:$0xff] }
 0x784   : > { %v4394_v1 = vadd.f32 1.0, %v4378_v10  ;;  %v9012_v7 = vmul.f32 0.70710677, %v9006_v12  ;;  %v9022_v30 = vadd.f32 %v4301_v58, %v8982_v44  ;;  %v4586_v43 = vsub.f32 0.0, %v4570_v19  ;;  %5013 = vmatpush.bf16.msra.mxu3 %v5951_v56  ;;  %v5949_v56 = vld [vmem:[%s7399_s11 + $0x20] sm:$0xff] }
 0x785   : > { %6351 = vrcp.f32 %v4393_v27  ;;  %v4360_v52 = vand.u32 2147483647, %v9009_v4  ;;  %v9025_v63 = vmul.f32 0.70710677, %v9018_v61  ;;  %v4602_v17 = vmul.f32 1.442695, %v4585_v21 }
 0x786   : > { %6353 = vrcp.f32 %v4394_v1  ;;  %v4363_v49 = vand.u32 2147483647, %v9012_v7  ;;  %v9028_v36 = vmul.f32 0.70710677, %v9022_v30  ;;  %v4604_v5 = vmul.f32 1.442695, %v4586_v43 }
 0x787   : > { %v4376_v20 = vmul.f32 0.3275911, %v4360_v52  ;;  %v4568_v9 = vmul.f32 %v4360_v52, %v4360_v52  ;;  %v4365_v26 = vand.u32 2147483647, %v9025_v63  ;;  %v5975_v52 = vld [vmem:[%s7399_s11 + $0xf0] sm:$0xff]  ;;  %v5957_v43 = vld [vmem:[%s7399_s11 + $0x60] sm:$0xff] }
 0x788   : > { %v4379_v6 = vmul.f32 0.3275911, %v4363_v49  ;;  %v4571_v11 = vmul.f32 %v4363_v49, %v4363_v49  ;;  %v9039_v50 = vand.u32 2147483647, %v9028_v36  ;;  %v4263_v40 = vpop.f32.mrf.mxu3  ;;  %5070 = vmatpush.bf16.msra.mxu2 %v5975_v52  ;;  %5034 = vmatpush.bf16.msra.mxu0 %v5957_v43  ;;  %v5973_v52 = vld [vmem:[%s7399_s11 + $0xe0] sm:$0xff]  ;;  %vm4669_vm15 = vcmp.ge.f32.partialorder %v9025_v63, 0.0 }
 0x789   : > { %v4392_v60 = vadd.f32 1.0, %v4376_v20  ;;  %v4584_v25 = vsub.f32 0.0, %v4568_v9  ;;  %v4381_v23 = vmul.f32 0.3275911, %v4365_v26  ;;  %v4573_v8 = vmul.f32 %v4365_v26, %v4365_v26  ;;  %v4320_v15 = vpop.f32.mrf.mxu2  ;;  %v5965_v26 = vld [vmem:[%s7399_s11 + $0xa0] sm:$0xff]  ;;  %5014 = vmatpush.bf16.msra.mxu3 %v5950_v35 }
 0x78a   : > { %v4395_v55 = vadd.f32 1.0, %v4379_v6  ;;  %v4587_v31 = vsub.f32 0.0, %v4571_v11  ;;  %v4382_v57 = vmul.f32 0.3275911, %v9039_v50  ;;  %v9051_v1 = vadd.f32 %v4263_v40, %v8993_v33  ;;  %5053 = vmatpush.bf16.msra.mxu1 %v5965_v26 }
 0x78b   : > { %v9031_v22 = vpop.eup %6351  ;;  %6355 = vrcp.f32 %v4392_v60  ;;  %v4397_v39 = vadd.f32 1.0, %v4381_v23  ;;  %v4589_v46 = vsub.f32 0.0, %v4573_v8  ;;  %v9048_v27 = vmul.f32 1.442695, %v4584_v25 }
 0x78c   : > { %v9035_v18 = vpop.eup %6353  ;;  %v4425_v53 = vmul.f32 1.0614054, %v9031_v22  ;;  %6357 = vrcp.f32 %v4395_v55  ;;  %v4398_v37 = vadd.f32 1.0, %v4382_v57  ;;  %v9058_v49 = vmul.f32 1.442695, %v4587_v31  ;;  %5035 = vmatpush.bf16.msra.mxu0 %v5956_v42  ;;  %v5948_v42 = vld [vmem:[%s7399_s11 + $0x18] sm:$0xff] }
 0x78d   : > { %v4426_v32 = vmul.f32 1.0614054, %v9035_v18  ;;  %6359 = vrcp.f32 %v4397_v39  ;;  %v9061_v59 = vadd.f32 %v4320_v15, %v8998_v13  ;;  %v9066_v2 = vmul.f32 1.442695, %v4589_v46  ;;  %5015 = vmatpush.bf16.msra.mxu3 %v5949_v56 }
 0x78e   : > { %v4441_v51 = vadd.f32 -1.4531521, %v4425_v53  ;;  %6361 = vrcp.f32 %v4398_v37  ;;  %v9069_v6 = vmul.f32 0.5, %v8985_v3  ;;  %v9075_v25 = vmul.f32 0.70710677, %v9051_v1  ;;  %5054 = vmatpush.bf16.msra.mxu1 %v5964_v47 }
 0x78f   : > { %v4442_v38 = vadd.f32 -1.4531521, %v4426_v32  ;;  %6363 = vpow2.f32 %v4602_v17  ;;  %v9081_v31 = vmul.f32 0.70710677, %v9061_v59  ;;  %v5974_v32 = vld [vmem:[%s7399_s11 + $0xe8] sm:$0xff]  ;;  %v4574_v57 = vmul.f32 %v9039_v50, %v9039_v50 }
 0x790   : > { %v4457_v10 = vmul.f32 %v9031_v22, %v4441_v51  ;;  %6365 = vpow2.f32 %v4604_v5  ;;  %v4364_v40 = vand.u32 2147483647, %v9075_v25  ;;  %5071 = vmatpush.bf16.msra.mxu2 %v5974_v32  ;;  %vm4670_vm0 = vcmp.ge.f32.partialorder %v9028_v36, 0.0 }
 0x791   : > { %v9055_v58 = vpop.eup %6355  ;;  %v4458_v19 = vmul.f32 %v9035_v18, %v4442_v38  ;;  %v9093_v15 = vand.u32 2147483647, %v9081_v31  ;;  %v4590_v35 = vsub.f32 0.0, %v4574_v57  ;;  %5016 = vmatpush.bf16.msra.mxu3 %v5948_v42  ;;  %v5946_v42 = vld [vmem:[%s7399_s11 + $0x8] sm:$0xff]  ;;  %vm4664_vm1 = vcmp.ge.f32.partialorder %v9009_v4, 0.0 }
 0x792   : > { %v9063_v21 = vpop.eup %6357  ;;  %v4473_v20 = vadd.f32 1.4214138, %v4457_v10  ;;  %v4424_v9 = vmul.f32 1.0614054, %v9055_v58  ;;  %v4380_v46 = vmul.f32 0.3275911, %v4364_v40  ;;  %v4572_v57 = vmul.f32 %v4364_v40, %v4364_v40 }
 0x793   : > { %v4474_v11 = vadd.f32 1.4214138, %v4458_v19  ;;  %v4427_v60 = vmul.f32 1.0614054, %v9063_v21  ;;  %v9087_v0 = vpop.eup %6359  ;;  %vm4667_vm2 = vcmp.ge.f32.partialorder %v9012_v7, 0.0  ;;  %vm4668_vm3 = vcmp.ge.f32.partialorder %v9075_v25, 0.0 }
 0x794   : > { %v4489_v55 = vmul.f32 %v9031_v22, %v4473_v20  ;;  %v4440_v16 = vadd.f32 -1.4531521, %v4424_v9  ;;  %v9096_v45 = vpop.eup %6361  ;;  %v4429_v39 = vmul.f32 1.0614054, %v9087_v0  ;;  %5072 = vmatpush.bf16.msra.mxu2 %v5973_v52  ;;  %v4612_v52 = vmul.f32 1.442695, %v4590_v35 }
 0x795   : > { %v4490_v3 = vmul.f32 %v9035_v18, %v4474_v11  ;;  %v4443_v53 = vadd.f32 -1.4531521, %v4427_v60  ;;  %v4430_v50 = vmul.f32 1.0614054, %v9096_v45  ;;  %v4396_v11 = vadd.f32 1.0, %v4380_v46  ;;  %v5955_v60 = vld [vmem:[%s7399_s11 + $0x50] sm:$0xff]  ;;  %v6364_v43 = vpop.eup %6363 }
 0x796   : > { %v4505_v23 = vadd.f32 -0.28449672, %v4489_v55  ;;  %v4456_v8 = vmul.f32 %v9055_v58, %v4440_v16  ;;  %v4445_v9 = vadd.f32 -1.4531521, %v4429_v39  ;;  %5036 = vmatpush.bf16.msra.mxu0 %v5955_v60  ;;  %v4383_v46 = vmul.f32 0.3275911, %v9093_v15 }
 0x797   : > { %v4506_v17 = vadd.f32 -0.28449672, %v4490_v3  ;;  %v4459_v51 = vmul.f32 %v9063_v21, %v4443_v53  ;;  %v4446_v26 = vadd.f32 -1.4531521, %v4430_v50  ;;  %v5963_v3 = vld [vmem:[%s7399_s11 + $0x90] sm:$0xff]  ;;  %v6366_v53 = vpop.eup %6365  ;;  %6367 = vrcp.f32 %v4396_v11 }
 0x798   : > { %v4521_v38 = vmul.f32 %v9031_v22, %v4505_v23  ;;  %v4472_v5 = vadd.f32 1.4214138, %v4456_v8  ;;  %v4461_v8 = vmul.f32 %v9087_v0, %v4445_v9  ;;  %5055 = vmatpush.bf16.msra.mxu1 %v5963_v3  ;;  %6369 = vpow2.f32 %v9048_v27  ;;  %v5947_v9 = vld [vmem:[%s7399_s11 + $0x10] sm:$0xff]  ;;  %v5953_v3 = vld [vmem:[%s7399_s11 + $0x40] sm:$0xff] }
 0x799   : > { %v4522_v10 = vmul.f32 %v9035_v18, %v4506_v17  ;;  %v4475_v37 = vadd.f32 1.4214138, %v4459_v51  ;;  %v5972_v17 = vld [vmem:[%s7399_s11 + $0xd8] sm:$0xff]  ;;  %v5971_v11 = vld [vmem:[%s7399_s11 + $0xd0] sm:$0xff]  ;;  %v9128_v60 = vmul.f32 0.5, %v8988_v29  ;;  %6371 = vpow2.f32 %v9058_v49  ;;  %v5961_v29 = vld [vmem:[%s7399_s11 + $0x80] sm:$0xff]  ;;  %5017 = vmatpush.bf16.msra.mxu3 %v5947_v9 }
 0x79a   : > { %v4537_v19 = vadd.f32 0.2548296, %v4521_v38  ;;  %v4488_v20 = vmul.f32 %v9055_v58, %v4472_v5  ;;  %v4462_v38 = vmul.f32 %v9096_v45, %v4446_v26  ;;  %5073 = vmatpush.bf16.msra.mxu2 %v5972_v17  ;;  %v5970_v17 = vld [vmem:[%s7399_s11 + $0xc8] sm:$0xff]  ;;  %vm4671_vm4 = vcmp.ge.f32.partialorder %v9081_v31, 0.0 }
 0x79b   : > { %v4538_v55 = vadd.f32 0.2548296, %v4522_v10  ;;  %v4491_v16 = vmul.f32 %v9063_v21, %v4475_v37  ;;  %v5954_v10 = vld [vmem:[%s7399_s11 + $0x48] sm:$0xff] }
 0x79c   : > { %v4553_v32 = vmul.f32 %v9031_v22, %v4537_v19  ;;  %v4504_v23 = vadd.f32 -0.28449672, %v4488_v20  ;;  %v4477_v22 = vadd.f32 1.4214138, %v4461_v8  ;;  %v5962_v37 = vld [vmem:[%s7399_s11 + $0x88] sm:$0xff]  ;;  %v4399_v20 = vadd.f32 1.0, %v4383_v46  ;;  %5037 = vmatpush.bf16.msra.mxu0 %v5954_v10 }
 0x79d   : > { %v4554_v51 = vmul.f32 %v9035_v18, %v4538_v55  ;;  %v4507_v47 = vadd.f32 -0.28449672, %v4491_v16  ;;  %v4478_v56 = vadd.f32 1.4214138, %v4462_v38  ;;  %v4588_v55 = vsub.f32 0.0, %v4572_v57  ;;  %v9132_v16 = vpop.eup %6367  ;;  %5056 = vmatpush.bf16.msra.mxu1 %v5962_v37  ;;  %5018 = vmatpush.bf16.msra.mxu3 %v5946_v42 }
 0x79e   : > { %v9114_v5 = vmul.f32 %v6364_v43, %v4553_v32  ;;  %v4520_v39 = vmul.f32 %v9055_v58, %v4504_v23  ;;  %v4493_v19 = vmul.f32 %v9087_v0, %v4477_v22  ;;  %6373 = vrcp.f32 %v4399_v20  ;;  %5074 = vmatpush.bf16.msra.mxu2 %v5971_v11  ;;  %v6370_v38 = vpop.eup %6369 }
 0x79f   : > { %v9120_v50 = vmul.f32 %v6366_v53, %v4554_v51  ;;  %v4523_v18 = vmul.f32 %v9063_v21, %v4507_v47  ;;  %v4494_v43 = vmul.f32 %v9096_v45, %v4478_v56  ;;  %6375 = vpow2.f32 %v9066_v2  ;;  %v6372_v22 = vpop.eup %6371 }
 0x7a0   : > { %v4536_v40 = vadd.f32 0.2548296, %v4520_v39  ;;  %v4649_v27 = vsub.f32 1.0, %v9114_v5  ;;  %v4509_v35 = vadd.f32 -0.28449672, %v4493_v19  ;;  %6377 = vpow2.f32 %v4612_v52  ;;  %5038 = vmatpush.bf16.msra.mxu0 %v5953_v3  ;;  %v5945_v52 = vld [vmem:[%s7399_s11] sm:$0xff] }
 0x7a1   : > { %v4650_v26 = vsub.f32 1.0, %v9120_v50  ;;  %v4539_v53 = vadd.f32 0.2548296, %v4523_v18  ;;  %v4510_v49 = vadd.f32 -0.28449672, %v4494_v43  ;;  %v9147_v51 = vmul.f32 0.5, %v9018_v61  ;;  %5057 = vmatpush.bf16.msra.mxu1 %v5961_v29  ;;  %5019 = vmatpush.bf16.msra.mxu3 %v5945_v52 }
 0x7a2   : > { %v4428_v32 = vmul.f32 1.0614054, %v9132_v16  ;;  %v4552_v23 = vmul.f32 %v9055_v58, %v4536_v40  ;;  %v4525_v8 = vmul.f32 %v9087_v0, %v4509_v35  ;;  %v4608_v47 = vmul.f32 1.442695, %v4588_v55  ;;  %5075 = vmatpush.bf16.msra.mxu2 %v5970_v17  ;;  %v5969_v40 = vld [vmem:[%s7399_s11 + $0xc0] sm:$0xff] }
 0x7a3   : > { %v4526_v2 = vmul.f32 %v9096_v45, %v4510_v49  ;;  %v4681_v57 = vsub.f32 0.0, %v4649_v27  ;;  %v4575_v58 = vmul.f32 %v9093_v15, %v9093_v15  ;;  %v4682_v46 = vsub.f32 0.0, %v4650_v26 }
 0x7a4   : > { %v4541_v5 = vadd.f32 0.2548296, %v4525_v8  ;;  %v4444_v39 = vadd.f32 -1.4531521, %v4428_v32  ;;  %v4555_v10 = vmul.f32 %v9063_v21, %v4539_v53  ;;  %v9154_v61 = vmul.f32 0.5, %v9022_v30  ;;  %v9156_v50 = vpop.eup %6373 }
 0x7a5   : > { %v4542_v37 = vadd.f32 0.2548296, %v4526_v2  ;;  %v4632_v18 = vmul.f32 %v6370_v38, %v4552_v23  ;;  %v6376_v19 = vpop.eup %6375  ;;  %6379 = vpow2.f32 %v4608_v47  ;;  %v4431_v30 = vmul.f32 1.0614054, %v9156_v50 }
 0x7a6   : > { %v4557_v56 = vmul.f32 %v9087_v0, %v4541_v5  ;;  %v4460_v15 = vmul.f32 %v9132_v16, %v4444_v39  ;;  %v6378_v20 = vpop.eup %6377  ;;  %v4697_v9 = vsel %vm4665_vm13, %v4649_v27, %v4681_v57  ;;  %v4591_v43 = vsub.f32 0.0, %v4575_v58  ;;  %5076 = vmatpush.bf16.msra.mxu2 %v5969_v40 }
 0x7a7   : > { %v4558_v21 = vmul.f32 %v9096_v45, %v4542_v37  ;;  %v4698_v55 = vsel %vm4666_vm14, %v4650_v26, %v4682_v46  ;;  %v4635_v35 = vmul.f32 %v6372_v22, %v4555_v10  ;;  %v4447_v45 = vadd.f32 -1.4531521, %v4431_v30 }
 0x7a8   : > { %v4637_v11 = vmul.f32 %v6376_v19, %v4557_v56  ;;  %v4476_v0 = vadd.f32 1.4214138, %v4460_v15  ;;  %v4648_v53 = vsub.f32 1.0, %v4632_v18  ;;  %v4713_v23 = vadd.f32 1.0, %v4697_v9 }
 0x7a9   : > { %v4638_v3 = vmul.f32 %v6378_v20, %v4558_v21  ;;  %v4463_v28 = vmul.f32 %v9156_v50, %v4447_v45  ;;  %v4714_v42 = vadd.f32 1.0, %v4698_v55  ;;  %v4614_v47 = vmul.f32 1.442695, %v4591_v43 }
 0x7aa   : > { %v4653_v49 = vsub.f32 1.0, %v4637_v11  ;;  %v4492_v32 = vmul.f32 %v9132_v16, %v4476_v0  ;;  %v4651_v57 = vsub.f32 1.0, %v4635_v35  ;;  %v4680_v22 = vsub.f32 0.0, %v4648_v53 }
 0x7ab   : > { %v4285_v29 = vpop.f32.mrf.mxu0  ;;  %v4654_v8 = vsub.f32 1.0, %v4638_v3  ;;  %v6380_v38 = vpop.eup %6379  ;;  %v4479_v39 = vadd.f32 1.4214138, %v4463_v28  ;;  %v4729_v18 = vmul.f32 %v4713_v23, %v9069_v6  ;;  %v4730_v40 = vmul.f32 %v4714_v42, %v9128_v60 }
 0x7ac   : > { %v9173_v34 = vadd.f32 %v4285_v29, %v8980_v14  ;;  %v4304_v27 = vpop.f32.mrf.mxu1  ;;  %v4685_v17 = vsub.f32 0.0, %v4653_v49  ;;  %v4508_v2 = vadd.f32 -0.28449672, %v4492_v32  ;;  %v4683_v30 = vsub.f32 0.0, %v4651_v57 }
 0x7ad   : > { %v9177_v26 = vadd.f32 %v4304_v27, %v8982_v44  ;;  %v4686_v5 = vsub.f32 0.0, %v4654_v8  ;;  %v4495_v52 = vmul.f32 %v9156_v50, %v4479_v39  ;;  %6381 = vpow2.f32 %v4614_v47 }
 0x7ae   : > { %v9180_v58 = vmul.f32 0.70710677, %v9173_v34  ;;  %v4701_v46 = vsel %vm4669_vm15, %v4653_v49, %v4685_v17  ;;  %v4524_v10 = vmul.f32 %v9132_v16, %v4508_v2  ;;  %v4696_v6 = vsel %vm4664_vm1, %v4648_v53, %v4680_v22 }
 0x7af   : > { %v9186_v37 = vmul.f32 0.70710677, %v9177_v26  ;;  %v4717_v56 = vadd.f32 1.0, %v4701_v46  ;;  %v4702_v15 = vsel %vm4670_vm0, %v4654_v8, %v4686_v5  ;;  %v4511_v9 = vadd.f32 -0.28449672, %v4495_v52 }
 0x7b0   : > { %v4718_v19 = vadd.f32 1.0, %v4702_v15  ;;  %v4540_v21 = vadd.f32 0.2548296, %v4524_v10  ;;  %v4369_v63 = vand.u32 2147483647, %v9180_v58  ;;  %v4328_v60 = vmul.f32 0.5, %v9003_v48 }
 0x7b1   : > { %v4733_v20 = vmul.f32 %v4717_v56, %v9147_v51  ;;  %v4370_v0 = vand.u32 2147483647, %v9186_v37  ;;  %v4527_v55 = vmul.f32 %v9156_v50, %v4511_v9  ;;  %v4266_v35 = vpop.f32.mrf.mxu3  ;;  %v4331_v3 = vmul.f32 0.5, %v9006_v12 }
 0x7b2   : > { %v4734_v11 = vmul.f32 %v4718_v19, %v9154_v61  ;;  %v4556_v36 = vmul.f32 %v9132_v16, %v4540_v21  ;;  %v4385_v29 = vmul.f32 0.3275911, %v4369_v63  ;;  %v4323_v49 = vpop.f32.mrf.mxu2  ;;  %v4712_v53 = vadd.f32 1.0, %v4696_v6 }
 0x7b3   : > { %v4745_v43 = vpack.c.bf16 %v4733_v20, %v4729_v18  ;;  %v4287_v4 = vpop.f32.mrf.mxu0  ;;  %v4332_v16 = vmul.f32 0.5, %v9051_v1  ;;  %v4543_v61 = vadd.f32 0.2548296, %v4527_v55  ;;  %v4699_v32 = vsel %vm4667_vm2, %v4651_v57, %v4683_v30  ;;  %v6382_v12 = vpop.eup %6381 }
 0x7b4   : > { %v4746_v51 = vpack.c.bf16 %v4734_v11, %v4730_v40  ;;  %v4636_v45 = vmul.f32 %v6380_v38, %v4556_v36  ;;  %v4386_v27 = vmul.f32 0.3275911, %v4370_v0  ;;  %v9206_v23 = vadd.f32 %v4266_v35, %v8993_v33  ;;  %v4306_v9 = vpop.f32.mrf.mxu1 }
 0x7b5   : > { %5039 = vmatmul.bf16.vlgmr.msra.gmra.mxu0 %v4745_v43  ;;  %v4559_v8 = vmul.f32 %v9156_v50, %v4543_v61  ;;  %v9211_v28 = vadd.f32 %v4323_v49, %v8998_v13  ;;  %v9214_v7 = vadd.f32 %v4287_v4, %v8980_v14  ;;  %v4401_v42 = vadd.f32 1.0, %v4385_v29 }
 0x7b6   : > { %v4652_v48 = vsub.f32 1.0, %v4636_v45  ;;  %5058 = vmatmul.bf16.vlgmr.msra.gmra.mxu1 %v4746_v51  ;;  %v4577_v17 = vmul.f32 %v4369_v63, %v4369_v63  ;;  %v9217_v2 = vmul.f32 0.70710677, %v9206_v23  ;;  %v4728_v47 = vmul.f32 %v4712_v53, %v4328_v60 }
 0x7b7   : > { %v4715_v38 = vadd.f32 1.0, %v4699_v32  ;;  %v4639_v57 = vmul.f32 %v6382_v12, %v4559_v8  ;;  %v9220_v5 = vmul.f32 0.70710677, %v9211_v28  ;;  %v4402_v50 = vadd.f32 1.0, %v4386_v27 }
 0x7b8   : > { %v4684_v1 = vsub.f32 0.0, %v4652_v48  ;;  %v4368_v39 = vand.u32 2147483647, %v9217_v2  ;;  %v9224_v22 = vmul.f32 0.70710677, %v9214_v7  ;;  %v4578_v10 = vmul.f32 %v4370_v0, %v4370_v0 }
 0x7b9   : > { %v4655_v46 = vsub.f32 1.0, %v4639_v57  ;;  %v4371_v18 = vand.u32 2147483647, %v9220_v5  ;;  %6383 = vrcp.f32 %v4401_v42  ;;  %v4593_v56 = vsub.f32 0.0, %v4577_v17  ;;  %v4268_v60 = vpop.f32.mrf.mxu3 }
 0x7ba   : > { %v4700_v25 = vsel %vm4668_vm3, %v4652_v48, %v4684_v1  ;;  %v4384_v15 = vmul.f32 0.3275911, %v4368_v39  ;;  %v4373_v52 = vand.u32 2147483647, %v9224_v22  ;;  %v4576_v21 = vmul.f32 %v4368_v39, %v4368_v39  ;;  %v4325_v43 = vpop.f32.mrf.mxu2 }
 0x7bb   : > { %v4716_v14 = vadd.f32 1.0, %v4700_v25  ;;  %v4687_v19 = vsub.f32 0.0, %v4655_v46  ;;  %v4387_v63 = vmul.f32 0.3275911, %v4371_v18  ;;  %6385 = vrcp.f32 %v4402_v50 }
 0x7bc   : > { %v4579_v30 = vmul.f32 %v4371_v18, %v4371_v18  ;;  %v4389_v20 = vmul.f32 0.3275911, %v4373_v52  ;;  %v4594_v36 = vsub.f32 0.0, %v4578_v10  ;;  %v4400_v0 = vadd.f32 1.0, %v4384_v15 }
 0x7bd   : > { %v4732_v40 = vmul.f32 %v4716_v14, %v4332_v16  ;;  %v4703_v11 = vsel %vm4671_vm4, %v4655_v46, %v4687_v19  ;;  %v4731_v55 = vmul.f32 %v4715_v38, %v4331_v3  ;;  %v4335_v35 = vmul.f32 0.5, %v9061_v59 }
 0x7be   : > { %v4719_v51 = vadd.f32 1.0, %v4703_v11  ;;  %v4405_v45 = vadd.f32 1.0, %v4389_v20  ;;  %v4618_v29 = vmul.f32 1.442695, %v4593_v56  ;;  %v4592_v49 = vsub.f32 0.0, %v4576_v21 }
 0x7bf   : > { %v4744_v6 = vpack.c.bf16 %v4732_v40, %v4728_v47  ;;  %v4403_v4 = vadd.f32 1.0, %v4387_v63  ;;  %v9231_v31 = vadd.f32 %v4306_v9, %v8982_v44  ;;  %v9233_v53 = vpop.eup %6383  ;;  %v4595_v61 = vsub.f32 0.0, %v4579_v30 }
 0x7c0   : > { %v4735_v16 = vmul.f32 %v4719_v51, %v4335_v35  ;;  %v9236_v32 = vadd.f32 %v4268_v60, %v8993_v33  ;;  %v9239_v3 = vadd.f32 %v4325_v43, %v8998_v13  ;;  %v4620_v59 = vmul.f32 1.442695, %v4594_v36 }
 0x7c1   : > { %5020 = vmatmul.bf16.vlgmr.msra.gmra.mxu3 %v4744_v6  ;;  %6387 = vrcp.f32 %v4400_v0  ;;  %v9242_v48 = vmul.f32 0.70710677, %v9231_v31  ;;  %v9244_v27 = vpop.eup %6385  ;;  %v4581_v12 = vmul.f32 %v4373_v52, %v4373_v52  ;;  %v4616_v1 = vmul.f32 1.442695, %v4592_v49 }
 0x7c2   : > { %v4747_v44 = vpack.c.bf16 %v4735_v16, %v4731_v55  ;;  %6389 = vrcp.f32 %v4405_v45  ;;  %v9247_v8 = vmul.f32 0.70710677, %v9236_v32  ;;  %v4622_v13 = vmul.f32 1.442695, %v4595_v61 }
 0x7c3   : > { %6391 = vrcp.f32 %v4403_v4  ;;  %v4374_v33 = vand.u32 2147483647, %v9242_v48  ;;  %v9252_v17 = vmul.f32 0.70710677, %v9239_v3  ;;  %v4433_v38 = vmul.f32 1.0614054, %v9233_v53 }
 0x7c4   : > { %6393 = vpow2.f32 %v4618_v29  ;;  %v4372_v42 = vand.u32 2147483647, %v9247_v8  ;;  %5077 = vmatmul.bf16.vlgmr.msra.gmra.mxu2 %v4747_v44  ;;  %v4434_v57 = vmul.f32 1.0614054, %v9244_v27  ;;  %v4597_v25 = vsub.f32 0.0, %v4581_v12 }
 0x7c5   : > { %6395 = vpow2.f32 %v4620_v59  ;;  %v4390_v47 = vmul.f32 0.3275911, %v4374_v33  ;;  %v4582_v50 = vmul.f32 %v4374_v33, %v4374_v33  ;;  %v4375_v14 = vand.u32 2147483647, %v9252_v17 }
 0x7c6   : > { %v4388_v39 = vmul.f32 0.3275911, %v4372_v42  ;;  %v4580_v18 = vmul.f32 %v4372_v42, %v4372_v42  ;;  %v4449_v56 = vadd.f32 -1.4531521, %v4433_v38  ;;  %v4450_v15 = vadd.f32 -1.4531521, %v4434_v57 }
 0x7c7   : > { %v9257_v46 = vpop.eup %6387  ;;  %v4406_v10 = vadd.f32 1.0, %v4390_v47  ;;  %6397 = vpow2.f32 %v4616_v1  ;;  %v4391_v19 = vmul.f32 0.3275911, %v4375_v14  ;;  %v4583_v21 = vmul.f32 %v4375_v14, %v4375_v14 }
 0x7c8   : > { %v9259_v52 = vpop.eup %6389  ;;  %v4404_v40 = vadd.f32 1.0, %v4388_v39  ;;  %v9264_v30 = vmul.f32 0.5, %v9173_v34  ;;  %v4465_v9 = vmul.f32 %v9233_v53, %v4449_v56  ;;  %v4626_v11 = vmul.f32 1.442695, %v4597_v25 }
 0x7c9   : > { %v9261_v63 = vpop.eup %6391  ;;  %6399 = vrcp.f32 %v4406_v10  ;;  %v4437_v20 = vmul.f32 1.0614054, %v9259_v52  ;;  %v4598_v36 = vsub.f32 0.0, %v4582_v50  ;;  %v4407_v0 = vadd.f32 1.0, %v4391_v19 }
 0x7ca   : > { %v6394_v6 = vpop.eup %6393  ;;  %6401 = vrcp.f32 %v4404_v40  ;;  %v4596_v43 = vsub.f32 0.0, %v4580_v18  ;;  %v4481_v35 = vadd.f32 1.4214138, %v4465_v9  ;;  %v4466_v51 = vmul.f32 %v9244_v27, %v4450_v15 }
 0x7cb   : > { %v9268_v60 = vpop.eup %6395  ;;  %v4453_v55 = vadd.f32 -1.4531521, %v4437_v20  ;;  %6403 = vpow2.f32 %v4622_v13  ;;  %v4599_v34 = vsub.f32 0.0, %v4583_v21  ;;  %v4432_v45 = vmul.f32 1.0614054, %v9257_v46 }
 0x7cc   : > { %v4435_v29 = vmul.f32 1.0614054, %v9261_v63  ;;  %6405 = vrcp.f32 %v4407_v0  ;;  %v4497_v4 = vmul.f32 %v9233_v53, %v4481_v35  ;;  %v4482_v16 = vadd.f32 1.4214138, %v4466_v51 }
 0x7cd   : > { %v4469_v49 = vmul.f32 %v9259_v52, %v4453_v55  ;;  %v9275_v61 = vpop.eup %6397  ;;  %6407 = vpow2.f32 %v4626_v11  ;;  %v4628_v59 = vmul.f32 1.442695, %v4598_v36  ;;  %v4448_v44 = vadd.f32 -1.4531521, %v4432_v45 }
 0x7ce   : > { %v4451_v12 = vadd.f32 -1.4531521, %v4435_v29  ;;  %v4624_v33 = vmul.f32 1.442695, %v4596_v43  ;;  %v4513_v42 = vadd.f32 -0.28449672, %v4497_v4  ;;  %v4498_v47 = vmul.f32 %v9244_v27, %v4482_v16 }
 0x7cf   : > { %v9277_v1 = vpop.eup %6399  ;;  %v4485_v13 = vadd.f32 1.4214138, %v4469_v49  ;;  %v9282_v57 = vmul.f32 1.442695, %v4599_v34  ;;  %v4464_v50 = vmul.f32 %v9257_v46, %v4448_v44  ;;  %6409 = vpow2.f32 %v4628_v59 }
 0x7d0   : > { %v9280_v38 = vpop.eup %6401  ;;  %v4438_v25 = vmul.f32 1.0614054, %v9277_v1  ;;  %v4467_v39 = vmul.f32 %v9261_v63, %v4451_v12  ;;  %v4529_v10 = vmul.f32 %v9233_v53, %v4513_v42  ;;  %v4514_v18 = vadd.f32 -0.28449672, %v4498_v47 }
 0x7d1   : > { %v4501_v14 = vmul.f32 %v9259_v52, %v4485_v13  ;;  %v4436_v56 = vmul.f32 1.0614054, %v9280_v38  ;;  %v9290_v15 = vpop.eup %6403  ;;  %v4480_v19 = vadd.f32 1.4214138, %v4464_v50  ;;  %vm4673_vm5 = vcmp.ge.f32.partialorder %v9180_v58, 0.0 }
 0x7d2   : > { %v4454_v40 = vadd.f32 -1.4531521, %v4438_v25  ;;  %v4483_v21 = vadd.f32 1.4214138, %v4467_v39  ;;  %v9292_v20 = vpop.eup %6405  ;;  %v4545_v11 = vadd.f32 0.2548296, %v4529_v10  ;;  %v4530_v36 = vmul.f32 %v9244_v27, %v4514_v18 }
 0x7d3   : > { %v4517_v9 = vadd.f32 -0.28449672, %v4501_v14  ;;  %v4452_v0 = vadd.f32 -1.4531521, %v4436_v56  ;;  %v6408_v43 = vpop.eup %6407  ;;  %v4496_v35 = vmul.f32 %v9257_v46, %v4480_v19  ;;  %v4439_v51 = vmul.f32 1.0614054, %v9292_v20 }
 0x7d4   : > { %v4470_v55 = vmul.f32 %v9277_v1, %v4454_v40  ;;  %v4499_v34 = vmul.f32 %v9261_v63, %v4483_v21  ;;  %v4561_v29 = vmul.f32 %v9233_v53, %v4545_v11  ;;  %v4546_v49 = vadd.f32 0.2548296, %v4530_v36 }
 0x7d5   : > { %v4533_v45 = vmul.f32 %v9259_v52, %v4517_v9  ;;  %v4468_v4 = vmul.f32 %v9280_v38, %v4452_v0  ;;  %6411 = vpow2.f32 %v4624_v33  ;;  %v4512_v59 = vadd.f32 -0.28449672, %v4496_v35  ;;  %v6410_v25 = vpop.eup %6409 }
 0x7d6   : > { %v4486_v16 = vadd.f32 1.4214138, %v4470_v55  ;;  %v4455_v44 = vadd.f32 -1.4531521, %v4439_v51  ;;  %v4641_v13 = vmul.f32 %v6394_v6, %v4561_v29  ;;  %v4562_v42 = vmul.f32 %v9244_v27, %v4546_v49 }
 0x7d7   : > { %v4549_v12 = vadd.f32 0.2548296, %v4533_v45  ;;  %v4484_v47 = vadd.f32 1.4214138, %v4468_v4  ;;  %v4528_v39 = vmul.f32 %v9257_v46, %v4512_v59  ;;  %v4515_v53 = vadd.f32 -0.28449672, %v4499_v34 }
 0x7d8   : > { %v4502_v50 = vmul.f32 %v9277_v1, %v4486_v16  ;;  %v4471_v14 = vmul.f32 %v9292_v20, %v4455_v44  ;;  %v4657_v18 = vsub.f32 1.0, %v4641_v13  ;;  %v4642_v33 = vmul.f32 %v9268_v60, %v4562_v42 }
 0x7d9   : > { %v4565_v10 = vmul.f32 %v9259_v52, %v4549_v12  ;;  %v4500_v56 = vmul.f32 %v9280_v38, %v4484_v47  ;;  %v4544_v6 = vadd.f32 0.2548296, %v4528_v39  ;;  %v4531_v27 = vmul.f32 %v9261_v63, %v4515_v53 }
 0x7da   : > { %v4518_v40 = vadd.f32 -0.28449672, %v4502_v50  ;;  %v4487_v19 = vadd.f32 1.4214138, %v4471_v14  ;;  %v4689_v9 = vsub.f32 0.0, %v4657_v18  ;;  %v4658_v11 = vsub.f32 1.0, %v4642_v33 }
 0x7db   : > { %v4645_v21 = vmul.f32 %v6408_v43, %v4565_v10  ;;  %v4516_v36 = vadd.f32 -0.28449672, %v4500_v56  ;;  %v6412_v0 = vpop.eup %6411  ;;  %v4560_v35 = vmul.f32 %v9257_v46, %v4544_v6  ;;  %v4547_v51 = vadd.f32 0.2548296, %v4531_v27 }
 0x7dc   : > { %v4534_v55 = vmul.f32 %v9277_v1, %v4518_v40  ;;  %v4503_v52 = vmul.f32 %v9292_v20, %v4487_v19  ;;  %vm4674_vm6 = vcmp.ge.f32.partialorder %v9186_v37, 0.0  ;;  %v4705_v34 = vsel %vm4673_vm5, %v4657_v18, %v4689_v9 }
 0x7dd   : > { %v4661_v60 = vsub.f32 1.0, %v4645_v21  ;;  %v4532_v45 = vmul.f32 %v9280_v38, %v4516_v36  ;;  %vm4677_vm7 = vcmp.ge.f32.partialorder %v9224_v22, 0.0  ;;  %v4640_v29 = vmul.f32 %v9275_v61, %v4560_v35 }
 0x7de   : > { %v4550_v43 = vadd.f32 0.2548296, %v4534_v55  ;;  %v4519_v49 = vadd.f32 -0.28449672, %v4503_v52  ;;  %6413 = vpow2.f32 %v9282_v57  ;;  %v4563_v16 = vmul.f32 %v9261_v63, %v4547_v51 }
 0x7df   : > { %v4693_v46 = vsub.f32 0.0, %v4661_v60  ;;  %v4548_v4 = vadd.f32 0.2548296, %v4532_v45  ;;  %v4721_v59 = vadd.f32 1.0, %v4705_v34  ;;  %v4690_v12 = vsub.f32 0.0, %v4658_v11 }
 0x7e0   : > { %v4566_v44 = vmul.f32 %v9277_v1, %v4550_v43  ;;  %v4656_v58 = vsub.f32 1.0, %v4640_v29  ;;  %v4535_v22 = vmul.f32 %v9292_v20, %v4519_v49  ;;  %v4643_v47 = vmul.f32 %v9290_v15, %v4563_v16 }
 0x7e1   : > { %v4709_v13 = vsel %vm4677_vm7, %v4661_v60, %v4693_v46  ;;  %v4564_v42 = vmul.f32 %v9280_v38, %v4548_v4  ;;  %v4341_v61 = vmul.f32 0.5, %v9214_v7  ;;  %vm4672_vm8 = vcmp.ge.f32.partialorder %v9217_v2, 0.0 }
 0x7e2   : > { %v4725_v50 = vadd.f32 1.0, %v4709_v13  ;;  %v4646_v57 = vmul.f32 %v6410_v25, %v4566_v44  ;;  %v4688_v39 = vsub.f32 0.0, %v4656_v58  ;;  %v4551_v14 = vadd.f32 0.2548296, %v4535_v22 }
 0x7e3   : > { %v4644_v63 = vmul.f32 %v6412_v0, %v4564_v42  ;;  %v4659_v53 = vsub.f32 1.0, %v4643_v47  ;;  %v4737_v1 = vmul.f32 %v4721_v59, %v9264_v30  ;;  %v4706_v38 = vsel %vm4674_vm6, %v4658_v11, %v4690_v12 }
 0x7e4   : > { %v4741_v10 = vmul.f32 %v4725_v50, %v4341_v61  ;;  %v4662_v18 = vsub.f32 1.0, %v4646_v57  ;;  %v6414_v33 = vpop.eup %6413  ;;  %v4704_v15 = vsel %vm4672_vm8, %v4656_v58, %v4688_v39  ;;  %v4567_v7 = vmul.f32 %v9292_v20, %v4551_v14 }
 0x7e5   : > { %v4660_v56 = vsub.f32 1.0, %v4644_v63  ;;  %v4691_v40 = vsub.f32 0.0, %v4659_v53  ;;  %v4338_v25 = vmul.f32 0.5, %v9177_v26  ;;  %vm4675_vm9 = vcmp.ge.f32.partialorder %v9220_v5, 0.0 }
 0x7e6   : > { %v4749_v2 = vpack.c.bf16 %v4741_v10, %v4737_v1  ;;  %v4694_v6 = vsub.f32 0.0, %v4662_v18  ;;  %vm4678_vm10 = vcmp.ge.f32.partialorder %v9242_v48, 0.0  ;;  %v4722_v30 = vadd.f32 1.0, %v4706_v38 }
 0x7e7   : > { %v4692_v19 = vsub.f32 0.0, %v4660_v56  ;;  %v4647_v27 = vmul.f32 %v6414_v33, %v4567_v7  ;;  %v4342_v37 = vmul.f32 0.5, %v9231_v31  ;;  %vm4676_vm11 = vcmp.ge.f32.partialorder %v9247_v8, 0.0 }
 0x7e8   : > { %5044 = vmatmul.bf16.gmra.mxu0 %v4749_v2  ;;  %v4710_v21 = vsel %vm4678_vm10, %v4662_v18, %v4694_v6  ;;  %v4720_v9 = vadd.f32 1.0, %v4704_v15  ;;  %v4707_v26 = vsel %vm4675_vm9, %v4659_v53, %v4691_v40  ;;  %v4336_v5 = vmul.f32 0.5, %v9206_v23 }
 0x7e9   : > { %v4726_v20 = vadd.f32 1.0, %v4710_v21  ;;  %v4708_v11 = vsel %vm4676_vm11, %v4660_v56, %v4692_v19  ;;  %v4663_v36 = vsub.f32 1.0, %v4647_v27  ;;  %v4340_v0 = vmul.f32 0.5, %v9236_v32 }
 0x7ea   : > { %v4724_v55 = vadd.f32 1.0, %v4708_v11  ;;  %v4738_v48 = vmul.f32 %v4722_v30, %v4338_v25  ;;  %vm4679_vm12 = vcmp.ge.f32.partialorder %v9252_v17, 0.0  ;;  %v4736_v31 = vmul.f32 %v4720_v9, %v4336_v5  ;;  %v6268_v17 = vld [vmem:[%s9573_s23] ss:$0 sm:$0xff] }
 0x7eb   : > { %v4742_v35 = vmul.f32 %v4726_v20, %v4342_v37  ;;  %v4695_v52 = vsub.f32 0.0, %v4663_v36  ;;  %v4723_v51 = vadd.f32 1.0, %v4707_v26  ;;  %v4339_v45 = vmul.f32 0.5, %v9211_v28 }
 0x7ec   : > { %v4740_v8 = vmul.f32 %v4724_v55, %v4340_v0  ;;  %v4343_v43 = vmul.f32 0.5, %v9239_v3 }
 0x7ed   : > { %v4750_v60 = vpack.c.bf16 %v4742_v35, %v4738_v48  ;;  %v4711_v34 = vsel %vm4679_vm12, %v4663_v36, %v4695_v52  ;;  %v4739_v32 = vmul.f32 %v4723_v51, %v4339_v45 }
 0x7ee   : > { %v4748_v23 = vpack.c.bf16 %v4740_v8, %v4736_v31  ;;  %v4727_v29 = vadd.f32 1.0, %v4711_v34 }
 0x7ef   : > { %5063 = vmatmul.bf16.gmra.mxu1 %v4750_v60 }
 0x7f0   : > { %5025 = vmatmul.bf16.gmra.mxu3 %v4748_v23  ;;  %v4743_v49 = vmul.f32 %v4727_v29, %v4343_v43 }
 0x7f2   : > { %v4751_v46 = vpack.c.bf16 %v4743_v49, %v4739_v32 }
 0x7f4   : > { %5082 = vmatmul.bf16.gmra.mxu2 %v4751_v46 }
 0x832   : > { %v5040_v4 = vpop.f32.mrf.mxu0 }
 0x833   : > { %v5059_v44 = vpop.f32.mrf.mxu1 }
 0x83a   : > { %v5042_v47 = vpop.f32.mrf.mxu0 }
 0x83b   : > { %v5061_v50 = vpop.f32.mrf.mxu1 }
 0x844   : > { %v5021_v16 = vpop.f32.mrf.mxu3 }
 0x845   : > { %v5022_v59 = vadd.f32 %v6268_v17, %v5021_v16 }
 0x847   : > { %v5041_v12 = vadd.f32 %v5040_v4, %v5022_v59  ;;  %v5078_v58 = vpop.f32.mrf.mxu2 }
 0x849   : > { %v5060_v28 = vadd.f32 %v5059_v44, %v5041_v12 }
 0x84b   : > { %v5079_v3 = vadd.f32 %v5078_v58, %v5060_v28 }
 0x84c   : > { %v5023_v13 = vpop.f32.mrf.mxu3 }
 0x84d   : > { %v5088_v42 = vadd.f32 %v5079_v3, %v8861_v24  ;;  %v5024_v22 = vadd.f32 %v6268_v17, %v5023_v13 }
 0x84f   : > { %5092 = vst [vmem:[#allocation2 + $0x10] sm:$0xff] %v5088_v42  ;;  %v5043_v61 = vadd.f32 %v5042_v47, %v5024_v22  ;;  %v5080_v39 = vpop.f32.mrf.mxu2 }
 0x851   : > { %v5062_v57 = vadd.f32 %v5061_v50, %v5043_v61 }
 0x853   : > { %v5081_v63 = vadd.f32 %v5080_v39, %v5062_v57 }
 0x855   : > { %v5089_v14 = vadd.f32 %v5081_v63, %v8867_v41 }
 0x857   : > { %5093 = vst [vmem:[#allocation2] sm:$0xff] %v5089_v14 }
 0x865   : > { %v5045_v53 = vpop.f32.mrf.mxu0 }
 0x86c   : > { %v5064_v18 = vpop.f32.mrf.mxu1 }
 0x86d   : > { %v5047_v25 = vpop.f32.mrf.mxu0 }
 0x873   : > { %v5026_v1 = vpop.f32.mrf.mxu3 }
 0x874   : > { %v5027_v10 = vadd.f32 %v6268_v17, %v5026_v1  ;;  %v5066_v6 = vpop.f32.mrf.mxu1 }
 0x876   : > { %v5046_v38 = vadd.f32 %v5045_v53, %v5027_v10 }
 0x877   : > { %v5083_v33 = vpop.f32.mrf.mxu2 }
 0x878   : > { %v5065_v56 = vadd.f32 %v5064_v18, %v5046_v38 }
 0x87a   : > { %v5084_v15 = vadd.f32 %v5083_v33, %v5065_v56 }
 0x87b   : > { %v5028_v24 = vpop.f32.mrf.mxu3 }
 0x87c   : > { %v5090_v7 = vadd.f32 %v5084_v15, %v8873_v54  ;;  %v5029_v40 = vadd.f32 %v6268_v17, %v5028_v24 }
 0x87e   : > { %5094 = vst [vmem:[#allocation2 + $0x18] sm:$0xff] %v5090_v7  ;;  %v5048_v2 = vadd.f32 %v5047_v25, %v5029_v40 }
 0x87f   : > { %v5085_v19 = vpop.f32.mrf.mxu2 }
 0x880   : > { %v5067_v30 = vadd.f32 %v5066_v6, %v5048_v2 }
 0x882   : > { %v5086_v41 = vadd.f32 %v5085_v19, %v5067_v30  ;;  %5100 = sbr.rel (%p5869_p13) target bundleno = 2187 (0x88b), region = 128 }
 0x884   : > { %v5091_v27 = vadd.f32 %v5086_v41, %v8879_v62 }
 0x886   : > { %5095 = vst [vmem:[#allocation2 + $0x8] sm:$0xff] %v5091_v27 }
 0x887   : > { %5101 = vst [vmem:[%s7418_s30] sm:$0xff] %v5088_v42 }
 0x888   : > { %5102 = vst [vmem:[%s7418_s30 + $0x8] sm:$0xff] %v5089_v14 }
 0x889   : > { %5103 = vst [vmem:[%s7418_s30 + $0x10] sm:$0xff] %v5090_v7 }
 0x88a   : > { %5104 = vst [vmem:[%s7418_s30 + $0x18] sm:$0xff] %v5091_v27 }
 0x88b PF: > { %s9575_s0 = sld [smem:[#allocation44_spill]]  ;;  %s5121_s28 = sshll.u32 %s7418_s30, 4  ;;  %s5122_s28 = int_to_ptr.vmem [resolvable:$true] %s5121_s28 }
 0x88c   : > { %s9576_s1 = sld [smem:[#allocation45_spill]]  ;;  %s5106_s16 = scalar_lea.sflag [#allocation8], %s909_s29 }
 0x88d   : > { %s6004_s11 = scalar_select %p7188_p8, [#allocation4], [#allocation27] }
 0x88e   : > { %s9578_s6 = sld [smem:[#allocation72_spill]] }
 0x891   : > { %s9608_s0 = smov (!%p7188_p8, %s9575_s0), 0 }
 0x892   : > { %s5113_s27 = sld [smem:[%s6004_s11 + %s9608_s0]]  ;;  %s5871_s15 = sshll.u32 %s9576_s1, 2 }
 0x894   : > { %s6795_s9 = scalar_lea.hbm %s9578_s6, 64 }
 0x898   : > { %s5872_s18 = sshll.u32 %s5113_s27, 3 }
 0x899   : > { %s5118_s26 = sadd.s32 %s5872_s18, %s5871_s15 }
 0x89a   : > { %s5873_s13 = sshll.u32 %s5118_s26, 3 }
 0x89b   : > { %s5120_s14 = scalar_lea.hbm %s9578_s6, %s5873_s13 }
 0x89c   : > { %s5123_s19 = sshll.u32 %s5120_s14, 4  ;;  %s5124_s19 = int_to_ptr.hbm [resolvable:$true] %s5123_s19 }
 0x89d   : > { %s6789_s4 = sshra.s32 %s5124_s19, 4  ;;  %s6790_s4 = int_to_ptr.hbm [resolvable:$true] %s6789_s4 }
 0x89e   : > { %s6791_s22 = scalar_lea.hbm %s6790_s4, 32  ;;  %p6796_p5 = scmp.lt.s32.totalorder %s6790_s4, %s9578_s6 }
 0x89f   : > { %p6792_p0 = scmp.ne.s32.totalorder %s6790_s4, %s6791_s22  ;;  %p6797_p6 = scmp.lt.s32.totalorder %s6795_s9, %s6791_s22 }
 0x8a1   : > { %p6793_p1 = pnand %p6792_p0, %p7188_p8  ;;  %p6798_p9 = por %p6797_p6, %p6796_p5 }
 0x8a3   : > { %p6794_p4 = pneg %p6793_p1 }
 0x8a5   : > { %p6799_p3 = pnand %p6798_p9, %p6794_p4 }
 0x8a7   : > { %6802 = shalt.err (!%p6799_p3)
}
 0x8a8   : > { %s6969_s29 = smov 128   ;;  %s6970_s1 = smov 8  }
 0x8a9   : > { %6006 = dma.vmem_to_hbm [thread:$0]  (%p7188_p8), %s5122_s28, 512, %s5124_s19, %s5106_s16, %s6969_s29, %s6969_s29, %s6970_s1  }
 0x8aa PF: > { %s9579_s5 = sld [smem:[#allocation46_spill]] }
 0x8ab   : > { %s9580_s11 = sld [smem:[#allocation38_spill]] }
 0x8b0   : > { %p6012_p10 = scmp.ge.s32.totalorder %s9579_s5, 2 }
 0x8b1   : > { %s5138_s15 = sand.u32 1, %s9580_s11  }
 0x8b2   : > { %p6009_p11 = pnand %p6012_p10, %p7192_p2  ;;  %s5139_s18 = scalar_lea.sflag [#allocation8], %s5138_s15 }
 0x8b4   : > { %p6010_p7 = pneg %p6009_p11 }
 0x8b6   : > { %6894 = dma.done.wait (%p6010_p7), %s5139_s18, 512  }
 0x8b7   : > { %6896 = vsyncadd (%p6010_p7), %s5139_s18, 4294966784  ;;  %s62_s22 = sadd.s32 1, %s9579_s5   ;;  %s9583_s0 = sld [smem:[#allocation39_spill]] }
 0x8b8   : > { %p9383_p12 = scmp.ge.s32.totalorder %s62_s22, 10   ;;  %s9584_s1 = sld [smem:[#allocation40_spill]] }
 0x8b9   : > { %s9585_s3 = sld [smem:[#allocation56_spill]]  ;;  %s9595_s16 = smov %s6931_s17 }
 0x8ba   : > { %s9586_s27 = sld [smem:[#allocation41_spill]]  ;;  %s9597_s18 = smov %s6943_s20 }
 0x8bb   : > { %s9587_s28 = sld [smem:[#allocation42_spill]]  ;;  %s9598_s19 = smov %s6947_s21 }
 0x8bc   : > { %s9588_s29 = sld [smem:[#allocation51_spill]] }
 0x8bd   : > { %s9589_s30 = sld [smem:[#allocation43_spill]] }
 0x8be   : > { %s9590_s13 = sld [smem:[#allocation52_spill]] }
 0x8bf   : > { %s9591_s25 = sld [smem:[#allocation48_spill]]  ;;  %s9594_s26 = smov %s9585_s3 }
 0x8c0   : > { %s9592_s2 = sld [smem:[#allocation49_spill]] }
 0x8c2   :  { %61 = sbr.rel (!%p9383_p12) target bundleno = 38 (0x26), region = 261 }
 0x8c4   : > { %s9596_s17 = smov %s9590_s13 }
 0x8c5   : > { %s9599_s20 = smov %s9591_s25 }
 0x8c6   : > { %s9600_s21 = smov %s9592_s2 }
 0x8c7   :  { %5145 = vsyncpa [#allocation7], 1 }
 0x8c8   :  { %5147 = vsyncpa [#allocation7 + $0x1], 1 }
 0x8c9   :  { %5148 = vsyncpa [#allocation10], 1 }
 0x8ca   :  { %5150 = vsyncpa [#allocation10 + $0x1], 1 }
 0x8cb   :  { %5151 = vsyncpa [#allocation13], 1 }
 0x8cc   :  { %5153 = vsyncpa [#allocation13 + $0x1], 1 }
 0x8cd   :  { %5154 = vsyncpa [#allocation16], 1 }
 0x8ce   :  { %5156 = vsyncpa [#allocation16 + $0x1], 1 }
 0x8cf   :  { %5157 = vsyncpa [#allocation19], 1 }
 0x8d0   :  { %5159 = vsyncpa [#allocation19 + $0x1], 1 }
 0x8d1   :  { %5160 = vsyncpa [#allocation22], 1 }
 0x8d2   :  { %5162 = vsyncpa [#allocation22 + $0x1], 1 }
 0x8d3   :  { %5163 = vsyncpa [#allocation25], 1 }
 0x8d4   :  { %5165 = vsyncpa [#allocation25 + $0x1], 1 }
 0x8d5   :  { %5166 = vsyncpa [#allocation8], 1 }
 0x8d6   :  { %5168 = vsyncpa [#allocation8 + $0x1], 1 }

</bundles_post_ra>
